<compile_context>
chip_gen: v7x
topology: tpu7x:2x2x1
jax: 0.10.0
libtpu: 0.0.40
codegen_flags: <defaults>
</compile_context>

<pallas_src>
import jax
import jax.numpy as jnp
from jax.experimental import pallas as pl
from jax.experimental.pallas import tpu as pltpu

# Module defaults (from NeRF.__init__)
D = 8
W = 256
INPUT_CH = 3
INPUT_CH_VIEWS = 3
OUTPUT_CH = 4
SKIPS = (4,)


def _dot(a_f32, w_bf16):
    """bf16 x bf16 MXU matmul with f32 accumulation."""
    return jnp.dot(a_f32.astype(jnp.bfloat16), w_bf16,
                   preferred_element_type=jnp.float32)


def _bias(b_ref, i):
    """Load bias row i from the [8, W] stacked bias ref as a [1, W] slab."""
    return b_ref[pl.ds(i, 1), :]


def _trunk(pts, wk3_ref, wstack_ref, bstack_ref):
    """The 8 pts_linears layers with ReLU and the skip concat at layer 4.

    wk3_ref:    [2, 3, W]   bf16  (layer-0 weight, skip-layer pts weight)
    wstack_ref: [7, W, W]   bf16  (w1..w4, w5_h, w6, w7)
    bstack_ref: [8, W]      f32   (b0..b7)
    """
    pts_bf = pts.astype(jnp.bfloat16)
    h = jnp.maximum(
        jnp.dot(pts_bf, wk3_ref[0], preferred_element_type=jnp.float32)
        + _bias(bstack_ref, 0), 0.0)
    for i in range(4):                                   # layers 1..4
        h = jnp.maximum(_dot(h, wstack_ref[i]) + _bias(bstack_ref, i + 1), 0.0)
    # skip (i == 4): h <- relu( cat([pts, h]) @ W5 + b5 ) == pts@W5p + h@W5h
    h = jnp.maximum(
        jnp.dot(pts_bf, wk3_ref[1], preferred_element_type=jnp.float32)
        + _dot(h, wstack_ref[4]) + _bias(bstack_ref, 5), 0.0)
    for i in range(5, 7):                                # layers 6, 7
        h = jnp.maximum(_dot(h, wstack_ref[i]) + _bias(bstack_ref, i + 1), 0.0)
    return h


def _nerf_kernel_novd(x_ref, wk3_ref, wstack_ref, bstack_ref,
                      wout_ref, bout_ref, out_ref):
    """use_viewdirs=False path: trunk -> output_linear (W -> output_ch)."""
    pts = x_ref[:, :INPUT_CH]
    h = _trunk(pts, wk3_ref, wstack_ref, bstack_ref)
    out_ref[...] = (_dot(h, wout_ref[...]) + bout_ref[...]).astype(out_ref.dtype)


def _nerf_kernel_vd(x_ref, wk3_ref, wstack_ref, bstack_ref,
                    wfa_ref, bfa_ref, wvf_ref, wvv_ref, bv_ref,
                    wrgb_ref, brgb_ref, out_ref):
    """use_viewdirs=True path: trunk -> fused feature/alpha -> views MLP -> rgb."""
    pts = x_ref[:, :INPUT_CH]
    views = x_ref[:, INPUT_CH:INPUT_CH + INPUT_CH_VIEWS]
    h = _trunk(pts, wk3_ref, wstack_ref, bstack_ref)
    # fused feature_linear + alpha_linear: one [W, W+1] GEMM
    fa = _dot(h, wfa_ref[...]) + bfa_ref[...]            # [tn, W+1]
    feature = fa[:, :W]                                  # [tn, W]
    alpha = fa[:, W:W + 1]                               # [tn, 1]
    # h <- relu( cat([feature, views]) @ Wv + bv ) == feature@Wvf + views@Wvv
    hv = jnp.maximum(
        _dot(feature, wvf_ref[...]) + _dot(views, wvv_ref[...]) + bv_ref[...],
        0.0)
    rgb = _dot(hv, wrgb_ref[...]) + brgb_ref[...]        # [tn, 3]
    # outputs = cat([rgb, alpha], -1): single store
    out_ref[...] = jnp.concatenate([rgb, alpha], axis=-1).astype(out_ref.dtype)


def nerf_forward(x, params, use_viewdirs, tile_n=1024):
    n, c = x.shape
    pad = (-n) % tile_n
    if pad:
        x = jnp.pad(x, ((0, pad), (0, 0)))
    n_padded = n + pad

    kernel = _nerf_kernel_vd if use_viewdirs else _nerf_kernel_novd
    x_spec = pl.BlockSpec((tile_n, c), lambda i: (i, 0))
    param_specs = [pl.BlockSpec(p.shape, lambda i, nd=p.ndim: (0,) * nd)
                   for p in params]
    out_spec = pl.BlockSpec((tile_n, OUTPUT_CH), lambda i: (i, 0))

    out = pl.pallas_call(
        kernel,
        out_shape=jax.ShapeDtypeStruct((n_padded, OUTPUT_CH), jnp.float32),
        grid=(n_padded // tile_n,),
        in_specs=[x_spec] + param_specs,
        out_specs=out_spec,
        compiler_params=pltpu.CompilerParams(
            dimension_semantics=("parallel",)),
    )(x, *params)
    return out[:n] if pad else out


# ----------------------- parameter init (deterministic) -----------------------

def _init_linear(key, fan_in, fan_out):
    """Mimic torch nn.Linear default init: U(-1/sqrt(fan_in), 1/sqrt(fan_in))."""
    kw, kb = jax.random.split(key)
    bound = 1.0 / float(fan_in) ** 0.5
    w = jax.random.uniform(kw, (fan_in, fan_out), jnp.float32, -bound, bound)
    b = jax.random.uniform(kb, (1, fan_out), jnp.float32, -bound, bound)
    return w, b


def init_nerf_params(key, use_viewdirs):
    keys = jax.random.split(key, 12)
    # pts_linears
    w0, b0 = _init_linear(keys[0], INPUT_CH, W)
    ws, bs = [], [b0]
    for i in range(1, 5):
        wi, bi = _init_linear(keys[i], W, W)
        ws.append(wi)
        bs.append(bi)
    # layer 5 takes cat([pts, h]) -> split the (W+input_ch, W) weight
    w5, b5 = _init_linear(keys[5], W + INPUT_CH, W)
    ws.append(w5[INPUT_CH:])
    bs.append(b5)
    for i in range(6, 8):
        wi, bi = _init_linear(keys[i], W, W)
        ws.append(wi)
        bs.append(bi)

    wk3 = jnp.stack([w0, w5[:INPUT_CH]], 0).astype(jnp.bfloat16)   # [2, 3, W]
    wstack = jnp.stack(ws, 0).astype(jnp.bfloat16)                 # [7, W, W]
    bstack = jnp.stack([b.reshape(W) for b in bs], 0)              # [8, W] f32
    params = [wk3, wstack, bstack]

    if use_viewdirs:
        wf, bf = _init_linear(keys[8], W, W)             # feature_linear
        wa, ba = _init_linear(keys[9], W, 1)             # alpha_linear
        wv, bv = _init_linear(keys[10], W + INPUT_CH_VIEWS, W // 2)
        wrgb, brgb = _init_linear(keys[11], W // 2, 3)   # rgb_linear
        wfa = jnp.concatenate([wf, wa], 1).astype(jnp.bfloat16)    # [W, W+1]
        bfa = jnp.concatenate([bf, ba], 1)                         # [1, W+1]
        params += [wfa, bfa,
                   wv[:W].astype(jnp.bfloat16),                    # [W,  W//2]
                   wv[W:].astype(jnp.bfloat16),                    # [3,  W//2]
                   bv,                                             # [1,  W//2]
                   wrgb.astype(jnp.bfloat16),                      # [W//2, 3]
                   brgb]                                           # [1, 3]
    else:
        wout, bout = _init_linear(keys[8], W, OUTPUT_CH)
        params += [wout.astype(jnp.bfloat16), bout]
    return params


# ------------------------------ pure-JAX reference ----------------------------
# Uses the same bf16-operand / f32-accumulate numerics as the kernel so the
# comparison isolates kernel correctness.

def nerf_ref(x, params, use_viewdirs):
    def dot(a, w):
        return jnp.dot(a.astype(jnp.bfloat16), w,
                       preferred_element_type=jnp.float32)

    wk3, wstack, bstack = params[:3]
    pts = x[:, :INPUT_CH]
    views = x[:, INPUT_CH:INPUT_CH + INPUT_CH_VIEWS]
    relu = jax.nn.relu

    h = relu(dot(pts, wk3[0]) + bstack[0])
    for i in range(4):
        h = relu(dot(h, wstack[i]) + bstack[i + 1])
    h = relu(dot(pts, wk3[1]) + dot(h, wstack[4]) + bstack[5])
    for i in range(5, 7):
        h = relu(dot(h, wstack[i]) + bstack[i + 1])

    if use_viewdirs:
        wfa, bfa, wvf, wvv, bv, wrgb, brgb = params[3:]
        fa = dot(h, wfa) + bfa
        feature, alpha = fa[:, :W], fa[:, W:W + 1]
        hv = relu(dot(feature, wvf) + dot(views, wvv) + bv)
        rgb = dot(hv, wrgb) + brgb
        return jnp.concatenate([rgb, alpha], -1)
    else:
        wout, bout = params[3:]
        return dot(h, wout) + bout


if __name__ == "__main__":
    key = jax.random.PRNGKey(0)
    kx, kp0, kp1 = jax.random.split(key, 3)

    # Small test batch; not a multiple of tile_n -> exercises padding path.
    N = 384
    x = jax.random.normal(kx, (N, INPUT_CH + INPUT_CH_VIEWS), jnp.float32)

    ok = True
    # default config: use_viewdirs=False (tile_n small here to get grid > 1)
    params0 = init_nerf_params(kp0, use_viewdirs=False)
    out0 = jax.block_until_ready(
        nerf_forward(x, params0, use_viewdirs=False, tile_n=256))
    ref0 = nerf_ref(x, params0, use_viewdirs=False)
    ok &= bool(jnp.allclose(out0, ref0, atol=5e-3, rtol=5e-3))

    # use_viewdirs=True branch
    params1 = init_nerf_params(kp1, use_viewdirs=True)
    out1 = jax.block_until_ready(
        nerf_forward(x, params1, use_viewdirs=True, tile_n=256))
    ref1 = nerf_ref(x, params1, use_viewdirs=True)
    ok &= bool(jnp.allclose(out1, ref1, atol=5e-3, rtol=5e-3))

    if not ok:
        raise SystemExit("mismatch vs reference")
    print("KERNEL_OK")
</pallas_src>

<mosaic_0001>
module attributes {stable_mosaic.version = 11 : i64} {
  func.func @_nerf_kernel_novd(%arg0: i32, %arg1: memref<256x6xf32, #tpu.memory_space<vmem>>, %arg2: memref<2x3x256xbf16, #tpu.memory_space<vmem>>, %arg3: memref<7x256x256xbf16, #tpu.memory_space<vmem>>, %arg4: memref<8x256xf32, #tpu.memory_space<vmem>>, %arg5: memref<256x4xbf16, #tpu.memory_space<vmem>>, %arg6: memref<1x4xf32, #tpu.memory_space<vmem>>, %arg7: memref<256x4xf32, #tpu.memory_space<vmem>>) attributes {dimension_semantics = [#tpu.dimension_semantics<parallel>], iteration_bounds = array<i64: 2>, scalar_prefetch = 0 : i64, scratch_operands = 0 : i64, tpu.core_type = #tpu.core_type<tc>, window_params = [{transform_indices = @transform_0, window_bounds = array<i64: 256, 6>}, {pipeline_mode = #tpu.pipeline_mode<synchronous>, transform_indices = @transform_1, window_bounds = array<i64: 2, 3, 256>}, {pipeline_mode = #tpu.pipeline_mode<synchronous>, transform_indices = @transform_2, window_bounds = array<i64: 7, 256, 256>}, {pipeline_mode = #tpu.pipeline_mode<synchronous>, transform_indices = @transform_3, window_bounds = array<i64: 8, 256>}, {pipeline_mode = #tpu.pipeline_mode<synchronous>, transform_indices = @transform_4, window_bounds = array<i64: 256, 4>}, {pipeline_mode = #tpu.pipeline_mode<synchronous>, transform_indices = @transform_5, window_bounds = array<i64: 1, 4>}, {transform_indices = @transform_6, window_bounds = array<i64: 256, 4>}]} {
    %c0 = arith.constant 0 : index
    %c0_0 = arith.constant 0 : index
    %0 = vector.load %arg1[%c0, %c0_0] : memref<256x6xf32, #tpu.memory_space<vmem>>, vector<256x3xf32>
    %1 = arith.truncf %0 : vector<256x3xf32> to vector<256x3xbf16>
    %c0_1 = arith.constant 0 : index
    %c0_2 = arith.constant 0 : index
    %c0_3 = arith.constant 0 : index
    %2 = vector.load %arg2[%c0_1, %c0_2, %c0_3] : memref<2x3x256xbf16, #tpu.memory_space<vmem>>, vector<1x3x256xbf16>
    %3 = vector.shape_cast %2 : vector<1x3x256xbf16> to vector<3x256xbf16>
    %cst = arith.constant dense<0.000000e+00> : vector<256x256xf32>
    %4 = tpu.matmul %1, %3, %cst {dimension_numbers = #tpu.dot_dimension_numbers<[1], [0], [0], [1], [0, 0, 1, 1], [], []>} : vector<256x3xbf16>, vector<3x256xbf16>, vector<256x256xf32> -> vector<256x256xf32>
    %c0_4 = arith.constant 0 : index
    %c0_5 = arith.constant 0 : index
    %5 = vector.load %arg4[%c0_4, %c0_5] : memref<8x256xf32, #tpu.memory_space<vmem>>, vector<1x256xf32>
    %6 = vector.broadcast %5 : vector<1x256xf32> to vector<256x256xf32>
    %7 = arith.addf %4, %6 : vector<256x256xf32>
    %cst_6 = arith.constant 0.000000e+00 : f32
    %8 = vector.broadcast %cst_6 : f32 to vector<256x256xf32>
    %9 = arith.maximumf %7, %8 : vector<256x256xf32>
    %c0_7 = arith.constant 0 : index
    %c0_8 = arith.constant 0 : index
    %c0_9 = arith.constant 0 : index
    %10 = vector.load %arg3[%c0_7, %c0_8, %c0_9] : memref<7x256x256xbf16, #tpu.memory_space<vmem>>, vector<1x256x256xbf16>
    %11 = vector.shape_cast %10 : vector<1x256x256xbf16> to vector<256x256xbf16>
    %12 = arith.truncf %9 : vector<256x256xf32> to vector<256x256xbf16>
    %cst_10 = arith.constant dense<0.000000e+00> : vector<256x256xf32>
    %13 = tpu.matmul %12, %11, %cst_10 {dimension_numbers = #tpu.dot_dimension_numbers<[1], [0], [0], [1], [0, 0, 1, 1], [], []>} : vector<256x256xbf16>, vector<256x256xbf16>, vector<256x256xf32> -> vector<256x256xf32>
    %c1 = arith.constant 1 : index
    %c0_11 = arith.constant 0 : index
    %14 = vector.load %arg4[%c1, %c0_11] : memref<8x256xf32, #tpu.memory_space<vmem>>, vector<1x256xf32>
    %15 = vector.broadcast %14 : vector<1x256xf32> to vector<256x256xf32>
    %16 = arith.addf %13, %15 : vector<256x256xf32>
    %cst_12 = arith.constant 0.000000e+00 : f32
    %17 = vector.broadcast %cst_12 : f32 to vector<256x256xf32>
    %18 = arith.maximumf %16, %17 : vector<256x256xf32>
    %c1_13 = arith.constant 1 : index
    %c0_14 = arith.constant 0 : index
    %c0_15 = arith.constant 0 : index
    %19 = vector.load %arg3[%c1_13, %c0_14, %c0_15] : memref<7x256x256xbf16, #tpu.memory_space<vmem>>, vector<1x256x256xbf16>
    %20 = vector.shape_cast %19 : vector<1x256x256xbf16> to vector<256x256xbf16>
    %21 = arith.truncf %18 : vector<256x256xf32> to vector<256x256xbf16>
    %cst_16 = arith.constant dense<0.000000e+00> : vector<256x256xf32>
    %22 = tpu.matmul %21, %20, %cst_16 {dimension_numbers = #tpu.dot_dimension_numbers<[1], [0], [0], [1], [0, 0, 1, 1], [], []>} : vector<256x256xbf16>, vector<256x256xbf16>, vector<256x256xf32> -> vector<256x256xf32>
    %c2 = arith.constant 2 : index
    %c0_17 = arith.constant 0 : index
    %23 = vector.load %arg4[%c2, %c0_17] : memref<8x256xf32, #tpu.memory_space<vmem>>, vector<1x256xf32>
    %24 = vector.broadcast %23 : vector<1x256xf32> to vector<256x256xf32>
    %25 = arith.addf %22, %24 : vector<256x256xf32>
    %cst_18 = arith.constant 0.000000e+00 : f32
    %26 = vector.broadcast %cst_18 : f32 to vector<256x256xf32>
    %27 = arith.maximumf %25, %26 : vector<256x256xf32>
    %c2_19 = arith.constant 2 : index
    %c0_20 = arith.constant 0 : index
    %c0_21 = arith.constant 0 : index
    %28 = vector.load %arg3[%c2_19, %c0_20, %c0_21] : memref<7x256x256xbf16, #tpu.memory_space<vmem>>, vector<1x256x256xbf16>
    %29 = vector.shape_cast %28 : vector<1x256x256xbf16> to vector<256x256xbf16>
    %30 = arith.truncf %27 : vector<256x256xf32> to vector<256x256xbf16>
    %cst_22 = arith.constant dense<0.000000e+00> : vector<256x256xf32>
    %31 = tpu.matmul %30, %29, %cst_22 {dimension_numbers = #tpu.dot_dimension_numbers<[1], [0], [0], [1], [0, 0, 1, 1], [], []>} : vector<256x256xbf16>, vector<256x256xbf16>, vector<256x256xf32> -> vector<256x256xf32>
    %c3 = arith.constant 3 : index
    %c0_23 = arith.constant 0 : index
    %32 = vector.load %arg4[%c3, %c0_23] : memref<8x256xf32, #tpu.memory_space<vmem>>, vector<1x256xf32>
    %33 = vector.broadcast %32 : vector<1x256xf32> to vector<256x256xf32>
    %34 = arith.addf %31, %33 : vector<256x256xf32>
    %cst_24 = arith.constant 0.000000e+00 : f32
    %35 = vector.broadcast %cst_24 : f32 to vector<256x256xf32>
    %36 = arith.maximumf %34, %35 : vector<256x256xf32>
    %c3_25 = arith.constant 3 : index
    %c0_26 = arith.constant 0 : index
    %c0_27 = arith.constant 0 : index
    %37 = vector.load %arg3[%c3_25, %c0_26, %c0_27] : memref<7x256x256xbf16, #tpu.memory_space<vmem>>, vector<1x256x256xbf16>
    %38 = vector.shape_cast %37 : vector<1x256x256xbf16> to vector<256x256xbf16>
    %39 = arith.truncf %36 : vector<256x256xf32> to vector<256x256xbf16>
    %cst_28 = arith.constant dense<0.000000e+00> : vector<256x256xf32>
    %40 = tpu.matmul %39, %38, %cst_28 {dimension_numbers = #tpu.dot_dimension_numbers<[1], [0], [0], [1], [0, 0, 1, 1], [], []>} : vector<256x256xbf16>, vector<256x256xbf16>, vector<256x256xf32> -> vector<256x256xf32>
    %c4 = arith.constant 4 : index
    %c0_29 = arith.constant 0 : index
    %41 = vector.load %arg4[%c4, %c0_29] : memref<8x256xf32, #tpu.memory_space<vmem>>, vector<1x256xf32>
    %42 = vector.broadcast %41 : vector<1x256xf32> to vector<256x256xf32>
    %43 = arith.addf %40, %42 : vector<256x256xf32>
    %cst_30 = arith.constant 0.000000e+00 : f32
    %44 = vector.broadcast %cst_30 : f32 to vector<256x256xf32>
    %45 = arith.maximumf %43, %44 : vector<256x256xf32>
    %c1_31 = arith.constant 1 : index
    %c0_32 = arith.constant 0 : index
    %c0_33 = arith.constant 0 : index
    %46 = vector.load %arg2[%c1_31, %c0_32, %c0_33] : memref<2x3x256xbf16, #tpu.memory_space<vmem>>, vector<1x3x256xbf16>
    %47 = vector.shape_cast %46 : vector<1x3x256xbf16> to vector<3x256xbf16>
    %cst_34 = arith.constant dense<0.000000e+00> : vector<256x256xf32>
    %48 = tpu.matmul %1, %47, %cst_34 {dimension_numbers = #tpu.dot_dimension_numbers<[1], [0], [0], [1], [0, 0, 1, 1], [], []>} : vector<256x3xbf16>, vector<3x256xbf16>, vector<256x256xf32> -> vector<256x256xf32>
    %c4_35 = arith.constant 4 : index
    %c0_36 = arith.constant 0 : index
    %c0_37 = arith.constant 0 : index
    %49 = vector.load %arg3[%c4_35, %c0_36, %c0_37] : memref<7x256x256xbf16, #tpu.memory_space<vmem>>, vector<1x256x256xbf16>
    %50 = vector.shape_cast %49 : vector<1x256x256xbf16> to vector<256x256xbf16>
    %51 = arith.truncf %45 : vector<256x256xf32> to vector<256x256xbf16>
    %cst_38 = arith.constant dense<0.000000e+00> : vector<256x256xf32>
    %52 = tpu.matmul %51, %50, %cst_38 {dimension_numbers = #tpu.dot_dimension_numbers<[1], [0], [0], [1], [0, 0, 1, 1], [], []>} : vector<256x256xbf16>, vector<256x256xbf16>, vector<256x256xf32> -> vector<256x256xf32>
    %53 = arith.addf %48, %52 : vector<256x256xf32>
    %c5 = arith.constant 5 : index
    %c0_39 = arith.constant 0 : index
    %54 = vector.load %arg4[%c5, %c0_39] : memref<8x256xf32, #tpu.memory_space<vmem>>, vector<1x256xf32>
    %55 = vector.broadcast %54 : vector<1x256xf32> to vector<256x256xf32>
    %56 = arith.addf %53, %55 : vector<256x256xf32>
    %cst_40 = arith.constant 0.000000e+00 : f32
    %57 = vector.broadcast %cst_40 : f32 to vector<256x256xf32>
    %58 = arith.maximumf %56, %57 : vector<256x256xf32>
    %c5_41 = arith.constant 5 : index
    %c0_42 = arith.constant 0 : index
    %c0_43 = arith.constant 0 : index
    %59 = vector.load %arg3[%c5_41, %c0_42, %c0_43] : memref<7x256x256xbf16, #tpu.memory_space<vmem>>, vector<1x256x256xbf16>
    %60 = vector.shape_cast %59 : vector<1x256x256xbf16> to vector<256x256xbf16>
    %61 = arith.truncf %58 : vector<256x256xf32> to vector<256x256xbf16>
    %cst_44 = arith.constant dense<0.000000e+00> : vector<256x256xf32>
    %62 = tpu.matmul %61, %60, %cst_44 {dimension_numbers = #tpu.dot_dimension_numbers<[1], [0], [0], [1], [0, 0, 1, 1], [], []>} : vector<256x256xbf16>, vector<256x256xbf16>, vector<256x256xf32> -> vector<256x256xf32>
    %c6 = arith.constant 6 : index
    %c0_45 = arith.constant 0 : index
    %63 = vector.load %arg4[%c6, %c0_45] : memref<8x256xf32, #tpu.memory_space<vmem>>, vector<1x256xf32>
    %64 = vector.broadcast %63 : vector<1x256xf32> to vector<256x256xf32>
    %65 = arith.addf %62, %64 : vector<256x256xf32>
    %cst_46 = arith.constant 0.000000e+00 : f32
    %66 = vector.broadcast %cst_46 : f32 to vector<256x256xf32>
    %67 = arith.maximumf %65, %66 : vector<256x256xf32>
    %c6_47 = arith.constant 6 : index
    %c0_48 = arith.constant 0 : index
    %c0_49 = arith.constant 0 : index
    %68 = vector.load %arg3[%c6_47, %c0_48, %c0_49] : memref<7x256x256xbf16, #tpu.memory_space<vmem>>, vector<1x256x256xbf16>
    %69 = vector.shape_cast %68 : vector<1x256x256xbf16> to vector<256x256xbf16>
    %70 = arith.truncf %67 : vector<256x256xf32> to vector<256x256xbf16>
    %cst_50 = arith.constant dense<0.000000e+00> : vector<256x256xf32>
    %71 = tpu.matmul %70, %69, %cst_50 {dimension_numbers = #tpu.dot_dimension_numbers<[1], [0], [0], [1], [0, 0, 1, 1], [], []>} : vector<256x256xbf16>, vector<256x256xbf16>, vector<256x256xf32> -> vector<256x256xf32>
    %c7 = arith.constant 7 : index
    %c0_51 = arith.constant 0 : index
    %72 = vector.load %arg4[%c7, %c0_51] : memref<8x256xf32, #tpu.memory_space<vmem>>, vector<1x256xf32>
    %73 = vector.broadcast %72 : vector<1x256xf32> to vector<256x256xf32>
    %74 = arith.addf %71, %73 : vector<256x256xf32>
    %cst_52 = arith.constant 0.000000e+00 : f32
    %75 = vector.broadcast %cst_52 : f32 to vector<256x256xf32>
    %76 = arith.maximumf %74, %75 : vector<256x256xf32>
    %c0_53 = arith.constant 0 : index
    %c0_54 = arith.constant 0 : index
    %77 = vector.load %arg5[%c0_53, %c0_54] : memref<256x4xbf16, #tpu.memory_space<vmem>>, vector<256x4xbf16>
    %78 = arith.truncf %76 : vector<256x256xf32> to vector<256x256xbf16>
    %cst_55 = arith.constant dense<0.000000e+00> : vector<256x4xf32>
    %79 = tpu.matmul %78, %77, %cst_55 {dimension_numbers = #tpu.dot_dimension_numbers<[1], [0], [0], [1], [0, 0, 1, 1], [], []>} : vector<256x256xbf16>, vector<256x4xbf16>, vector<256x4xf32> -> vector<256x4xf32>
    %c0_56 = arith.constant 0 : index
    %c0_57 = arith.constant 0 : index
    %80 = vector.load %arg6[%c0_56, %c0_57] : memref<1x4xf32, #tpu.memory_space<vmem>>, vector<1x4xf32>
    %81 = vector.broadcast %80 : vector<1x4xf32> to vector<256x4xf32>
    %82 = arith.addf %79, %81 : vector<256x4xf32>
    %c0_58 = arith.constant 0 : index
    %c0_59 = arith.constant 0 : index
    %83 = vector.load %arg7[%c0_58, %c0_59] : memref<256x4xf32, #tpu.memory_space<vmem>>, vector<256x4xf32>
    tpu.vector_store %arg7[%c0_58, %c0_59], %82 {strides = array<i32>} : memref<256x4xf32, #tpu.memory_space<vmem>>, vector<256x4xf32>,
    return
  }
  func.func @transform_0(%arg0: i32) -> (i32, i32) {
    %c0_i32 = arith.constant 0 : i32
    %c0_i32_0 = arith.constant 0 : i32
    return %arg0, %c0_i32 : i32, i32
  }
  func.func @transform_1(%arg0: i32) -> (i32, i32, i32) {
    %c0_i32 = arith.constant 0 : i32
    %c0_i32_0 = arith.constant 0 : i32
    %c0_i32_1 = arith.constant 0 : i32
    %c0_i32_2 = arith.constant 0 : i32
    return %c0_i32, %c0_i32_0, %c0_i32_1 : i32, i32, i32
  }
  func.func @transform_2(%arg0: i32) -> (i32, i32, i32) {
    %c0_i32 = arith.constant 0 : i32
    %c0_i32_0 = arith.constant 0 : i32
    %c0_i32_1 = arith.constant 0 : i32
    %c0_i32_2 = arith.constant 0 : i32
    return %c0_i32, %c0_i32_0, %c0_i32_1 : i32, i32, i32
  }
  func.func @transform_3(%arg0: i32) -> (i32, i32) {
    %c0_i32 = arith.constant 0 : i32
    %c0_i32_0 = arith.constant 0 : i32
    %c0_i32_1 = arith.constant 0 : i32
    return %c0_i32, %c0_i32_0 : i32, i32
  }
  func.func @transform_4(%arg0: i32) -> (i32, i32) {
    %c0_i32 = arith.constant 0 : i32
    %c0_i32_0 = arith.constant 0 : i32
    %c0_i32_1 = arith.constant 0 : i32
    return %c0_i32, %c0_i32_0 : i32, i32
  }
  func.func @transform_5(%arg0: i32) -> (i32, i32) {
    %c0_i32 = arith.constant 0 : i32
    %c0_i32_0 = arith.constant 0 : i32
    %c0_i32_1 = arith.constant 0 : i32
    return %c0_i32, %c0_i32_0 : i32, i32
  }
  func.func @transform_6(%arg0: i32) -> (i32, i32) {
    %c0_i32 = arith.constant 0 : i32
    %c0_i32_0 = arith.constant 0 : i32
    return %arg0, %c0_i32 : i32, i32
  }
}

</mosaic_0001>

<bundles_post_ra>
// kernel: tpu_custom_call.1
= control target key start
LH: loop header
LB: loop body
LE: loop exit
PB: predicated region body
PF: predicated region fallthrough
CT: control target
= control target key end

     0   :  { %11 = vsyncpa [#allocation3], 0  ;;  %s5767_s21 = smov 0   ;;  %s6751_s0 = inlined_call_operand.vmem [shape: f32[512,6], index: 0, kind: input, shape index: {}]   ;;  %s6752_s1 = inlined_call_operand.vmem [shape: bf16[2,3,256], index: 1, kind: input, shape index: {}]   ;;  %s6753_s2 = inlined_call_operand.hbm [shape: bf16[7,256,256], index: 2, kind: input, shape index: {}]   ;;  %s6754_s3 = inlined_call_operand.vmem [shape: f32[8,256], index: 3, kind: input, shape index: {}]   ;;  %s6755_s4 = inlined_call_operand.vmem [shape: bf16[256,4], index: 4, kind: input, shape index: {}]   ;;  %s6756_s5 = inlined_call_operand.vmem [shape: f32[1,4], index: 5, kind: input, shape index: {}]   ;;  %s6757_s6 = inlined_call_operand.vmem [shape: f32[512,4], index: 6, kind: output, shape index: {}]  }
   0x1 LB: > { %s4824_s22 = sadd.s32 4294967295, %s5725_s21   ;;  %p4826_p0 = scmp.ge.s32.totalorder %s5725_s21, 1  ;;  %s5725_s21 = sphi %s5767_s21, %s17_s21  }
   0x2   : > { %p179_p1 = scmp.lt.s32.totalorder %s5725_s21, 3  ;;  %s5727_s23 = smov [#allocation2]  }
   0x3   : > { %s194_s24 = sshll.u32 %s5727_s23, 4  ;;  %p5781_p3 = scmp.eq.s32.totalorder %s4824_s22, 0  ;;  %s195_s24 = int_to_ptr.vmem [resolvable:$true] %s194_s24 }
   0x4   : > { %p5775_p2 = pnand %p4826_p0, %p179_p1  ;;  %s5687_s30 = scalar_lea.hbm %s6753_s2, 28672 }
   0x5   : > { %s6762_s26 = scalar_select %p5781_p3, 1, 0 }
   0x6   : > { %s6761_s25 = scalar_select %p5775_p2, 1, 0 }
   0x7   : > { %p5316_p4 = pneg %p5775_p2  ;;  %p5688_p6 = scmp.ne.s32.totalorder %s6753_s2, %s5687_s30 }
   0x8   : > { %p5694_p10 = scmp.lt.u32.totalorder %s5687_s30, %s6753_s2 }
   0x9   : > { %p5789_p5 = pnand %p5781_p3, %p5316_p4 }
   0xb   : > { %p5689_p7 = pneg %p5789_p5 }
   0xd   : > { %p5690_p8 = pnand %p5689_p7, %p5688_p6 }
   0xf   : > { %p5691_p9 = pneg %p5690_p8 }
  0x11   : > { %p5696_p11 = pnand %p5694_p10, %p5691_p9 }
  0x13   : > { %5699 = shalt.err (!%p5696_p11)
}
  0x14   : > { %s5700_s11 = scalar_lea.vmem %s195_s24, 28672  ;;  %p5708_p1 = scmp.lt.s32.totalorder %s195_s24, %s195_s24 }
  0x15   : > { %p5701_p12 = scmp.ne.s32.totalorder %s195_s24, %s5700_s11  ;;  %p5709_p4 = scmp.lt.s32.totalorder %s5700_s11, %s5700_s11 }
  0x17   : > { %p5703_p13 = pnand %p5701_p12, %p5689_p7  ;;  %p5710_p3 = por %p5709_p4, %p5708_p1 }
  0x19   : > { %p5704_p0 = pneg %p5703_p13 }
  0x1b   : > { %p5711_p2 = pnand %p5710_p3, %p5704_p0 }
  0x1d   : > { %5714 = shalt.err (!%p5711_p2)
}
  0x1e   : > { %s5728_s12 = smov 128   ;;  %s5729_s13 = smov 8  }
  0x1f   : > { %5319 = dma.hbm_to_vmem [thread:$0]  (!%p5789_p5), %s6753_s2, 28672, %s195_s24, [#allocation3], %s5728_s12, %s5728_s12, %s5729_s13  }
  0x20   : > { %p6764_p6 = scmp.ne.s32.totalorder %s6761_s25, 0 }
  0x21   : > { %p6765_p8 = scmp.ne.s32.totalorder (!%p6764_p6), %s6762_s26, 0 }
  0x22   : > { %228 = sbr.rel (%p6764_p6) target bundleno = 2296 (0x8f8), region = 44 }
  0x29   : > { %5720 = dma.done.wait (%p6765_p8), [#allocation3], 28672  }
  0x2a   : > { %5722 = vsyncadd (%p6765_p8), [#allocation3], 4294938624  ;;  %vm390_vm0 = vcmask 1040384   ;;  %v5730_v0 = vmov 0   ;;  %s4831_s16 = sshll.u32 %s4824_s22, 5  ;;  %vm391_vm1 = vcmask 1041408  }
  0x2b   : > { %432 = vmatprep.mubr.bf16.mxu0 %v5730_v0  ;;  %p259_p2 = scmp.lt.s32.totalorder %s4831_s16, 63  ;;  %v5731_v1 = vmov 65535   ;;  %v4835_v4 = vld.sshfl [vmem:[%s6752_s1] sm:$0x33 pattern:$0x76325410] }
  0x2c   : > { %v392_v2 = vsel %vm390_vm0, 4294967295, %v5731_v1  ;;  %v340_v5 = vcombine.high %v4835_v4, %v4835_v4  ;;  %vm341_vm2 = vcmask 23552   ;;  %v5335_v13 = vld [vmem:[#allocation2 + $0x4] ss:$8 sps:$4 sm:$0xff]   ;;  %v5337_v14 = vld [vmem:[#allocation2] ss:$8 sps:$4 sm:$0xff]  }
  0x2d   : > { %s6767_s16 = smov (!%p259_p2, %s4831_s16), 63  ;;  %v5820_v3 = vsel %vm391_vm1, %v392_v2, 0  ;;  %894 = vmatprep.subr.bf16.mxu1 %v5335_v13  ;;  %v5338_v16 = vld [vmem:[#allocation2 + $0x14] ss:$8 sps:$4 sm:$0xff]   ;;  %v5340_v17 = vld [vmem:[#allocation2 + $0x10] ss:$8 sps:$4 sm:$0xff]  }
  0x2e   : > { %s4832_s17 = sshll.u32 %s6767_s16, 3  ;;  %v395_v6 = vand.u32 %v4835_v4, %v5820_v3  ;;  %v398_v9 = vand.u32 %v5820_v3, %v340_v5  ;;  %895 = vmatpush1.bf16.msra.mxu1 %v5337_v14  ;;  %v5341_v18 = vld [vmem:[#allocation2 + $0x24] ss:$8 sps:$4 sm:$0xff]   ;;  %v5343_v21 = vld [vmem:[#allocation2 + $0x20] ss:$8 sps:$4 sm:$0xff]   ;;  %vm4723_vm3 = vcmask 31744  }
  0x2f   : > { %s5831_s22 = scalar_lea.vmem %s6751_s0, %s4832_s17  ;;  %896 = vmatprep.subr.bf16.mxu1 %v5338_v16  ;;  %v5344_v22 = vld [vmem:[#allocation2 + $0x34] ss:$8 sps:$4 sm:$0xff]   ;;  %v5346_v24 = vld [vmem:[#allocation2 + $0x30] ss:$8 sps:$4 sm:$0xff]   ;;  %v5347_v25 = vld [vmem:[#allocation2 + $0x44] ss:$8 sps:$4 sm:$0xff]   ;;  %s6650_s12 = scalar_lea.vmem %s6757_s6, %s4832_s17 }
  0x30   : > { %v271_v7 = vld [vmem:[%s5831_s22] sm:$0xff]  ;;  %v272_v8 = vld [vmem:[%s5831_s22 + $0x8] sm:$0xff]  ;;  %400 = vmatprep.subr.bf16.mxu0 %v398_v9  ;;  %v273_v11 = vld [vmem:[%s5831_s22 + $0x10] sm:$0xff] }
  0x31   : > { %v5837_v10 = vpack.c.bf16 %v272_v8, %v271_v7  ;;  %401 = vmatpush1.bf16.msra.mxu0 %v395_v6  ;;  %v274_v12 = vld [vmem:[%s5831_s22 + $0x18] sm:$0xff]  ;;  %v275_v19 = vld [vmem:[%s5831_s22 + $0x20] sm:$0xff]  ;;  %v276_v20 = vld [vmem:[%s5831_s22 + $0x28] sm:$0xff] }
  0x32   : > { %v5844_v15 = vpack.c.bf16 %v274_v12, %v273_v11  ;;  %897 = vmatpush1.bf16.msra.mxu1 %v5340_v17  ;;  %v5851_v23 = vpack.c.bf16 %v276_v20, %v275_v19  ;;  %v277_v26 = vld [vmem:[%s5831_s22 + $0x30] sm:$0xff]  ;;  %v278_v27 = vld [vmem:[%s5831_s22 + $0x38] sm:$0xff]  ;;  %v5349_v28 = vld [vmem:[#allocation2 + $0x40] ss:$8 sps:$4 sm:$0xff]  }
  0x33   : > { %898 = vmatprep.subr.bf16.mxu1 %v5341_v18  ;;  %v5350_v29 = vld [vmem:[#allocation2 + $0x54] ss:$8 sps:$4 sm:$0xff]   ;;  %v5858_v30 = vpack.c.bf16 %v278_v27, %v277_v26  ;;  %v5352_v31 = vld [vmem:[#allocation2 + $0x50] ss:$8 sps:$4 sm:$0xff]   ;;  %v5353_v32 = vld [vmem:[#allocation2 + $0x64] ss:$8 sps:$4 sm:$0xff]  }
  0x34   : > { %4836 = vmatmul.mubr.msk.bf16.vlgmr.msra.gmra.mrb[0].mxu0 %vm341_vm2, %v5837_v10  ;;  %v279_v33 = vld [vmem:[%s5831_s22 + $0x40] sm:$0xff]  ;;  %v280_v34 = vld [vmem:[%s5831_s22 + $0x48] sm:$0xff]  ;;  %v5356_v36 = vld [vmem:[#allocation2 + $0x74] ss:$8 sps:$4 sm:$0xff]  }
  0x35   : > { %442 = vmatprep.mubr.bf16.mxu0 %v5730_v0  ;;  %v5355_v35 = vld [vmem:[#allocation2 + $0x60] ss:$8 sps:$4 sm:$0xff]   ;;  %v5358_v37 = vld [vmem:[#allocation2 + $0x70] ss:$8 sps:$4 sm:$0xff]   ;;  %v5865_v38 = vpack.c.bf16 %v280_v34, %v279_v33  ;;  %v5359_v39 = vld [vmem:[#allocation2 + $0x84] ss:$8 sps:$4 sm:$0xff]  }
  0x36   : > { %899 = vmatpush1.bf16.msra.mxu1 %v5343_v21  ;;  %v281_v40 = vld [vmem:[%s5831_s22 + $0x50] sm:$0xff]  ;;  %v282_v41 = vld [vmem:[%s5831_s22 + $0x58] sm:$0xff]  ;;  %v5361_v42 = vld [vmem:[#allocation2 + $0x80] ss:$8 sps:$4 sm:$0xff]  }
  0x37   : > { %900 = vmatprep.subr.bf16.mxu1 %v5344_v22  ;;  %v5362_v43 = vld [vmem:[#allocation2 + $0x94] ss:$8 sps:$4 sm:$0xff]   ;;  %v5364_v44 = vld [vmem:[#allocation2 + $0x90] ss:$8 sps:$4 sm:$0xff]   ;;  %v5872_v45 = vpack.c.bf16 %v282_v41, %v281_v40  ;;  %v5365_v46 = vld [vmem:[#allocation2 + $0xa4] ss:$8 sps:$4 sm:$0xff]  }
  0x38   : > { %v283_v47 = vld [vmem:[%s5831_s22 + $0x60] sm:$0xff]  ;;  %v284_v48 = vld [vmem:[%s5831_s22 + $0x68] sm:$0xff]  ;;  %v5368_v50 = vld [vmem:[#allocation2 + $0xb4] ss:$8 sps:$4 sm:$0xff]  }
  0x39   : > { %v5367_v49 = vld [vmem:[#allocation2 + $0xa0] ss:$8 sps:$4 sm:$0xff]   ;;  %v5370_v51 = vld [vmem:[#allocation2 + $0xb0] ss:$8 sps:$4 sm:$0xff]   ;;  %v5879_v52 = vpack.c.bf16 %v284_v48, %v283_v47  ;;  %v5371_v53 = vld [vmem:[#allocation2 + $0xc4] ss:$8 sps:$4 sm:$0xff]  }
  0x3a   : > { %901 = vmatpush1.bf16.msra.mxu1 %v5346_v24  ;;  %v285_v54 = vld [vmem:[%s5831_s22 + $0x70] sm:$0xff]  ;;  %v286_v55 = vld [vmem:[%s5831_s22 + $0x78] sm:$0xff]  ;;  %v5373_v56 = vld [vmem:[#allocation2 + $0xc0] ss:$8 sps:$4 sm:$0xff]  }
  0x3b   : > { %902 = vmatprep.subr.bf16.mxu1 %v5347_v25  ;;  %v5374_v57 = vld [vmem:[#allocation2 + $0xd4] ss:$8 sps:$4 sm:$0xff]   ;;  %v5886_v58 = vpack.c.bf16 %v286_v55, %v285_v54  ;;  %v287_v59 = vld [vmem:[%s5831_s22 + $0x80] sm:$0xff]  ;;  %v288_v60 = vld [vmem:[%s5831_s22 + $0x88] sm:$0xff] }
  0x3c   : > { %4837 = vmatmul.mubr.msk.bf16.gmra.mrb[4].mxu0 %vm341_vm2, %v5844_v15  ;;  %v5893_v61 = vpack.c.bf16 %v288_v60, %v287_v59  ;;  %v289_v62 = vld [vmem:[%s5831_s22 + $0x90] sm:$0xff]  ;;  %v290_v63 = vld [vmem:[%s5831_s22 + $0x98] sm:$0xff]  ;;  %v291_v2 = vld [vmem:[%s5831_s22 + $0xa0] sm:$0xff] }
  0x3d   : > { %452 = vmatprep.mubr.bf16.mxu0 %v5730_v0  ;;  %v5900_v1 = vpack.c.bf16 %v290_v63, %v289_v62  ;;  %v292_v4 = vld [vmem:[%s5831_s22 + $0xa8] sm:$0xff]  ;;  %v293_v6 = vld [vmem:[%s5831_s22 + $0xb0] sm:$0xff]  ;;  %v294_v7 = vld [vmem:[%s5831_s22 + $0xb8] sm:$0xff] }
  0x3e   : > { %903 = vmatpush1.bf16.msra.mxu1 %v5349_v28  ;;  %v5907_v5 = vpack.c.bf16 %v292_v4, %v291_v2  ;;  %v5376_v8 = vld [vmem:[#allocation2 + $0xd0] ss:$8 sps:$4 sm:$0xff]   ;;  %v5914_v9 = vpack.c.bf16 %v294_v7, %v293_v6  ;;  %v5377_v11 = vld [vmem:[#allocation2 + $0xe4] ss:$8 sps:$4 sm:$0xff]   ;;  %v5379_v12 = vld [vmem:[#allocation2 + $0xe0] ss:$8 sps:$4 sm:$0xff]  }
  0x3f   : > { %904 = vmatprep.subr.bf16.mxu1 %v5350_v29  ;;  %v295_v13 = vld [vmem:[%s5831_s22 + $0xc0] sm:$0xff]  ;;  %v296_v14 = vld [vmem:[%s5831_s22 + $0xc8] sm:$0xff]  ;;  %v5380_v16 = vld [vmem:[#allocation2 + $0xf4] ss:$8 sps:$4 sm:$0xff]  }
  0x40   : > { %v5382_v17 = vld [vmem:[#allocation2 + $0xf0] ss:$8 sps:$4 sm:$0xff]   ;;  %v5921_v18 = vpack.c.bf16 %v296_v14, %v295_v13  ;;  %v299_v22 = vld [vmem:[%s5831_s22 + $0xe0] sm:$0xff]  ;;  %v300_v24 = vld [vmem:[%s5831_s22 + $0xe8] sm:$0xff] }
  0x41   : > { %v297_v19 = vld [vmem:[%s5831_s22 + $0xd0] sm:$0xff]  ;;  %v298_v20 = vld [vmem:[%s5831_s22 + $0xd8] sm:$0xff]  ;;  %v5935_v25 = vpack.c.bf16 %v300_v24, %v299_v22  ;;  %v5383_v29 = vld [vmem:[#allocation2 + $0x100] ss:$8 sps:$4 sm:$0xff]  }
  0x42   : > { %905 = vmatpush1.bf16.msra.mxu1 %v5352_v31  ;;  %v5928_v21 = vpack.c.bf16 %v298_v20, %v297_v19  ;;  %v301_v26 = vld [vmem:[%s5831_s22 + $0xf0] sm:$0xff]  ;;  %v302_v27 = vld [vmem:[%s5831_s22 + $0xf8] sm:$0xff]  ;;  %v5385_v31 = vld [vmem:[#allocation2 + $0x104] ss:$8 sps:$4 sm:$0xff]  }
  0x43   : > { %906 = vmatprep.subr.bf16.mxu1 %v5353_v32  ;;  %v5942_v28 = vpack.c.bf16 %v302_v27, %v301_v26  ;;  %1389 = vmatprep.subr.bf16.mxu0 %v5385_v31  ;;  %v322_v32 = vlaneseq  ;;  %v5386_v33 = vld [vmem:[#allocation2 + $0x110] ss:$8 sps:$4 sm:$0xff]   ;;  %v5388_v34 = vld [vmem:[#allocation2 + $0x114] ss:$8 sps:$4 sm:$0xff]   ;;  %v5389_v40 = vld [vmem:[#allocation2 + $0x120] ss:$8 sps:$4 sm:$0xff]  }
  0x44   : > { %4838 = vmatmul.mubr.msk.bf16.gmra.mrb[8].mxu0 %vm341_vm2, %v5851_v23  ;;  %v5391_v41 = vld [vmem:[#allocation2 + $0x124] ss:$8 sps:$4 sm:$0xff]   ;;  %v5395_v55 = vld [vmem:[#allocation2 + $0x140] ss:$8 sps:$4 sm:$0xff]   ;;  %v5400_v59 = vld [vmem:[#allocation2 + $0x154] ss:$8 sps:$4 sm:$0xff]  }
  0x45   : > { %462 = vmatprep.mubr.bf16.mxu0 %v5730_v0  ;;  %1390 = vmatpush1.bf16.msra.mxu0 %v5383_v29  ;;  %v5398_v4 = vld [vmem:[#allocation2 + $0x150] ss:$8 sps:$4 sm:$0xff]   ;;  %v5403_v7 = vld [vmem:[#allocation2 + $0x164] ss:$8 sps:$4 sm:$0xff]   ;;  %v5406_v22 = vld [vmem:[#allocation2 + $0x174] ss:$8 sps:$4 sm:$0xff]  }
  0x46   : > { %907 = vmatpush1.bf16.msra.mxu1 %v5355_v35  ;;  %v323_v35 = vshrl.u32 %v322_v32, 7  ;;  %1391 = vmatprep.subr.bf16.mxu0 %v5388_v34  ;;  %v5404_v32 = vld [vmem:[#allocation2 + $0x170] ss:$8 sps:$4 sm:$0xff]   ;;  %v5409_v34 = vld [vmem:[#allocation2 + $0x184] ss:$8 sps:$4 sm:$0xff]  }
  0x47   : > { %908 = vmatprep.subr.bf16.mxu1 %v5356_v36 }
  0x48   : > { %v5946_v36 = vsub.s32 0, %v323_v35 }
  0x49   : > { %1392 = vmatpush1.bf16.msra.mxu0 %v5386_v33 }
  0x4a   : > { %909 = vmatpush1.bf16.msra.mxu1 %v5358_v37  ;;  %v320_v37 = vld [vmem:[%s6754_s3] ss:$8 sm:$0x3]  ;;  %1393 = vmatprep.subr.bf16.mxu0 %v5391_v41 }
  0x4b   : > { %910 = vmatprep.subr.bf16.mxu1 %v5359_v39  ;;  %v5951_v39 = vsub.s32 1, %v323_v35 }
  0x4c   : > { %4839 = vmatmul.mubr.msk.bf16.gmra.mrb[12].mxu0 %vm341_vm2, %v5858_v30 }
  0x4d   : > { %472 = vmatprep.mubr.bf16.mxu0 %v5730_v0  ;;  %1394 = vmatpush1.bf16.msra.mxu0 %v5389_v40 }
  0x4e   : > { %911 = vmatpush1.bf16.msra.mxu1 %v5361_v42  ;;  %v5954_v42 = vrot.slane %v320_v37, %v5946_v36 }
  0x4f   : > { %912 = vmatprep.subr.bf16.mxu1 %v5362_v43  ;;  %v5957_v43 = vrot.slane %v320_v37, %v5951_v39 }
  0x52   : > { %913 = vmatpush1.bf16.msra.mxu1 %v5364_v44  ;;  %v5392_v44 = vld [vmem:[#allocation2 + $0x130] ss:$8 sps:$4 sm:$0xff]  }
  0x53   : > { %914 = vmatprep.subr.bf16.mxu1 %v5365_v46  ;;  %v5394_v46 = vld [vmem:[#allocation2 + $0x134] ss:$8 sps:$4 sm:$0xff]  }
  0x54   : > { %4840 = vmatmul.mubr.msk.bf16.gmra.mrb[16].mxu0 %vm341_vm2, %v5865_v38  ;;  %1395 = vmatprep.subr.bf16.mxu0 %v5394_v46 }
  0x55   : > { %482 = vmatprep.mubr.bf16.mxu0 %v5730_v0  ;;  %1396 = vmatpush1.bf16.msra.mxu0 %v5392_v44 }
  0x56   : > { %915 = vmatpush1.bf16.msra.mxu1 %v5367_v49 }
  0x57   : > { %916 = vmatprep.subr.bf16.mxu1 %v5368_v50 }
  0x5a   : > { %917 = vmatpush1.bf16.msra.mxu1 %v5370_v51 }
  0x5b   : > { %918 = vmatprep.subr.bf16.mxu1 %v5371_v53 }
  0x5c   : > { %4841 = vmatmul.mubr.msk.bf16.gmra.mrb[20].mxu0 %vm341_vm2, %v5872_v45 }
  0x5d   : > { %492 = vmatprep.mubr.bf16.mxu0 %v5730_v0 }
  0x5e   : > { %919 = vmatpush1.bf16.msra.mxu1 %v5373_v56  ;;  %v5397_v56 = vld [vmem:[#allocation2 + $0x144] ss:$8 sps:$4 sm:$0xff]  }
  0x5f   : > { %920 = vmatprep.subr.bf16.mxu1 %v5374_v57  ;;  %1397 = vmatprep.subr.bf16.mxu0 %v5397_v56 }
  0x60   : > { %1398 = vmatpush1.bf16.msra.mxu0 %v5395_v55 }
  0x61   : > { %1399 = vmatprep.subr.bf16.mxu0 %v5400_v59 }
  0x62   : > { %921 = vmatpush1.bf16.msra.mxu1 %v5376_v8 }
  0x63   : > { %922 = vmatprep.subr.bf16.mxu1 %v5377_v11 }
  0x64   : > { %4842 = vmatmul.mubr.msk.bf16.gmra.mrb[24].mxu0 %vm341_vm2, %v5879_v52 }
  0x65   : > { %502 = vmatprep.mubr.bf16.mxu0 %v5730_v0  ;;  %1400 = vmatpush1.bf16.msra.mxu0 %v5398_v4 }
  0x66   : > { %923 = vmatpush1.bf16.msra.mxu1 %v5379_v12  ;;  %1401 = vmatprep.subr.bf16.mxu0 %v5403_v7 }
  0x67   : > { %924 = vmatprep.subr.bf16.mxu1 %v5380_v16 }
  0x6a   : > { %925 = vmatpush1.bf16.msra.mxu1 %v5382_v17  ;;  %v5401_v17 = vld [vmem:[#allocation2 + $0x160] ss:$8 sps:$4 sm:$0xff]  }
  0x6b   : > { %1402 = vmatpush1.bf16.msra.mxu0 %v5401_v17 }
  0x6c   : > { %4843 = vmatmul.mubr.msk.bf16.gmra.mrb[28].mxu0 %vm341_vm2, %v5886_v58  ;;  %1403 = vmatprep.subr.bf16.mxu0 %v5406_v22  ;;  %v5416_v22 = vld [vmem:[#allocation2 + $0x1b0] ss:$8 sps:$4 sm:$0xff]  }
  0x6d   : > { %512 = vmatprep.mubr.bf16.mxu0 %v5730_v0 }
  0x6f   : > { %1404 = vmatpush1.bf16.msra.mxu0 %v5404_v32 }
  0x70   : > { %1405 = vmatprep.subr.bf16.mxu0 %v5409_v34 }
  0x74   : > { %4844 = vmatmul.mubr.msk.bf16.gmra.mrb[32].mxu0 %vm341_vm2, %v5893_v61 }
  0x75   : > { %522 = vmatprep.mubr.bf16.mxu0 %v5730_v0 }
  0x7c   : > { %4845 = vmatmul.mubr.msk.bf16.gmra.mrb[36].mxu0 %vm341_vm2, %v5900_v1 }
  0x7d   : > { %532 = vmatprep.mubr.bf16.mxu0 %v5730_v0 }
  0x84   : > { %4846 = vmatmul.mubr.msk.bf16.gmra.mrb[40].mxu0 %vm341_vm2, %v5907_v5 }
  0x85   : > { %542 = vmatprep.mubr.bf16.mxu0 %v5730_v0 }
  0x8c   : > { %4847 = vmatmul.mubr.msk.bf16.gmra.mrb[44].mxu0 %vm341_vm2, %v5914_v9 }
  0x8d   : > { %552 = vmatprep.mubr.bf16.mxu0 %v5730_v0 }
  0x94   : > { %4848 = vmatmul.mubr.msk.bf16.gmra.mrb[48].mxu0 %vm341_vm2, %v5921_v18 }
  0x95   : > { %562 = vmatprep.mubr.bf16.mxu0 %v5730_v0 }
  0x9c   : > { %4849 = vmatmul.mubr.msk.bf16.gmra.mrb[52].mxu0 %vm341_vm2, %v5928_v21 }
  0x9d   : > { %572 = vmatprep.mubr.bf16.mxu0 %v5730_v0 }
  0xa4   : > { %4850 = vmatmul.mubr.msk.bf16.gmra.mrb[56].mxu0 %vm341_vm2, %v5935_v25 }
  0xa5   : > { %582 = vmatprep.mubr.bf16.mxu0 %v5730_v0 }
  0xac   : > { %4851 = vmatmul.mubr.msk.bf16.gmra.mrb[60].mxu0 %vm341_vm2, %v5942_v28 }
 0x107   : > { %v434_v47 = vpop.f32.mrb[0].mxu0 }
 0x108   : > { %v435_v48 = vadd.f32 %v434_v47, %v5954_v42  ;;  %v436_v49 = vpop.f32.mrb[1].mxu0  ;;  %v5407_v47 = vld [vmem:[#allocation2 + $0x180] ss:$8 sps:$4 sm:$0xff]  }
 0x109   : > { %v438_v50 = vpop.f32.mrb[2].mxu0  ;;  %v437_v51 = vadd.f32 %v436_v49, %v5957_v43  ;;  %1406 = vmatpush1.bf16.msra.mxu0 %v5407_v47 }
 0x10a   : > { %v439_v53 = vadd.f32 %v438_v50, %v5954_v42  ;;  %v440_v54 = vpop.f32.mrb[3].mxu0  ;;  %v593_v60 = vmax.f32 %v435_v48, 0.0  ;;  %v5412_v50 = vld [vmem:[#allocation2 + $0x194] ss:$8 sps:$4 sm:$0xff]  }
 0x10b   : > { %v441_v57 = vadd.f32 %v440_v54, %v5957_v43  ;;  %v594_v63 = vmax.f32 %v437_v51, 0.0  ;;  %1407 = vmatprep.subr.bf16.mxu0 %v5412_v50  ;;  %v5422_v50 = vld [vmem:[#allocation2 + $0x1d0] ss:$8 sps:$4 sm:$0xff]  }
 0x10c   : > { %v595_v62 = vmax.f32 %v439_v53, 0.0 }
 0x10d   : > { %v596_v2 = vmax.f32 %v441_v57, 0.0  ;;  %v5410_v57 = vld [vmem:[#allocation2 + $0x190] ss:$8 sps:$4 sm:$0xff]  }
 0x10e   : > { %v689_v6 = vpack.c.bf16 %v595_v62, %v593_v60  ;;  %v5415_v60 = vld [vmem:[#allocation2 + $0x1a4] ss:$8 sps:$4 sm:$0xff]   ;;  %1408 = vmatpush1.bf16.msra.mxu0 %v5410_v57 }
 0x10f   : > { %v444_v8 = vpop.f32.mrb[4].mxu0  ;;  %v690_v11 = vpack.c.bf16 %v596_v2, %v594_v63  ;;  %1409 = vmatprep.subr.bf16.mxu0 %v5415_v60 }
 0x110   : > { %v445_v12 = vadd.f32 %v444_v8, %v5954_v42  ;;  %v446_v13 = vpop.f32.mrb[5].mxu0  ;;  %v5413_v8 = vld [vmem:[#allocation2 + $0x1a0] ss:$8 sps:$4 sm:$0xff]  }
 0x111   : > { %v447_v14 = vadd.f32 %v446_v13, %v5957_v43  ;;  %v448_v16 = vpop.f32.mrb[6].mxu0  ;;  %926 = vmatprep.mubr.bf16.mxu1 %v690_v11  ;;  %v5418_v13 = vld [vmem:[#allocation2 + $0x1b4] ss:$8 sps:$4 sm:$0xff]  }
 0x112   : > { %v449_v19 = vadd.f32 %v448_v16, %v5954_v42  ;;  %v450_v20 = vpop.f32.mrb[7].mxu0  ;;  %927 = vmatmul.mubr.bf16.vlgmr.msra.gmra.mrb[0].mxu1 %v689_v6  ;;  %v597_v26 = vmax.f32 %v445_v12, 0.0  ;;  %1410 = vmatpush1.bf16.msra.mxu0 %v5413_v8 }
 0x113   : > { %v451_v24 = vadd.f32 %v450_v20, %v5957_v43  ;;  %v598_v29 = vmax.f32 %v447_v14, 0.0  ;;  %1411 = vmatprep.subr.bf16.mxu0 %v5418_v13 }
 0x114   : > { %v599_v27 = vmax.f32 %v449_v19, 0.0 }
 0x115   : > { %v600_v31 = vmax.f32 %v451_v24, 0.0 }
 0x116   : > { %v691_v33 = vpack.c.bf16 %v599_v27, %v597_v26  ;;  %v5421_v26 = vld [vmem:[#allocation2 + $0x1c4] ss:$8 sps:$4 sm:$0xff]   ;;  %1412 = vmatpush1.bf16.msra.mxu0 %v5416_v22 }
 0x117   : > { %v454_v35 = vpop.f32.mrb[8].mxu0  ;;  %v692_v37 = vpack.c.bf16 %v600_v31, %v598_v29  ;;  %1413 = vmatprep.subr.bf16.mxu0 %v5421_v26 }
 0x118   : > { %v455_v40 = vadd.f32 %v454_v35, %v5954_v42  ;;  %v456_v41 = vpop.f32.mrb[9].mxu0  ;;  %v5419_v35 = vld [vmem:[#allocation2 + $0x1c0] ss:$8 sps:$4 sm:$0xff]  }
 0x119   : > { %v457_v44 = vadd.f32 %v456_v41, %v5957_v43  ;;  %v458_v46 = vpop.f32.mrb[10].mxu0  ;;  %936 = vmatprep.mubr.bf16.mxu1 %v692_v37  ;;  %v5424_v41 = vld [vmem:[#allocation2 + $0x1d4] ss:$8 sps:$4 sm:$0xff]  }
 0x11a   : > { %v459_v48 = vadd.f32 %v458_v46, %v5954_v42  ;;  %v460_v49 = vpop.f32.mrb[11].mxu0  ;;  %937 = vmatmul.mubr.bf16.gmra.mrb[4].mxu1 %v691_v33  ;;  %v601_v53 = vmax.f32 %v455_v40, 0.0  ;;  %1414 = vmatpush1.bf16.msra.mxu0 %v5419_v35 }
 0x11b   : > { %v461_v51 = vadd.f32 %v460_v49, %v5957_v43  ;;  %v602_v55 = vmax.f32 %v457_v44, 0.0  ;;  %1415 = vmatprep.subr.bf16.mxu0 %v5424_v41 }
 0x11c   : > { %v603_v54 = vmax.f32 %v459_v48, 0.0 }
 0x11d   : > { %v604_v56 = vmax.f32 %v461_v51, 0.0 }
 0x11e   : > { %v693_v59 = vpack.c.bf16 %v603_v54, %v601_v53  ;;  %v5427_v53 = vld [vmem:[#allocation2 + $0x1e4] ss:$8 sps:$4 sm:$0xff]   ;;  %1416 = vmatpush1.bf16.msra.mxu0 %v5422_v50 }
 0x11f   : > { %v464_v62 = vpop.f32.mrb[12].mxu0  ;;  %v694_v63 = vpack.c.bf16 %v604_v56, %v602_v55  ;;  %1417 = vmatprep.subr.bf16.mxu0 %v5427_v53 }
 0x120   : > { %v465_v2 = vadd.f32 %v464_v62, %v5954_v42  ;;  %v466_v4 = vpop.f32.mrb[13].mxu0  ;;  %v5425_v62 = vld [vmem:[#allocation2 + $0x1e0] ss:$8 sps:$4 sm:$0xff]  }
 0x121   : > { %v467_v6 = vadd.f32 %v466_v4, %v5957_v43  ;;  %v468_v7 = vpop.f32.mrb[14].mxu0  ;;  %946 = vmatprep.mubr.bf16.mxu1 %v694_v63 }
 0x122   : > { %v469_v11 = vadd.f32 %v468_v7, %v5954_v42  ;;  %v470_v12 = vpop.f32.mrb[15].mxu0  ;;  %947 = vmatmul.mubr.bf16.gmra.mrb[8].mxu1 %v693_v59  ;;  %v605_v16 = vmax.f32 %v465_v2, 0.0  ;;  %1418 = vmatpush1.bf16.msra.mxu0 %v5425_v62 }
 0x123   : > { %v471_v14 = vadd.f32 %v470_v12, %v5957_v43  ;;  %v606_v19 = vmax.f32 %v467_v6, 0.0 }
 0x124   : > { %v607_v17 = vmax.f32 %v469_v11, 0.0 }
 0x125   : > { %v608_v20 = vmax.f32 %v471_v14, 0.0 }
 0x126   : > { %v695_v24 = vpack.c.bf16 %v607_v17, %v605_v16 }
 0x127   : > { %v474_v27 = vpop.f32.mrb[16].mxu0  ;;  %v696_v29 = vpack.c.bf16 %v608_v20, %v606_v19 }
 0x128   : > { %v475_v31 = vadd.f32 %v474_v27, %v5954_v42  ;;  %v476_v32 = vpop.f32.mrb[17].mxu0 }
 0x129   : > { %v477_v33 = vadd.f32 %v476_v32, %v5957_v43  ;;  %v478_v34 = vpop.f32.mrb[18].mxu0  ;;  %956 = vmatprep.mubr.bf16.mxu1 %v696_v29 }
 0x12a   : > { %v479_v37 = vadd.f32 %v478_v34, %v5954_v42  ;;  %v480_v40 = vpop.f32.mrb[19].mxu0  ;;  %957 = vmatmul.mubr.bf16.gmra.mrb[12].mxu1 %v695_v24  ;;  %v609_v46 = vmax.f32 %v475_v31, 0.0 }
 0x12b   : > { %v481_v44 = vadd.f32 %v480_v40, %v5957_v43  ;;  %v610_v48 = vmax.f32 %v477_v33, 0.0 }
 0x12c   : > { %v611_v47 = vmax.f32 %v479_v37, 0.0 }
 0x12d   : > { %v612_v49 = vmax.f32 %v481_v44, 0.0 }
 0x12e   : > { %v697_v51 = vpack.c.bf16 %v611_v47, %v609_v46 }
 0x12f   : > { %v484_v54 = vpop.f32.mrb[20].mxu0  ;;  %v698_v55 = vpack.c.bf16 %v612_v49, %v610_v48 }
 0x130   : > { %v485_v56 = vadd.f32 %v484_v54, %v5954_v42  ;;  %v486_v57 = vpop.f32.mrb[21].mxu0 }
 0x131   : > { %v487_v59 = vadd.f32 %v486_v57, %v5957_v43  ;;  %v488_v60 = vpop.f32.mrb[22].mxu0  ;;  %966 = vmatprep.mubr.bf16.mxu1 %v698_v55 }
 0x132   : > { %v489_v63 = vadd.f32 %v488_v60, %v5954_v42  ;;  %v490_v2 = vpop.f32.mrb[23].mxu0  ;;  %967 = vmatmul.mubr.bf16.gmra.mrb[16].mxu1 %v697_v51  ;;  %v613_v6 = vmax.f32 %v485_v56, 0.0 }
 0x133   : > { %v491_v4 = vadd.f32 %v490_v2, %v5957_v43  ;;  %v614_v8 = vmax.f32 %v487_v59, 0.0 }
 0x134   : > { %v615_v7 = vmax.f32 %v489_v63, 0.0 }
 0x135   : > { %v616_v11 = vmax.f32 %v491_v4, 0.0 }
 0x136   : > { %v699_v12 = vpack.c.bf16 %v615_v7, %v613_v6 }
 0x137   : > { %v494_v13 = vpop.f32.mrb[24].mxu0  ;;  %v700_v14 = vpack.c.bf16 %v616_v11, %v614_v8 }
 0x138   : > { %v495_v16 = vadd.f32 %v494_v13, %v5954_v42  ;;  %v496_v17 = vpop.f32.mrb[25].mxu0 }
 0x139   : > { %v497_v19 = vadd.f32 %v496_v17, %v5957_v43  ;;  %v498_v20 = vpop.f32.mrb[26].mxu0  ;;  %976 = vmatprep.mubr.bf16.mxu1 %v700_v14 }
 0x13a   : > { %v499_v22 = vadd.f32 %v498_v20, %v5954_v42  ;;  %v500_v24 = vpop.f32.mrb[27].mxu0  ;;  %977 = vmatmul.mubr.bf16.gmra.mrb[20].mxu1 %v699_v12  ;;  %v617_v27 = vmax.f32 %v495_v16, 0.0 }
 0x13b   : > { %v501_v26 = vadd.f32 %v500_v24, %v5957_v43  ;;  %v618_v31 = vmax.f32 %v497_v19, 0.0 }
 0x13c   : > { %v619_v29 = vmax.f32 %v499_v22, 0.0 }
 0x13d   : > { %v620_v32 = vmax.f32 %v501_v26, 0.0 }
 0x13e   : > { %v701_v33 = vpack.c.bf16 %v619_v29, %v617_v27 }
 0x13f   : > { %v504_v34 = vpop.f32.mrb[28].mxu0  ;;  %v702_v35 = vpack.c.bf16 %v620_v32, %v618_v31 }
 0x140   : > { %v505_v37 = vadd.f32 %v504_v34, %v5954_v42  ;;  %v506_v40 = vpop.f32.mrb[29].mxu0 }
 0x141   : > { %v507_v41 = vadd.f32 %v506_v40, %v5957_v43  ;;  %v508_v44 = vpop.f32.mrb[30].mxu0  ;;  %986 = vmatprep.mubr.bf16.mxu1 %v702_v35 }
 0x142   : > { %v509_v46 = vadd.f32 %v508_v44, %v5954_v42  ;;  %v510_v47 = vpop.f32.mrb[31].mxu0  ;;  %987 = vmatmul.mubr.bf16.gmra.mrb[24].mxu1 %v701_v33  ;;  %v621_v49 = vmax.f32 %v505_v37, 0.0 }
 0x143   : > { %v511_v48 = vadd.f32 %v510_v47, %v5957_v43  ;;  %v622_v51 = vmax.f32 %v507_v41, 0.0 }
 0x144   : > { %v623_v50 = vmax.f32 %v509_v46, 0.0 }
 0x145   : > { %v624_v53 = vmax.f32 %v511_v48, 0.0 }
 0x146   : > { %v703_v54 = vpack.c.bf16 %v623_v50, %v621_v49 }
 0x147   : > { %v514_v55 = vpop.f32.mrb[32].mxu0  ;;  %v704_v56 = vpack.c.bf16 %v624_v53, %v622_v51 }
 0x148   : > { %v515_v57 = vadd.f32 %v514_v55, %v5954_v42  ;;  %v516_v59 = vpop.f32.mrb[33].mxu0 }
 0x149   : > { %v517_v60 = vadd.f32 %v516_v59, %v5957_v43  ;;  %v518_v62 = vpop.f32.mrb[34].mxu0  ;;  %996 = vmatprep.mubr.bf16.mxu1 %v704_v56 }
 0x14a   : > { %v519_v63 = vadd.f32 %v518_v62, %v5954_v42  ;;  %v520_v2 = vpop.f32.mrb[35].mxu0  ;;  %997 = vmatmul.mubr.bf16.gmra.mrb[28].mxu1 %v703_v54  ;;  %v625_v6 = vmax.f32 %v515_v57, 0.0 }
 0x14b   : > { %v521_v4 = vadd.f32 %v520_v2, %v5957_v43  ;;  %v626_v8 = vmax.f32 %v517_v60, 0.0 }
 0x14c   : > { %v627_v7 = vmax.f32 %v519_v63, 0.0 }
 0x14d   : > { %v628_v11 = vmax.f32 %v521_v4, 0.0 }
 0x14e   : > { %v705_v12 = vpack.c.bf16 %v627_v7, %v625_v6 }
 0x14f   : > { %v524_v13 = vpop.f32.mrb[36].mxu0  ;;  %v706_v14 = vpack.c.bf16 %v628_v11, %v626_v8 }
 0x150   : > { %v525_v16 = vadd.f32 %v524_v13, %v5954_v42  ;;  %v526_v17 = vpop.f32.mrb[37].mxu0 }
 0x151   : > { %v527_v19 = vadd.f32 %v526_v17, %v5957_v43  ;;  %v528_v20 = vpop.f32.mrb[38].mxu0  ;;  %1006 = vmatprep.mubr.bf16.mxu1 %v706_v14 }
 0x152   : > { %v529_v22 = vadd.f32 %v528_v20, %v5954_v42  ;;  %v530_v24 = vpop.f32.mrb[39].mxu0  ;;  %1007 = vmatmul.mubr.bf16.gmra.mrb[32].mxu1 %v705_v12  ;;  %v629_v27 = vmax.f32 %v525_v16, 0.0 }
 0x153   : > { %v531_v26 = vadd.f32 %v530_v24, %v5957_v43  ;;  %v630_v31 = vmax.f32 %v527_v19, 0.0 }
 0x154   : > { %v631_v29 = vmax.f32 %v529_v22, 0.0 }
 0x155   : > { %v632_v32 = vmax.f32 %v531_v26, 0.0  ;;  %v5430_v26 = vld [vmem:[#allocation2 + $0x1f4] ss:$8 sps:$4 sm:$0xff]  }
 0x156   : > { %v707_v33 = vpack.c.bf16 %v631_v29, %v629_v27  ;;  %v5428_v29 = vld [vmem:[#allocation2 + $0x1f0] ss:$8 sps:$4 sm:$0xff]   ;;  %1419 = vmatprep.subr.bf16.mxu0 %v5430_v26 }
 0x157   : > { %v534_v34 = vpop.f32.mrb[40].mxu0  ;;  %v708_v35 = vpack.c.bf16 %v632_v32, %v630_v31  ;;  %1420 = vmatpush1.bf16.msra.mxu0 %v5428_v29 }
 0x158   : > { %v535_v37 = vadd.f32 %v534_v34, %v5954_v42  ;;  %v536_v40 = vpop.f32.mrb[41].mxu0 }
 0x159   : > { %v537_v41 = vadd.f32 %v536_v40, %v5957_v43  ;;  %v538_v44 = vpop.f32.mrb[42].mxu0  ;;  %1016 = vmatprep.mubr.bf16.mxu1 %v708_v35 }
 0x15a   : > { %v539_v46 = vadd.f32 %v538_v44, %v5954_v42  ;;  %v540_v47 = vpop.f32.mrb[43].mxu0  ;;  %1017 = vmatmul.mubr.bf16.gmra.mrb[36].mxu1 %v707_v33  ;;  %v633_v49 = vmax.f32 %v535_v37, 0.0 }
 0x15b   : > { %v541_v48 = vadd.f32 %v540_v47, %v5957_v43  ;;  %v634_v51 = vmax.f32 %v537_v41, 0.0 }
 0x15c   : > { %v635_v50 = vmax.f32 %v539_v46, 0.0 }
 0x15d   : > { %v636_v53 = vmax.f32 %v541_v48, 0.0 }
 0x15e   : > { %v709_v54 = vpack.c.bf16 %v635_v50, %v633_v49 }
 0x15f   : > { %v544_v55 = vpop.f32.mrb[44].mxu0  ;;  %v710_v56 = vpack.c.bf16 %v636_v53, %v634_v51 }
 0x160   : > { %v545_v57 = vadd.f32 %v544_v55, %v5954_v42  ;;  %v546_v59 = vpop.f32.mrb[45].mxu0 }
 0x161   : > { %v547_v60 = vadd.f32 %v546_v59, %v5957_v43  ;;  %v548_v62 = vpop.f32.mrb[46].mxu0  ;;  %1026 = vmatprep.mubr.bf16.mxu1 %v710_v56 }
 0x162   : > { %v549_v63 = vadd.f32 %v548_v62, %v5954_v42  ;;  %v550_v2 = vpop.f32.mrb[47].mxu0  ;;  %1027 = vmatmul.mubr.bf16.gmra.mrb[40].mxu1 %v709_v54  ;;  %v637_v6 = vmax.f32 %v545_v57, 0.0 }
 0x163   : > { %v551_v4 = vadd.f32 %v550_v2, %v5957_v43  ;;  %v638_v8 = vmax.f32 %v547_v60, 0.0 }
 0x164   : > { %v639_v7 = vmax.f32 %v549_v63, 0.0 }
 0x165   : > { %v640_v11 = vmax.f32 %v551_v4, 0.0 }
 0x166   : > { %v711_v12 = vpack.c.bf16 %v639_v7, %v637_v6 }
 0x167   : > { %v554_v13 = vpop.f32.mrb[48].mxu0  ;;  %v712_v14 = vpack.c.bf16 %v640_v11, %v638_v8 }
 0x168   : > { %v555_v16 = vadd.f32 %v554_v13, %v5954_v42  ;;  %v556_v17 = vpop.f32.mrb[49].mxu0 }
 0x169   : > { %v557_v19 = vadd.f32 %v556_v17, %v5957_v43  ;;  %v558_v20 = vpop.f32.mrb[50].mxu0  ;;  %1036 = vmatprep.mubr.bf16.mxu1 %v712_v14 }
 0x16a   : > { %v559_v22 = vadd.f32 %v558_v20, %v5954_v42  ;;  %v560_v24 = vpop.f32.mrb[51].mxu0  ;;  %1037 = vmatmul.mubr.bf16.gmra.mrb[44].mxu1 %v711_v12  ;;  %v641_v31 = vmax.f32 %v555_v16, 0.0 }
 0x16b   : > { %v561_v27 = vadd.f32 %v560_v24, %v5957_v43  ;;  %v642_v33 = vmax.f32 %v557_v19, 0.0 }
 0x16c   : > { %v643_v32 = vmax.f32 %v559_v22, 0.0 }
 0x16d   : > { %v644_v34 = vmax.f32 %v561_v27, 0.0 }
 0x16e   : > { %v713_v35 = vpack.c.bf16 %v643_v32, %v641_v31 }
 0x16f   : > { %v564_v37 = vpop.f32.mrb[52].mxu0  ;;  %v714_v40 = vpack.c.bf16 %v644_v34, %v642_v33 }
 0x170   : > { %v565_v41 = vadd.f32 %v564_v37, %v5954_v42  ;;  %v566_v44 = vpop.f32.mrb[53].mxu0 }
 0x171   : > { %v567_v46 = vadd.f32 %v566_v44, %v5957_v43  ;;  %v568_v47 = vpop.f32.mrb[54].mxu0  ;;  %1046 = vmatprep.mubr.bf16.mxu1 %v714_v40  ;;  %v5431_v40 = vld [vmem:[#allocation2 + $0x200] ss:$8 sps:$4 sm:$0xff]   ;;  %v5434_v44 = vld [vmem:[#allocation2 + $0x210] ss:$8 sps:$4 sm:$0xff]  }
 0x172   : > { %v569_v48 = vadd.f32 %v568_v47, %v5954_v42  ;;  %v570_v49 = vpop.f32.mrb[55].mxu0  ;;  %1047 = vmatmul.mubr.bf16.gmra.mrb[48].mxu1 %v713_v35  ;;  %v645_v51 = vmax.f32 %v565_v41, 0.0  ;;  %v5433_v41 = vld [vmem:[#allocation2 + $0x204] ss:$8 sps:$4 sm:$0xff]  }
 0x173   : > { %v571_v50 = vadd.f32 %v570_v49, %v5957_v43  ;;  %v646_v54 = vmax.f32 %v567_v46, 0.0  ;;  %1884 = vmatprep.subr.bf16.mxu1 %v5433_v41  ;;  %v5436_v46 = vld [vmem:[#allocation2 + $0x214] ss:$8 sps:$4 sm:$0xff]   ;;  %v5439_v47 = vld [vmem:[#allocation2 + $0x224] ss:$8 sps:$4 sm:$0xff]  }
 0x174   : > { %v647_v53 = vmax.f32 %v569_v48, 0.0  ;;  %1885 = vmatpush1.bf16.msra.mxu1 %v5431_v40  ;;  %v5452_v41 = vld [vmem:[#allocation2 + $0x270] ss:$8 sps:$4 sm:$0xff]  }
 0x175   : > { %v648_v55 = vmax.f32 %v571_v50, 0.0  ;;  %1886 = vmatprep.subr.bf16.mxu1 %v5436_v46 }
 0x176   : > { %v715_v56 = vpack.c.bf16 %v647_v53, %v645_v51  ;;  %v5440_v51 = vld [vmem:[#allocation2 + $0x230] ss:$8 sps:$4 sm:$0xff]   ;;  %v5442_v53 = vld [vmem:[#allocation2 + $0x234] ss:$8 sps:$4 sm:$0xff]  }
 0x177   : > { %v574_v57 = vpop.f32.mrb[56].mxu0  ;;  %v716_v59 = vpack.c.bf16 %v648_v55, %v646_v54 }
 0x178   : > { %v575_v60 = vadd.f32 %v574_v57, %v5954_v42  ;;  %v576_v62 = vpop.f32.mrb[57].mxu0  ;;  %1887 = vmatpush1.bf16.msra.mxu1 %v5434_v44 }
 0x179   : > { %v577_v63 = vadd.f32 %v576_v62, %v5957_v43  ;;  %v578_v2 = vpop.f32.mrb[58].mxu0  ;;  %1056 = vmatprep.mubr.bf16.mxu1 %v716_v59  ;;  %1888 = vmatprep.subr.bf16.mxu1 %v5439_v47  ;;  %v5443_v62 = vld [vmem:[#allocation2 + $0x240] ss:$8 sps:$4 sm:$0xff]  }
 0x17a   : > { %v579_v4 = vadd.f32 %v578_v2, %v5954_v42  ;;  %v580_v6 = vpop.f32.mrb[59].mxu0  ;;  %1057 = vmatmul.mubr.bf16.gmra.mrb[52].mxu1 %v715_v56  ;;  %v649_v8 = vmax.f32 %v575_v60, 0.0 }
 0x17b   : > { %v581_v7 = vadd.f32 %v580_v6, %v5957_v43  ;;  %v650_v12 = vmax.f32 %v577_v63, 0.0  ;;  %v5445_v63 = vld [vmem:[#allocation2 + $0x244] ss:$8 sps:$4 sm:$0xff]  }
 0x17c   : > { %v651_v11 = vmax.f32 %v579_v4, 0.0  ;;  %v5448_v4 = vld [vmem:[#allocation2 + $0x254] ss:$8 sps:$4 sm:$0xff]  }
 0x17d   : > { %v652_v13 = vmax.f32 %v581_v7, 0.0 }
 0x17e   : > { %v717_v14 = vpack.c.bf16 %v651_v11, %v649_v8 }
 0x17f   : > { %v584_v16 = vpop.f32.mrb[60].mxu0  ;;  %v718_v17 = vpack.c.bf16 %v652_v13, %v650_v12  ;;  %v5446_v13 = vld [vmem:[#allocation2 + $0x250] ss:$8 sps:$4 sm:$0xff]  }
 0x180   : > { %v585_v19 = vadd.f32 %v584_v16, %v5954_v42  ;;  %v586_v20 = vpop.f32.mrb[61].mxu0 }
 0x181   : > { %v587_v22 = vadd.f32 %v586_v20, %v5957_v43  ;;  %v588_v24 = vpop.f32.mrb[62].mxu0  ;;  %1066 = vmatprep.mubr.bf16.mxu1 %v718_v17  ;;  %v5451_v17 = vld [vmem:[#allocation2 + $0x264] ss:$8 sps:$4 sm:$0xff]  }
 0x182   : > { %v589_v26 = vadd.f32 %v588_v24, %v5954_v42  ;;  %v590_v27 = vpop.f32.mrb[63].mxu0  ;;  %1067 = vmatmul.mubr.bf16.gmra.mrb[56].mxu1 %v717_v14  ;;  %v653_v31 = vmax.f32 %v585_v19, 0.0  ;;  %v4852_v42 = vld [vmem:[%s6754_s3 + $0x1] ss:$8 sm:$0x3] }
 0x183   : > { %v591_v29 = vadd.f32 %v590_v27, %v5957_v43  ;;  %v654_v33 = vmax.f32 %v587_v22, 0.0  ;;  %v5437_v43 = vld [vmem:[#allocation2 + $0x220] ss:$8 sps:$4 sm:$0xff]   ;;  %v6027_v48 = vrot.slane %v4852_v42, %v5946_v36  ;;  %v6030_v49 = vrot.slane %v4852_v42, %v5951_v39  ;;  %v5457_v42 = vld [vmem:[#allocation2 + $0x284] ss:$8 sps:$4 sm:$0xff]  }
 0x184   : > { %v655_v32 = vmax.f32 %v589_v26, 0.0  ;;  %1889 = vmatpush1.bf16.msra.mxu1 %v5437_v43 }
 0x185   : > { %v656_v34 = vmax.f32 %v591_v29, 0.0  ;;  %1890 = vmatprep.subr.bf16.mxu1 %v5442_v53  ;;  %v5449_v29 = vld [vmem:[#allocation2 + $0x260] ss:$8 sps:$4 sm:$0xff]  }
 0x186   : > { %v719_v35 = vpack.c.bf16 %v655_v32, %v653_v31  ;;  %v5454_v32 = vld [vmem:[#allocation2 + $0x274] ss:$8 sps:$4 sm:$0xff]  }
 0x187   : > { %v720_v37 = vpack.c.bf16 %v656_v34, %v654_v33 }
 0x188   : > { %1891 = vmatpush1.bf16.msra.mxu1 %v5440_v51 }
 0x189   : > { %1076 = vmatprep.mubr.bf16.mxu1 %v720_v37  ;;  %1892 = vmatprep.subr.bf16.mxu1 %v5445_v63 }
 0x18a   : > { %1077 = vmatmul.mubr.bf16.gmra.mrb[60].mxu1 %v719_v35 }
 0x18c   : > { %1893 = vmatpush1.bf16.msra.mxu1 %v5443_v62 }
 0x18d   : > { %1894 = vmatprep.subr.bf16.mxu1 %v5448_v4  ;;  %v5458_v4 = vld [vmem:[#allocation2 + $0x290] ss:$8 sps:$4 sm:$0xff]  }
 0x190   : > { %1895 = vmatpush1.bf16.msra.mxu1 %v5446_v13 }
 0x191   : > { %1896 = vmatprep.subr.bf16.mxu1 %v5451_v17 }
 0x194   : > { %1897 = vmatpush1.bf16.msra.mxu1 %v5449_v29 }
 0x195   : > { %1898 = vmatprep.subr.bf16.mxu1 %v5454_v32  ;;  %v5464_v32 = vld [vmem:[#allocation2 + $0x2b0] ss:$8 sps:$4 sm:$0xff]  }
 0x198   : > { %1899 = vmatpush1.bf16.msra.mxu1 %v5452_v41 }
 0x199   : > { %1900 = vmatprep.subr.bf16.mxu1 %v5457_v42 }
 0x1e5   : > { %v928_v50 = vpop.f32.mrb[0].mxu1 }
 0x1e6   : > { %v929_v54 = vadd.f32 %v928_v50, %v6027_v48  ;;  %v930_v55 = vpop.f32.mrb[1].mxu1 }
 0x1e7   : > { %v931_v56 = vadd.f32 %v930_v55, %v6030_v49  ;;  %v932_v57 = vpop.f32.mrb[2].mxu1  ;;  %v5455_v55 = vld [vmem:[#allocation2 + $0x280] ss:$8 sps:$4 sm:$0xff]  }
 0x1e8   : > { %v933_v59 = vadd.f32 %v932_v57, %v6027_v48  ;;  %v934_v60 = vpop.f32.mrb[3].mxu1  ;;  %v1087_v6 = vmax.f32 %v929_v54, 0.0  ;;  %v5460_v57 = vld [vmem:[#allocation2 + $0x294] ss:$8 sps:$4 sm:$0xff]   ;;  %1901 = vmatpush1.bf16.msra.mxu1 %v5455_v55 }
 0x1e9   : > { %v935_v2 = vadd.f32 %v934_v60, %v6030_v49  ;;  %v1088_v8 = vmax.f32 %v931_v56, 0.0  ;;  %1902 = vmatprep.subr.bf16.mxu1 %v5460_v57  ;;  %v5470_v57 = vld [vmem:[#allocation2 + $0x2d0] ss:$8 sps:$4 sm:$0xff]  }
 0x1ea   : > { %v1089_v7 = vmax.f32 %v933_v59, 0.0 }
 0x1eb   : > { %v1090_v11 = vmax.f32 %v935_v2, 0.0 }
 0x1ec   : > { %v1184_v12 = vpack.c.bf16 %v1089_v7, %v1087_v6  ;;  %1903 = vmatpush1.bf16.msra.mxu1 %v5458_v4 }
 0x1ed   : > { %v1185_v14 = vpack.c.bf16 %v1090_v11, %v1088_v8  ;;  %v938_v16 = vpop.f32.mrb[4].mxu1  ;;  %v5463_v8 = vld [vmem:[#allocation2 + $0x2a4] ss:$8 sps:$4 sm:$0xff]  }
 0x1ee   : > { %v939_v19 = vadd.f32 %v938_v16, %v6027_v48  ;;  %v940_v20 = vpop.f32.mrb[5].mxu1  ;;  %1904 = vmatprep.subr.bf16.mxu1 %v5463_v8 }
 0x1ef   : > { %v941_v22 = vadd.f32 %v940_v20, %v6030_v49  ;;  %v942_v24 = vpop.f32.mrb[6].mxu1  ;;  %1421 = vmatprep.mubr.bf16.mxu0 %v1185_v14 }
 0x1f0   : > { %v943_v26 = vadd.f32 %v942_v24, %v6027_v48  ;;  %v944_v27 = vpop.f32.mrb[7].mxu1  ;;  %1422 = vmatmul.mubr.bf16.vlgmr.msra.gmra.mrb[64].mxu0 %v1184_v12  ;;  %v1091_v33 = vmax.f32 %v939_v19, 0.0  ;;  %v5461_v19 = vld [vmem:[#allocation2 + $0x2a0] ss:$8 sps:$4 sm:$0xff]  }
 0x1f1   : > { %v945_v31 = vadd.f32 %v944_v27, %v6030_v49  ;;  %v1092_v35 = vmax.f32 %v941_v22, 0.0  ;;  %v5466_v22 = vld [vmem:[#allocation2 + $0x2b4] ss:$8 sps:$4 sm:$0xff]   ;;  %1905 = vmatpush1.bf16.msra.mxu1 %v5461_v19 }
 0x1f2   : > { %v1093_v34 = vmax.f32 %v943_v26, 0.0  ;;  %1906 = vmatprep.subr.bf16.mxu1 %v5466_v22 }
 0x1f3   : > { %v1094_v37 = vmax.f32 %v945_v31, 0.0 }
 0x1f4   : > { %v1186_v40 = vpack.c.bf16 %v1093_v34, %v1091_v33 }
 0x1f5   : > { %v1187_v44 = vpack.c.bf16 %v1094_v37, %v1092_v35  ;;  %v948_v46 = vpop.f32.mrb[8].mxu1  ;;  %v5469_v35 = vld [vmem:[#allocation2 + $0x2c4] ss:$8 sps:$4 sm:$0xff]   ;;  %1907 = vmatpush1.bf16.msra.mxu1 %v5464_v32 }
 0x1f6   : > { %v949_v43 = vadd.f32 %v948_v46, %v6027_v48  ;;  %v950_v47 = vpop.f32.mrb[9].mxu1  ;;  %1908 = vmatprep.subr.bf16.mxu1 %v5469_v35 }
 0x1f7   : > { %v951_v50 = vadd.f32 %v950_v47, %v6030_v49  ;;  %v952_v51 = vpop.f32.mrb[10].mxu1  ;;  %1431 = vmatprep.mubr.bf16.mxu0 %v1187_v44 }
 0x1f8   : > { %v953_v53 = vadd.f32 %v952_v51, %v6027_v48  ;;  %v954_v54 = vpop.f32.mrb[11].mxu1  ;;  %1432 = vmatmul.mubr.bf16.gmra.mrb[68].mxu0 %v1186_v40  ;;  %v1095_v59 = vmax.f32 %v949_v43, 0.0  ;;  %v5467_v43 = vld [vmem:[#allocation2 + $0x2c0] ss:$8 sps:$4 sm:$0xff]  }
 0x1f9   : > { %v955_v56 = vadd.f32 %v954_v54, %v6030_v49  ;;  %v1096_v62 = vmax.f32 %v951_v50, 0.0  ;;  %v5472_v50 = vld [vmem:[#allocation2 + $0x2d4] ss:$8 sps:$4 sm:$0xff]   ;;  %1909 = vmatpush1.bf16.msra.mxu1 %v5467_v43 }
 0x1fa   : > { %v1097_v60 = vmax.f32 %v953_v53, 0.0  ;;  %1910 = vmatprep.subr.bf16.mxu1 %v5472_v50 }
 0x1fb   : > { %v1098_v63 = vmax.f32 %v955_v56, 0.0 }
 0x1fc   : > { %v1188_v2 = vpack.c.bf16 %v1097_v60, %v1095_v59 }
 0x1fd   : > { %v1189_v6 = vpack.c.bf16 %v1098_v63, %v1096_v62  ;;  %v958_v7 = vpop.f32.mrb[12].mxu1  ;;  %v5475_v62 = vld [vmem:[#allocation2 + $0x2e4] ss:$8 sps:$4 sm:$0xff]   ;;  %1911 = vmatpush1.bf16.msra.mxu1 %v5470_v57 }
 0x1fe   : > { %v959_v11 = vadd.f32 %v958_v7, %v6027_v48  ;;  %v960_v12 = vpop.f32.mrb[13].mxu1  ;;  %1912 = vmatprep.subr.bf16.mxu1 %v5475_v62 }
 0x1ff   : > { %v961_v13 = vadd.f32 %v960_v12, %v6030_v49  ;;  %v962_v14 = vpop.f32.mrb[14].mxu1  ;;  %1441 = vmatprep.mubr.bf16.mxu0 %v1189_v6 }
 0x200   : > { %v963_v16 = vadd.f32 %v962_v14, %v6027_v48  ;;  %v964_v17 = vpop.f32.mrb[15].mxu1  ;;  %1442 = vmatmul.mubr.bf16.gmra.mrb[72].mxu0 %v1188_v2  ;;  %v1099_v24 = vmax.f32 %v959_v11, 0.0  ;;  %v5473_v11 = vld [vmem:[#allocation2 + $0x2e0] ss:$8 sps:$4 sm:$0xff]  }
 0x201   : > { %v965_v20 = vadd.f32 %v964_v17, %v6030_v49  ;;  %v1100_v27 = vmax.f32 %v961_v13, 0.0  ;;  %1913 = vmatpush1.bf16.msra.mxu1 %v5473_v11 }
 0x202   : > { %v1101_v26 = vmax.f32 %v963_v16, 0.0 }
 0x203   : > { %v1102_v29 = vmax.f32 %v965_v20, 0.0 }
 0x204   : > { %v1190_v31 = vpack.c.bf16 %v1101_v26, %v1099_v24 }
 0x205   : > { %v1191_v33 = vpack.c.bf16 %v1102_v29, %v1100_v27  ;;  %v968_v34 = vpop.f32.mrb[16].mxu1 }
 0x206   : > { %v969_v37 = vadd.f32 %v968_v34, %v6027_v48  ;;  %v970_v40 = vpop.f32.mrb[17].mxu1 }
 0x207   : > { %v971_v41 = vadd.f32 %v970_v40, %v6030_v49  ;;  %v972_v44 = vpop.f32.mrb[18].mxu1  ;;  %1451 = vmatprep.mubr.bf16.mxu0 %v1191_v33 }
 0x208   : > { %v973_v46 = vadd.f32 %v972_v44, %v6027_v48  ;;  %v974_v42 = vpop.f32.mrb[19].mxu1  ;;  %1452 = vmatmul.mubr.bf16.gmra.mrb[76].mxu0 %v1190_v31  ;;  %v1103_v51 = vmax.f32 %v969_v37, 0.0 }
 0x209   : > { %v975_v47 = vadd.f32 %v974_v42, %v6030_v49  ;;  %v1104_v54 = vmax.f32 %v971_v41, 0.0 }
 0x20a   : > { %v1105_v53 = vmax.f32 %v973_v46, 0.0 }
 0x20b   : > { %v1106_v55 = vmax.f32 %v975_v47, 0.0 }
 0x20c   : > { %v1192_v56 = vpack.c.bf16 %v1105_v53, %v1103_v51 }
 0x20d   : > { %v1193_v59 = vpack.c.bf16 %v1106_v55, %v1104_v54  ;;  %v978_v60 = vpop.f32.mrb[20].mxu1 }
 0x20e   : > { %v979_v63 = vadd.f32 %v978_v60, %v6027_v48  ;;  %v980_v2 = vpop.f32.mrb[21].mxu1 }
 0x20f   : > { %v981_v4 = vadd.f32 %v980_v2, %v6030_v49  ;;  %v982_v6 = vpop.f32.mrb[22].mxu1  ;;  %1461 = vmatprep.mubr.bf16.mxu0 %v1193_v59 }
 0x210   : > { %v983_v7 = vadd.f32 %v982_v6, %v6027_v48  ;;  %v984_v8 = vpop.f32.mrb[23].mxu1  ;;  %1462 = vmatmul.mubr.bf16.gmra.mrb[80].mxu0 %v1192_v56  ;;  %v1107_v13 = vmax.f32 %v979_v63, 0.0 }
 0x211   : > { %v985_v12 = vadd.f32 %v984_v8, %v6030_v49  ;;  %v1108_v16 = vmax.f32 %v981_v4, 0.0 }
 0x212   : > { %v1109_v14 = vmax.f32 %v983_v7, 0.0 }
 0x213   : > { %v1110_v17 = vmax.f32 %v985_v12, 0.0 }
 0x214   : > { %v1194_v19 = vpack.c.bf16 %v1109_v14, %v1107_v13 }
 0x215   : > { %v1195_v20 = vpack.c.bf16 %v1110_v17, %v1108_v16  ;;  %v988_v22 = vpop.f32.mrb[24].mxu1 }
 0x216   : > { %v989_v24 = vadd.f32 %v988_v22, %v6027_v48  ;;  %v990_v26 = vpop.f32.mrb[25].mxu1 }
 0x217   : > { %v991_v27 = vadd.f32 %v990_v26, %v6030_v49  ;;  %v992_v29 = vpop.f32.mrb[26].mxu1  ;;  %1471 = vmatprep.mubr.bf16.mxu0 %v1195_v20 }
 0x218   : > { %v993_v31 = vadd.f32 %v992_v29, %v6027_v48  ;;  %v994_v32 = vpop.f32.mrb[27].mxu1  ;;  %1472 = vmatmul.mubr.bf16.gmra.mrb[84].mxu0 %v1194_v19  ;;  %v1111_v34 = vmax.f32 %v989_v24, 0.0 }
 0x219   : > { %v995_v33 = vadd.f32 %v994_v32, %v6030_v49  ;;  %v1112_v37 = vmax.f32 %v991_v27, 0.0 }
 0x21a   : > { %v1113_v35 = vmax.f32 %v993_v31, 0.0 }
 0x21b   : > { %v1114_v40 = vmax.f32 %v995_v33, 0.0 }
 0x21c   : > { %v1196_v41 = vpack.c.bf16 %v1113_v35, %v1111_v34 }
 0x21d   : > { %v1197_v44 = vpack.c.bf16 %v1114_v40, %v1112_v37  ;;  %v998_v46 = vpop.f32.mrb[28].mxu1 }
 0x21e   : > { %v999_v42 = vadd.f32 %v998_v46, %v6027_v48  ;;  %v1000_v43 = vpop.f32.mrb[29].mxu1 }
 0x21f   : > { %v1001_v47 = vadd.f32 %v1000_v43, %v6030_v49  ;;  %v1002_v50 = vpop.f32.mrb[30].mxu1  ;;  %1481 = vmatprep.mubr.bf16.mxu0 %v1197_v44 }
 0x220   : > { %v1003_v51 = vadd.f32 %v1002_v50, %v6027_v48  ;;  %v1004_v53 = vpop.f32.mrb[31].mxu1  ;;  %1482 = vmatmul.mubr.bf16.gmra.mrb[88].mxu0 %v1196_v41  ;;  %v1115_v55 = vmax.f32 %v999_v42, 0.0 }
 0x221   : > { %v1005_v54 = vadd.f32 %v1004_v53, %v6030_v49  ;;  %v1116_v57 = vmax.f32 %v1001_v47, 0.0 }
 0x222   : > { %v1117_v56 = vmax.f32 %v1003_v51, 0.0 }
 0x223   : > { %v1118_v59 = vmax.f32 %v1005_v54, 0.0 }
 0x224   : > { %v1198_v60 = vpack.c.bf16 %v1117_v56, %v1115_v55 }
 0x225   : > { %v1199_v62 = vpack.c.bf16 %v1118_v59, %v1116_v57  ;;  %v1008_v63 = vpop.f32.mrb[32].mxu1 }
 0x226   : > { %v1009_v2 = vadd.f32 %v1008_v63, %v6027_v48  ;;  %v1010_v4 = vpop.f32.mrb[33].mxu1 }
 0x227   : > { %v1011_v6 = vadd.f32 %v1010_v4, %v6030_v49  ;;  %v1012_v7 = vpop.f32.mrb[34].mxu1  ;;  %1491 = vmatprep.mubr.bf16.mxu0 %v1199_v62 }
 0x228   : > { %v1013_v8 = vadd.f32 %v1012_v7, %v6027_v48  ;;  %v1014_v11 = vpop.f32.mrb[35].mxu1  ;;  %1492 = vmatmul.mubr.bf16.gmra.mrb[92].mxu0 %v1198_v60  ;;  %v1119_v13 = vmax.f32 %v1009_v2, 0.0 }
 0x229   : > { %v1015_v12 = vadd.f32 %v1014_v11, %v6030_v49  ;;  %v1120_v16 = vmax.f32 %v1011_v6, 0.0 }
 0x22a   : > { %v1121_v14 = vmax.f32 %v1013_v8, 0.0 }
 0x22b   : > { %v1122_v17 = vmax.f32 %v1015_v12, 0.0 }
 0x22c   : > { %v1200_v19 = vpack.c.bf16 %v1121_v14, %v1119_v13 }
 0x22d   : > { %v1201_v20 = vpack.c.bf16 %v1122_v17, %v1120_v16  ;;  %v1018_v22 = vpop.f32.mrb[36].mxu1 }
 0x22e   : > { %v1019_v24 = vadd.f32 %v1018_v22, %v6027_v48  ;;  %v1020_v26 = vpop.f32.mrb[37].mxu1 }
 0x22f   : > { %v1021_v27 = vadd.f32 %v1020_v26, %v6030_v49  ;;  %v1022_v29 = vpop.f32.mrb[38].mxu1  ;;  %1501 = vmatprep.mubr.bf16.mxu0 %v1201_v20 }
 0x230   : > { %v1023_v31 = vadd.f32 %v1022_v29, %v6027_v48  ;;  %v1024_v32 = vpop.f32.mrb[39].mxu1  ;;  %1502 = vmatmul.mubr.bf16.gmra.mrb[96].mxu0 %v1200_v19  ;;  %v1123_v34 = vmax.f32 %v1019_v24, 0.0 }
 0x231   : > { %v1025_v33 = vadd.f32 %v1024_v32, %v6030_v49  ;;  %v1124_v37 = vmax.f32 %v1021_v27, 0.0 }
 0x232   : > { %v1125_v35 = vmax.f32 %v1023_v31, 0.0 }
 0x233   : > { %v1126_v40 = vmax.f32 %v1025_v33, 0.0  ;;  %v5478_v33 = vld [vmem:[#allocation2 + $0x2f4] ss:$8 sps:$4 sm:$0xff]  }
 0x234   : > { %v1202_v41 = vpack.c.bf16 %v1125_v35, %v1123_v34  ;;  %v5476_v35 = vld [vmem:[#allocation2 + $0x2f0] ss:$8 sps:$4 sm:$0xff]   ;;  %1914 = vmatprep.subr.bf16.mxu1 %v5478_v33 }
 0x235   : > { %v1203_v44 = vpack.c.bf16 %v1126_v40, %v1124_v37  ;;  %v1028_v46 = vpop.f32.mrb[40].mxu1  ;;  %1915 = vmatpush1.bf16.msra.mxu1 %v5476_v35 }
 0x236   : > { %v1029_v42 = vadd.f32 %v1028_v46, %v6027_v48  ;;  %v1030_v43 = vpop.f32.mrb[41].mxu1 }
 0x237   : > { %v1031_v47 = vadd.f32 %v1030_v43, %v6030_v49  ;;  %v1032_v50 = vpop.f32.mrb[42].mxu1  ;;  %1511 = vmatprep.mubr.bf16.mxu0 %v1203_v44 }
 0x238   : > { %v1033_v51 = vadd.f32 %v1032_v50, %v6027_v48  ;;  %v1034_v53 = vpop.f32.mrb[43].mxu1  ;;  %1512 = vmatmul.mubr.bf16.gmra.mrb[100].mxu0 %v1202_v41  ;;  %v1127_v55 = vmax.f32 %v1029_v42, 0.0 }
 0x239   : > { %v1035_v54 = vadd.f32 %v1034_v53, %v6030_v49  ;;  %v1128_v57 = vmax.f32 %v1031_v47, 0.0 }
 0x23a   : > { %v1129_v56 = vmax.f32 %v1033_v51, 0.0 }
 0x23b   : > { %v1130_v59 = vmax.f32 %v1035_v54, 0.0 }
 0x23c   : > { %v1204_v60 = vpack.c.bf16 %v1129_v56, %v1127_v55 }
 0x23d   : > { %v1205_v62 = vpack.c.bf16 %v1130_v59, %v1128_v57  ;;  %v1038_v63 = vpop.f32.mrb[44].mxu1 }
 0x23e   : > { %v1039_v2 = vadd.f32 %v1038_v63, %v6027_v48  ;;  %v1040_v4 = vpop.f32.mrb[45].mxu1 }
 0x23f   : > { %v1041_v6 = vadd.f32 %v1040_v4, %v6030_v49  ;;  %v1042_v7 = vpop.f32.mrb[46].mxu1  ;;  %1521 = vmatprep.mubr.bf16.mxu0 %v1205_v62 }
 0x240   : > { %v1043_v8 = vadd.f32 %v1042_v7, %v6027_v48  ;;  %v1044_v11 = vpop.f32.mrb[47].mxu1  ;;  %1522 = vmatmul.mubr.bf16.gmra.mrb[104].mxu0 %v1204_v60  ;;  %v1131_v13 = vmax.f32 %v1039_v2, 0.0 }
 0x241   : > { %v1045_v12 = vadd.f32 %v1044_v11, %v6030_v49  ;;  %v1132_v16 = vmax.f32 %v1041_v6, 0.0 }
 0x242   : > { %v1133_v14 = vmax.f32 %v1043_v8, 0.0 }
 0x243   : > { %v1134_v17 = vmax.f32 %v1045_v12, 0.0 }
 0x244   : > { %v1206_v19 = vpack.c.bf16 %v1133_v14, %v1131_v13 }
 0x245   : > { %v1207_v20 = vpack.c.bf16 %v1134_v17, %v1132_v16  ;;  %v1048_v22 = vpop.f32.mrb[48].mxu1 }
 0x246   : > { %v1049_v24 = vadd.f32 %v1048_v22, %v6027_v48  ;;  %v1050_v26 = vpop.f32.mrb[49].mxu1 }
 0x247   : > { %v1051_v27 = vadd.f32 %v1050_v26, %v6030_v49  ;;  %v1052_v29 = vpop.f32.mrb[50].mxu1  ;;  %1531 = vmatprep.mubr.bf16.mxu0 %v1207_v20 }
 0x248   : > { %v1053_v31 = vadd.f32 %v1052_v29, %v6027_v48  ;;  %v1054_v32 = vpop.f32.mrb[51].mxu1  ;;  %1532 = vmatmul.mubr.bf16.gmra.mrb[108].mxu0 %v1206_v19  ;;  %v1135_v37 = vmax.f32 %v1049_v24, 0.0 }
 0x249   : > { %v1055_v34 = vadd.f32 %v1054_v32, %v6030_v49  ;;  %v1136_v41 = vmax.f32 %v1051_v27, 0.0 }
 0x24a   : > { %v1137_v40 = vmax.f32 %v1053_v31, 0.0 }
 0x24b   : > { %v1138_v44 = vmax.f32 %v1055_v34, 0.0 }
 0x24c   : > { %v1208_v46 = vpack.c.bf16 %v1137_v40, %v1135_v37 }
 0x24d   : > { %v1209_v42 = vpack.c.bf16 %v1138_v44, %v1136_v41  ;;  %v1058_v43 = vpop.f32.mrb[52].mxu1 }
 0x24e   : > { %v1059_v47 = vadd.f32 %v1058_v43, %v6027_v48  ;;  %v1060_v50 = vpop.f32.mrb[53].mxu1  ;;  %v5479_v43 = vld [vmem:[#allocation2 + $0x300] ss:$8 sps:$4 sm:$0xff]  }
 0x24f   : > { %v1061_v51 = vadd.f32 %v1060_v50, %v6030_v49  ;;  %v1062_v53 = vpop.f32.mrb[54].mxu1  ;;  %1541 = vmatprep.mubr.bf16.mxu0 %v1209_v42  ;;  %v5482_v50 = vld [vmem:[#allocation2 + $0x310] ss:$8 sps:$4 sm:$0xff]  }
 0x250   : > { %v1063_v54 = vadd.f32 %v1062_v53, %v6027_v48  ;;  %v1064_v55 = vpop.f32.mrb[55].mxu1  ;;  %1542 = vmatmul.mubr.bf16.gmra.mrb[112].mxu0 %v1208_v46  ;;  %v1139_v57 = vmax.f32 %v1059_v47, 0.0  ;;  %v5481_v47 = vld [vmem:[#allocation2 + $0x304] ss:$8 sps:$4 sm:$0xff]  }
 0x251   : > { %v1065_v56 = vadd.f32 %v1064_v55, %v6030_v49  ;;  %v1140_v60 = vmax.f32 %v1061_v51, 0.0  ;;  %2379 = vmatprep.subr.bf16.mxu0 %v5481_v47  ;;  %v5484_v51 = vld [vmem:[#allocation2 + $0x314] ss:$8 sps:$4 sm:$0xff]   ;;  %v5487_v53 = vld [vmem:[#allocation2 + $0x324] ss:$8 sps:$4 sm:$0xff]  }
 0x252   : > { %v1141_v59 = vmax.f32 %v1063_v54, 0.0  ;;  %2380 = vmatpush1.bf16.msra.mxu0 %v5479_v43  ;;  %v5500_v47 = vld [vmem:[#allocation2 + $0x370] ss:$8 sps:$4 sm:$0xff]  }
 0x253   : > { %v1142_v62 = vmax.f32 %v1065_v56, 0.0  ;;  %2381 = vmatprep.subr.bf16.mxu0 %v5484_v51 }
 0x254   : > { %v1210_v63 = vpack.c.bf16 %v1141_v59, %v1139_v57  ;;  %v5488_v57 = vld [vmem:[#allocation2 + $0x330] ss:$8 sps:$4 sm:$0xff]   ;;  %v5490_v59 = vld [vmem:[#allocation2 + $0x334] ss:$8 sps:$4 sm:$0xff]  }
 0x255   : > { %v1211_v2 = vpack.c.bf16 %v1142_v62, %v1140_v60  ;;  %v1068_v4 = vpop.f32.mrb[56].mxu1 }
 0x256   : > { %v1069_v6 = vadd.f32 %v1068_v4, %v6027_v48  ;;  %v1070_v7 = vpop.f32.mrb[57].mxu1  ;;  %2382 = vmatpush1.bf16.msra.mxu0 %v5482_v50 }
 0x257   : > { %v1071_v8 = vadd.f32 %v1070_v7, %v6030_v49  ;;  %v1072_v11 = vpop.f32.mrb[58].mxu1  ;;  %1551 = vmatprep.mubr.bf16.mxu0 %v1211_v2  ;;  %2383 = vmatprep.subr.bf16.mxu0 %v5487_v53  ;;  %v5491_v7 = vld [vmem:[#allocation2 + $0x340] ss:$8 sps:$4 sm:$0xff]  }
 0x258   : > { %v1073_v12 = vadd.f32 %v1072_v11, %v6027_v48  ;;  %v1074_v13 = vpop.f32.mrb[59].mxu1  ;;  %1552 = vmatmul.mubr.bf16.gmra.mrb[116].mxu0 %v1210_v63  ;;  %v1143_v16 = vmax.f32 %v1069_v6, 0.0 }
 0x259   : > { %v1075_v14 = vadd.f32 %v1074_v13, %v6030_v49  ;;  %v1144_v19 = vmax.f32 %v1071_v8, 0.0  ;;  %v5493_v8 = vld [vmem:[#allocation2 + $0x344] ss:$8 sps:$4 sm:$0xff]  }
 0x25a   : > { %v1145_v17 = vmax.f32 %v1073_v12, 0.0  ;;  %v5496_v12 = vld [vmem:[#allocation2 + $0x354] ss:$8 sps:$4 sm:$0xff]  }
 0x25b   : > { %v1146_v20 = vmax.f32 %v1075_v14, 0.0 }
 0x25c   : > { %v1212_v22 = vpack.c.bf16 %v1145_v17, %v1143_v16 }
 0x25d   : > { %v1213_v24 = vpack.c.bf16 %v1146_v20, %v1144_v19  ;;  %v1078_v26 = vpop.f32.mrb[60].mxu1  ;;  %v5494_v20 = vld [vmem:[#allocation2 + $0x350] ss:$8 sps:$4 sm:$0xff]  }
 0x25e   : > { %v1079_v27 = vadd.f32 %v1078_v26, %v6027_v48  ;;  %v1080_v29 = vpop.f32.mrb[61].mxu1  ;;  %v5499_v26 = vld [vmem:[#allocation2 + $0x364] ss:$8 sps:$4 sm:$0xff]  }
 0x25f   : > { %v1081_v31 = vadd.f32 %v1080_v29, %v6030_v49  ;;  %v1082_v32 = vpop.f32.mrb[62].mxu1  ;;  %1561 = vmatprep.mubr.bf16.mxu0 %v1213_v24 }
 0x260   : > { %v1083_v33 = vadd.f32 %v1082_v32, %v6027_v48  ;;  %v1084_v34 = vpop.f32.mrb[63].mxu1  ;;  %1562 = vmatmul.mubr.bf16.gmra.mrb[120].mxu0 %v1212_v22  ;;  %v1147_v37 = vmax.f32 %v1079_v27, 0.0  ;;  %v4885_v48 = vld [vmem:[%s6754_s3 + $0x2] ss:$8 sm:$0x3] }
 0x261   : > { %v1085_v35 = vadd.f32 %v1084_v34, %v6030_v49  ;;  %v1148_v41 = vmax.f32 %v1081_v31, 0.0  ;;  %v5485_v49 = vld [vmem:[#allocation2 + $0x320] ss:$8 sps:$4 sm:$0xff]   ;;  %v6100_v54 = vrot.slane %v4885_v48, %v5946_v36  ;;  %v6103_v55 = vrot.slane %v4885_v48, %v5951_v39  ;;  %v5505_v48 = vld [vmem:[#allocation2 + $0x384] ss:$8 sps:$4 sm:$0xff]  }
 0x262   : > { %v1149_v40 = vmax.f32 %v1083_v33, 0.0  ;;  %2384 = vmatpush1.bf16.msra.mxu0 %v5485_v49 }
 0x263   : > { %v1150_v44 = vmax.f32 %v1085_v35, 0.0  ;;  %2385 = vmatprep.subr.bf16.mxu0 %v5490_v59  ;;  %v5497_v35 = vld [vmem:[#allocation2 + $0x360] ss:$8 sps:$4 sm:$0xff]  }
 0x264   : > { %v1214_v46 = vpack.c.bf16 %v1149_v40, %v1147_v37  ;;  %v5502_v40 = vld [vmem:[#allocation2 + $0x374] ss:$8 sps:$4 sm:$0xff]  }
 0x265   : > { %v1215_v42 = vpack.c.bf16 %v1150_v44, %v1148_v41 }
 0x266   : > { %2386 = vmatpush1.bf16.msra.mxu0 %v5488_v57 }
 0x267   : > { %1571 = vmatprep.mubr.bf16.mxu0 %v1215_v42  ;;  %2387 = vmatprep.subr.bf16.mxu0 %v5493_v8 }
 0x268   : > { %1572 = vmatmul.mubr.bf16.gmra.mrb[124].mxu0 %v1214_v46 }
 0x26a   : > { %2388 = vmatpush1.bf16.msra.mxu0 %v5491_v7 }
 0x26b   : > { %2389 = vmatprep.subr.bf16.mxu0 %v5496_v12  ;;  %v5506_v12 = vld [vmem:[#allocation2 + $0x390] ss:$8 sps:$4 sm:$0xff]  }
 0x26e   : > { %2390 = vmatpush1.bf16.msra.mxu0 %v5494_v20 }
 0x26f   : > { %2391 = vmatprep.subr.bf16.mxu0 %v5499_v26 }
 0x272   : > { %2392 = vmatpush1.bf16.msra.mxu0 %v5497_v35 }
 0x273   : > { %2393 = vmatprep.subr.bf16.mxu0 %v5502_v40  ;;  %v5512_v40 = vld [vmem:[#allocation2 + $0x3b0] ss:$8 sps:$4 sm:$0xff]  }
 0x276   : > { %2394 = vmatpush1.bf16.msra.mxu0 %v5500_v47 }
 0x277   : > { %2395 = vmatprep.subr.bf16.mxu0 %v5505_v48 }
 0x2c3   : > { %v1423_v56 = vpop.f32.mrb[64].mxu0 }
 0x2c4   : > { %v1424_v60 = vadd.f32 %v1423_v56, %v6100_v54  ;;  %v1425_v62 = vpop.f32.mrb[65].mxu0 }
 0x2c5   : > { %v1426_v63 = vadd.f32 %v1425_v62, %v6103_v55  ;;  %v1427_v2 = vpop.f32.mrb[66].mxu0  ;;  %v5503_v62 = vld [vmem:[#allocation2 + $0x380] ss:$8 sps:$4 sm:$0xff]  }
 0x2c6   : > { %v1428_v4 = vadd.f32 %v1427_v2, %v6100_v54  ;;  %v1429_v6 = vpop.f32.mrb[67].mxu0  ;;  %v1582_v13 = vmax.f32 %v1424_v60, 0.0  ;;  %v5508_v2 = vld [vmem:[#allocation2 + $0x394] ss:$8 sps:$4 sm:$0xff]   ;;  %2396 = vmatpush1.bf16.msra.mxu0 %v5503_v62 }
 0x2c7   : > { %v1430_v11 = vadd.f32 %v1429_v6, %v6103_v55  ;;  %v1583_v16 = vmax.f32 %v1426_v63, 0.0  ;;  %2397 = vmatprep.subr.bf16.mxu0 %v5508_v2  ;;  %v5518_v2 = vld [vmem:[#allocation2 + $0x3d0] ss:$8 sps:$4 sm:$0xff]  }
 0x2c8   : > { %v1584_v14 = vmax.f32 %v1428_v4, 0.0 }
 0x2c9   : > { %v1585_v17 = vmax.f32 %v1430_v11, 0.0 }
 0x2ca   : > { %v1679_v19 = vpack.c.bf16 %v1584_v14, %v1582_v13  ;;  %2398 = vmatpush1.bf16.msra.mxu0 %v5506_v12 }
 0x2cb   : > { %v1433_v22 = vpop.f32.mrb[68].mxu0  ;;  %v1680_v24 = vpack.c.bf16 %v1585_v17, %v1583_v16  ;;  %v5511_v16 = vld [vmem:[#allocation2 + $0x3a4] ss:$8 sps:$4 sm:$0xff]  }
 0x2cc   : > { %v1434_v27 = vadd.f32 %v1433_v22, %v6100_v54  ;;  %v1435_v29 = vpop.f32.mrb[69].mxu0  ;;  %2399 = vmatprep.subr.bf16.mxu0 %v5511_v16 }
 0x2cd   : > { %v1436_v31 = vadd.f32 %v1435_v29, %v6103_v55  ;;  %v1437_v32 = vpop.f32.mrb[70].mxu0  ;;  %1916 = vmatprep.mubr.bf16.mxu1 %v1680_v24 }
 0x2ce   : > { %v1438_v33 = vadd.f32 %v1437_v32, %v6100_v54  ;;  %v1439_v34 = vpop.f32.mrb[71].mxu0  ;;  %1917 = vmatmul.mubr.bf16.vlgmr.msra.gmra.mrb[64].mxu1 %v1679_v19  ;;  %v1586_v41 = vmax.f32 %v1434_v27, 0.0  ;;  %v5509_v27 = vld [vmem:[#allocation2 + $0x3a0] ss:$8 sps:$4 sm:$0xff]  }
 0x2cf   : > { %v1440_v37 = vadd.f32 %v1439_v34, %v6103_v55  ;;  %v1587_v46 = vmax.f32 %v1436_v31, 0.0  ;;  %v5514_v31 = vld [vmem:[#allocation2 + $0x3b4] ss:$8 sps:$4 sm:$0xff]   ;;  %2400 = vmatpush1.bf16.msra.mxu0 %v5509_v27 }
 0x2d0   : > { %v1588_v44 = vmax.f32 %v1438_v33, 0.0  ;;  %2401 = vmatprep.subr.bf16.mxu0 %v5514_v31 }
 0x2d1   : > { %v1589_v42 = vmax.f32 %v1440_v37, 0.0 }
 0x2d2   : > { %v1681_v43 = vpack.c.bf16 %v1588_v44, %v1586_v41 }
 0x2d3   : > { %v1443_v50 = vpop.f32.mrb[72].mxu0  ;;  %v1682_v51 = vpack.c.bf16 %v1589_v42, %v1587_v46  ;;  %v5517_v46 = vld [vmem:[#allocation2 + $0x3c4] ss:$8 sps:$4 sm:$0xff]   ;;  %2402 = vmatpush1.bf16.msra.mxu0 %v5512_v40 }
 0x2d4   : > { %v1444_v49 = vadd.f32 %v1443_v50, %v6100_v54  ;;  %v1445_v53 = vpop.f32.mrb[73].mxu0  ;;  %2403 = vmatprep.subr.bf16.mxu0 %v5517_v46 }
 0x2d5   : > { %v1446_v56 = vadd.f32 %v1445_v53, %v6103_v55  ;;  %v1447_v57 = vpop.f32.mrb[74].mxu0  ;;  %1926 = vmatprep.mubr.bf16.mxu1 %v1682_v51 }
 0x2d6   : > { %v1448_v59 = vadd.f32 %v1447_v57, %v6100_v54  ;;  %v1449_v60 = vpop.f32.mrb[75].mxu0  ;;  %1927 = vmatmul.mubr.bf16.gmra.mrb[68].mxu1 %v1681_v43  ;;  %v1590_v4 = vmax.f32 %v1444_v49, 0.0  ;;  %v5515_v49 = vld [vmem:[#allocation2 + $0x3c0] ss:$8 sps:$4 sm:$0xff]  }
 0x2d7   : > { %v1450_v63 = vadd.f32 %v1449_v60, %v6103_v55  ;;  %v1591_v7 = vmax.f32 %v1446_v56, 0.0  ;;  %v5520_v56 = vld [vmem:[#allocation2 + $0x3d4] ss:$8 sps:$4 sm:$0xff]   ;;  %2404 = vmatpush1.bf16.msra.mxu0 %v5515_v49 }
 0x2d8   : > { %v1592_v6 = vmax.f32 %v1448_v59, 0.0  ;;  %2405 = vmatprep.subr.bf16.mxu0 %v5520_v56 }
 0x2d9   : > { %v1593_v8 = vmax.f32 %v1450_v63, 0.0 }
 0x2da   : > { %v1683_v11 = vpack.c.bf16 %v1592_v6, %v1590_v4 }
 0x2db   : > { %v1453_v13 = vpop.f32.mrb[76].mxu0  ;;  %v1684_v14 = vpack.c.bf16 %v1593_v8, %v1591_v7  ;;  %v5523_v7 = vld [vmem:[#allocation2 + $0x3e4] ss:$8 sps:$4 sm:$0xff]   ;;  %2406 = vmatpush1.bf16.msra.mxu0 %v5518_v2 }
 0x2dc   : > { %v1454_v17 = vadd.f32 %v1453_v13, %v6100_v54  ;;  %v1455_v19 = vpop.f32.mrb[77].mxu0  ;;  %2407 = vmatprep.subr.bf16.mxu0 %v5523_v7 }
 0x2dd   : > { %v1456_v20 = vadd.f32 %v1455_v19, %v6103_v55  ;;  %v1457_v22 = vpop.f32.mrb[78].mxu0  ;;  %1936 = vmatprep.mubr.bf16.mxu1 %v1684_v14 }
 0x2de   : > { %v1458_v24 = vadd.f32 %v1457_v22, %v6100_v54  ;;  %v1459_v26 = vpop.f32.mrb[79].mxu0  ;;  %1937 = vmatmul.mubr.bf16.gmra.mrb[72].mxu1 %v1683_v11  ;;  %v1594_v32 = vmax.f32 %v1454_v17, 0.0  ;;  %v5521_v17 = vld [vmem:[#allocation2 + $0x3e0] ss:$8 sps:$4 sm:$0xff]  }
 0x2df   : > { %v1460_v29 = vadd.f32 %v1459_v26, %v6103_v55  ;;  %v1595_v34 = vmax.f32 %v1456_v20, 0.0  ;;  %2408 = vmatpush1.bf16.msra.mxu0 %v5521_v17 }
 0x2e0   : > { %v1596_v33 = vmax.f32 %v1458_v24, 0.0 }
 0x2e1   : > { %v1597_v35 = vmax.f32 %v1460_v29, 0.0 }
 0x2e2   : > { %v1685_v37 = vpack.c.bf16 %v1596_v33, %v1594_v32 }
 0x2e3   : > { %v1686_v41 = vpack.c.bf16 %v1597_v35, %v1595_v34  ;;  %v1463_v44 = vpop.f32.mrb[80].mxu0 }
 0x2e4   : > { %v1464_v42 = vadd.f32 %v1463_v44, %v6100_v54  ;;  %v1465_v43 = vpop.f32.mrb[81].mxu0 }
 0x2e5   : > { %v1466_v47 = vadd.f32 %v1465_v43, %v6103_v55  ;;  %v1467_v50 = vpop.f32.mrb[82].mxu0  ;;  %1946 = vmatprep.mubr.bf16.mxu1 %v1686_v41 }
 0x2e6   : > { %v1468_v51 = vadd.f32 %v1467_v50, %v6100_v54  ;;  %v1469_v48 = vpop.f32.mrb[83].mxu0  ;;  %1947 = vmatmul.mubr.bf16.gmra.mrb[76].mxu1 %v1685_v37  ;;  %v1598_v57 = vmax.f32 %v1464_v42, 0.0 }
 0x2e7   : > { %v1470_v53 = vadd.f32 %v1469_v48, %v6103_v55  ;;  %v1599_v60 = vmax.f32 %v1466_v47, 0.0 }
 0x2e8   : > { %v1600_v59 = vmax.f32 %v1468_v51, 0.0 }
 0x2e9   : > { %v1601_v62 = vmax.f32 %v1470_v53, 0.0 }
 0x2ea   : > { %v1687_v63 = vpack.c.bf16 %v1600_v59, %v1598_v57 }
 0x2eb   : > { %v1688_v4 = vpack.c.bf16 %v1601_v62, %v1599_v60  ;;  %v1473_v6 = vpop.f32.mrb[84].mxu0 }
 0x2ec   : > { %v1474_v8 = vadd.f32 %v1473_v6, %v6100_v54  ;;  %v1475_v11 = vpop.f32.mrb[85].mxu0 }
 0x2ed   : > { %v1476_v12 = vadd.f32 %v1475_v11, %v6103_v55  ;;  %v1477_v13 = vpop.f32.mrb[86].mxu0  ;;  %1956 = vmatprep.mubr.bf16.mxu1 %v1688_v4 }
 0x2ee   : > { %v1478_v14 = vadd.f32 %v1477_v13, %v6100_v54  ;;  %v1479_v16 = vpop.f32.mrb[87].mxu0  ;;  %1957 = vmatmul.mubr.bf16.gmra.mrb[80].mxu1 %v1687_v63  ;;  %v1602_v20 = vmax.f32 %v1474_v8, 0.0 }
 0x2ef   : > { %v1480_v19 = vadd.f32 %v1479_v16, %v6103_v55  ;;  %v1603_v24 = vmax.f32 %v1476_v12, 0.0 }
 0x2f0   : > { %v1604_v22 = vmax.f32 %v1478_v14, 0.0 }
 0x2f1   : > { %v1605_v26 = vmax.f32 %v1480_v19, 0.0 }
 0x2f2   : > { %v1689_v27 = vpack.c.bf16 %v1604_v22, %v1602_v20 }
 0x2f3   : > { %v1690_v29 = vpack.c.bf16 %v1605_v26, %v1603_v24  ;;  %v1483_v31 = vpop.f32.mrb[88].mxu0 }
 0x2f4   : > { %v1484_v32 = vadd.f32 %v1483_v31, %v6100_v54  ;;  %v1485_v33 = vpop.f32.mrb[89].mxu0 }
 0x2f5   : > { %v1486_v34 = vadd.f32 %v1485_v33, %v6103_v55  ;;  %v1487_v35 = vpop.f32.mrb[90].mxu0  ;;  %1966 = vmatprep.mubr.bf16.mxu1 %v1690_v29 }
 0x2f6   : > { %v1488_v37 = vadd.f32 %v1487_v35, %v6100_v54  ;;  %v1489_v40 = vpop.f32.mrb[91].mxu0  ;;  %1967 = vmatmul.mubr.bf16.gmra.mrb[84].mxu1 %v1689_v27  ;;  %v1606_v44 = vmax.f32 %v1484_v32, 0.0 }
 0x2f7   : > { %v1490_v41 = vadd.f32 %v1489_v40, %v6103_v55  ;;  %v1607_v42 = vmax.f32 %v1486_v34, 0.0 }
 0x2f8   : > { %v1608_v46 = vmax.f32 %v1488_v37, 0.0 }
 0x2f9   : > { %v1609_v43 = vmax.f32 %v1490_v41, 0.0 }
 0x2fa   : > { %v1691_v47 = vpack.c.bf16 %v1608_v46, %v1606_v44 }
 0x2fb   : > { %v1692_v50 = vpack.c.bf16 %v1609_v43, %v1607_v42  ;;  %v1493_v51 = vpop.f32.mrb[92].mxu0 }
 0x2fc   : > { %v1494_v48 = vadd.f32 %v1493_v51, %v6100_v54  ;;  %v1495_v49 = vpop.f32.mrb[93].mxu0 }
 0x2fd   : > { %v1496_v53 = vadd.f32 %v1495_v49, %v6103_v55  ;;  %v1497_v56 = vpop.f32.mrb[94].mxu0  ;;  %1976 = vmatprep.mubr.bf16.mxu1 %v1692_v50 }
 0x2fe   : > { %v1498_v57 = vadd.f32 %v1497_v56, %v6100_v54  ;;  %v1499_v59 = vpop.f32.mrb[95].mxu0  ;;  %1977 = vmatmul.mubr.bf16.gmra.mrb[88].mxu1 %v1691_v47  ;;  %v1610_v62 = vmax.f32 %v1494_v48, 0.0 }
 0x2ff   : > { %v1500_v60 = vadd.f32 %v1499_v59, %v6103_v55  ;;  %v1611_v2 = vmax.f32 %v1496_v53, 0.0 }
 0x300   : > { %v1612_v63 = vmax.f32 %v1498_v57, 0.0 }
 0x301   : > { %v1613_v4 = vmax.f32 %v1500_v60, 0.0 }
 0x302   : > { %v1693_v6 = vpack.c.bf16 %v1612_v63, %v1610_v62 }
 0x303   : > { %v1694_v7 = vpack.c.bf16 %v1613_v4, %v1611_v2  ;;  %v1503_v8 = vpop.f32.mrb[96].mxu0 }
 0x304   : > { %v1504_v11 = vadd.f32 %v1503_v8, %v6100_v54  ;;  %v1505_v12 = vpop.f32.mrb[97].mxu0 }
 0x305   : > { %v1506_v13 = vadd.f32 %v1505_v12, %v6103_v55  ;;  %v1507_v14 = vpop.f32.mrb[98].mxu0  ;;  %1986 = vmatprep.mubr.bf16.mxu1 %v1694_v7 }
 0x306   : > { %v1508_v16 = vadd.f32 %v1507_v14, %v6100_v54  ;;  %v1509_v17 = vpop.f32.mrb[99].mxu0  ;;  %1987 = vmatmul.mubr.bf16.gmra.mrb[92].mxu1 %v1693_v6  ;;  %v1614_v20 = vmax.f32 %v1504_v11, 0.0 }
 0x307   : > { %v1510_v19 = vadd.f32 %v1509_v17, %v6103_v55  ;;  %v1615_v24 = vmax.f32 %v1506_v13, 0.0 }
 0x308   : > { %v1616_v22 = vmax.f32 %v1508_v16, 0.0 }
 0x309   : > { %v1617_v26 = vmax.f32 %v1510_v19, 0.0 }
 0x30a   : > { %v1695_v27 = vpack.c.bf16 %v1616_v22, %v1614_v20 }
 0x30b   : > { %v1696_v29 = vpack.c.bf16 %v1617_v26, %v1615_v24  ;;  %v1513_v31 = vpop.f32.mrb[100].mxu0 }
 0x30c   : > { %v1514_v32 = vadd.f32 %v1513_v31, %v6100_v54  ;;  %v1515_v33 = vpop.f32.mrb[101].mxu0 }
 0x30d   : > { %v1516_v34 = vadd.f32 %v1515_v33, %v6103_v55  ;;  %v1517_v35 = vpop.f32.mrb[102].mxu0  ;;  %1996 = vmatprep.mubr.bf16.mxu1 %v1696_v29 }
 0x30e   : > { %v1518_v37 = vadd.f32 %v1517_v35, %v6100_v54  ;;  %v1519_v40 = vpop.f32.mrb[103].mxu0  ;;  %1997 = vmatmul.mubr.bf16.gmra.mrb[96].mxu1 %v1695_v27  ;;  %v1618_v44 = vmax.f32 %v1514_v32, 0.0 }
 0x30f   : > { %v1520_v41 = vadd.f32 %v1519_v40, %v6103_v55  ;;  %v1619_v42 = vmax.f32 %v1516_v34, 0.0 }
 0x310   : > { %v1620_v46 = vmax.f32 %v1518_v37, 0.0 }
 0x311   : > { %v1621_v43 = vmax.f32 %v1520_v41, 0.0  ;;  %v5526_v41 = vld [vmem:[#allocation2 + $0x3f4] ss:$8 sps:$4 sm:$0xff]  }
 0x312   : > { %v1697_v47 = vpack.c.bf16 %v1620_v46, %v1618_v44  ;;  %v5524_v46 = vld [vmem:[#allocation2 + $0x3f0] ss:$8 sps:$4 sm:$0xff]   ;;  %2409 = vmatprep.subr.bf16.mxu0 %v5526_v41 }
 0x313   : > { %v1698_v50 = vpack.c.bf16 %v1621_v43, %v1619_v42  ;;  %v1523_v51 = vpop.f32.mrb[104].mxu0  ;;  %2410 = vmatpush1.bf16.msra.mxu0 %v5524_v46 }
 0x314   : > { %v1524_v48 = vadd.f32 %v1523_v51, %v6100_v54  ;;  %v1525_v49 = vpop.f32.mrb[105].mxu0 }
 0x315   : > { %v1526_v53 = vadd.f32 %v1525_v49, %v6103_v55  ;;  %v1527_v56 = vpop.f32.mrb[106].mxu0  ;;  %2006 = vmatprep.mubr.bf16.mxu1 %v1698_v50 }
 0x316   : > { %v1528_v57 = vadd.f32 %v1527_v56, %v6100_v54  ;;  %v1529_v59 = vpop.f32.mrb[107].mxu0  ;;  %2007 = vmatmul.mubr.bf16.gmra.mrb[100].mxu1 %v1697_v47  ;;  %v1622_v62 = vmax.f32 %v1524_v48, 0.0 }
 0x317   : > { %v1530_v60 = vadd.f32 %v1529_v59, %v6103_v55  ;;  %v1623_v2 = vmax.f32 %v1526_v53, 0.0 }
 0x318   : > { %v1624_v63 = vmax.f32 %v1528_v57, 0.0 }
 0x319   : > { %v1625_v4 = vmax.f32 %v1530_v60, 0.0 }
 0x31a   : > { %v1699_v6 = vpack.c.bf16 %v1624_v63, %v1622_v62 }
 0x31b   : > { %v1700_v7 = vpack.c.bf16 %v1625_v4, %v1623_v2  ;;  %v1533_v8 = vpop.f32.mrb[108].mxu0 }
 0x31c   : > { %v1534_v11 = vadd.f32 %v1533_v8, %v6100_v54  ;;  %v1535_v12 = vpop.f32.mrb[109].mxu0 }
 0x31d   : > { %v1536_v13 = vadd.f32 %v1535_v12, %v6103_v55  ;;  %v1537_v14 = vpop.f32.mrb[110].mxu0  ;;  %2016 = vmatprep.mubr.bf16.mxu1 %v1700_v7 }
 0x31e   : > { %v1538_v16 = vadd.f32 %v1537_v14, %v6100_v54  ;;  %v1539_v17 = vpop.f32.mrb[111].mxu0  ;;  %2017 = vmatmul.mubr.bf16.gmra.mrb[104].mxu1 %v1699_v6  ;;  %v1626_v20 = vmax.f32 %v1534_v11, 0.0 }
 0x31f   : > { %v1540_v19 = vadd.f32 %v1539_v17, %v6103_v55  ;;  %v1627_v24 = vmax.f32 %v1536_v13, 0.0 }
 0x320   : > { %v1628_v22 = vmax.f32 %v1538_v16, 0.0 }
 0x321   : > { %v1629_v26 = vmax.f32 %v1540_v19, 0.0 }
 0x322   : > { %v1701_v27 = vpack.c.bf16 %v1628_v22, %v1626_v20 }
 0x323   : > { %v1702_v29 = vpack.c.bf16 %v1629_v26, %v1627_v24  ;;  %v1543_v31 = vpop.f32.mrb[112].mxu0 }
 0x324   : > { %v1544_v32 = vadd.f32 %v1543_v31, %v6100_v54  ;;  %v1545_v33 = vpop.f32.mrb[113].mxu0 }
 0x325   : > { %v1546_v34 = vadd.f32 %v1545_v33, %v6103_v55  ;;  %v1547_v35 = vpop.f32.mrb[114].mxu0  ;;  %2026 = vmatprep.mubr.bf16.mxu1 %v1702_v29 }
 0x326   : > { %v1548_v37 = vadd.f32 %v1547_v35, %v6100_v54  ;;  %v1549_v40 = vpop.f32.mrb[115].mxu0  ;;  %2027 = vmatmul.mubr.bf16.gmra.mrb[108].mxu1 %v1701_v27  ;;  %v1630_v42 = vmax.f32 %v1544_v32, 0.0 }
 0x327   : > { %v1550_v44 = vadd.f32 %v1549_v40, %v6103_v55  ;;  %v1631_v47 = vmax.f32 %v1546_v34, 0.0 }
 0x328   : > { %v1632_v43 = vmax.f32 %v1548_v37, 0.0 }
 0x329   : > { %v1633_v50 = vmax.f32 %v1550_v44, 0.0 }
 0x32a   : > { %v1703_v51 = vpack.c.bf16 %v1632_v43, %v1630_v42 }
 0x32b   : > { %v1704_v48 = vpack.c.bf16 %v1633_v50, %v1631_v47  ;;  %v1553_v49 = vpop.f32.mrb[116].mxu0 }
 0x32c   : > { %v1554_v53 = vadd.f32 %v1553_v49, %v6100_v54  ;;  %v1555_v56 = vpop.f32.mrb[117].mxu0  ;;  %v5527_v49 = vld [vmem:[#allocation2 + $0x400] ss:$8 sps:$4 sm:$0xff]  }
 0x32d   : > { %v1556_v57 = vadd.f32 %v1555_v56, %v6103_v55  ;;  %v1557_v59 = vpop.f32.mrb[118].mxu0  ;;  %2036 = vmatprep.mubr.bf16.mxu1 %v1704_v48  ;;  %v5530_v56 = vld [vmem:[#allocation2 + $0x410] ss:$8 sps:$4 sm:$0xff]  }
 0x32e   : > { %v1558_v60 = vadd.f32 %v1557_v59, %v6100_v54  ;;  %v1559_v62 = vpop.f32.mrb[119].mxu0  ;;  %2037 = vmatmul.mubr.bf16.gmra.mrb[112].mxu1 %v1703_v51  ;;  %v1634_v2 = vmax.f32 %v1554_v53, 0.0  ;;  %v5529_v53 = vld [vmem:[#allocation2 + $0x404] ss:$8 sps:$4 sm:$0xff]  }
 0x32f   : > { %v1560_v63 = vadd.f32 %v1559_v62, %v6103_v55  ;;  %v1635_v6 = vmax.f32 %v1556_v57, 0.0  ;;  %2863 = vmatprep.subr.bf16.mxu1 %v5529_v53  ;;  %v5532_v57 = vld [vmem:[#allocation2 + $0x414] ss:$8 sps:$4 sm:$0xff]   ;;  %v5535_v59 = vld [vmem:[#allocation2 + $0x424] ss:$8 sps:$4 sm:$0xff]  }
 0x330   : > { %v1636_v4 = vmax.f32 %v1558_v60, 0.0  ;;  %2864 = vmatpush1.bf16.msra.mxu1 %v5527_v49  ;;  %v5548_v53 = vld [vmem:[#allocation2 + $0x470] ss:$8 sps:$4 sm:$0xff]  }
 0x331   : > { %v1637_v7 = vmax.f32 %v1560_v63, 0.0  ;;  %2865 = vmatprep.subr.bf16.mxu1 %v5532_v57 }
 0x332   : > { %v1705_v8 = vpack.c.bf16 %v1636_v4, %v1634_v2  ;;  %v5536_v2 = vld [vmem:[#allocation2 + $0x430] ss:$8 sps:$4 sm:$0xff]   ;;  %v5538_v4 = vld [vmem:[#allocation2 + $0x434] ss:$8 sps:$4 sm:$0xff]  }
 0x333   : > { %v1706_v11 = vpack.c.bf16 %v1637_v7, %v1635_v6  ;;  %v1563_v12 = vpop.f32.mrb[120].mxu0 }
 0x334   : > { %v1564_v13 = vadd.f32 %v1563_v12, %v6100_v54  ;;  %v1565_v14 = vpop.f32.mrb[121].mxu0  ;;  %2866 = vmatpush1.bf16.msra.mxu1 %v5530_v56 }
 0x335   : > { %v1566_v16 = vadd.f32 %v1565_v14, %v6103_v55  ;;  %v1567_v17 = vpop.f32.mrb[122].mxu0  ;;  %2046 = vmatprep.mubr.bf16.mxu1 %v1706_v11  ;;  %2867 = vmatprep.subr.bf16.mxu1 %v5535_v59  ;;  %v5539_v14 = vld [vmem:[#allocation2 + $0x440] ss:$8 sps:$4 sm:$0xff]  }
 0x336   : > { %v1568_v19 = vadd.f32 %v1567_v17, %v6100_v54  ;;  %v1569_v20 = vpop.f32.mrb[123].mxu0  ;;  %2047 = vmatmul.mubr.bf16.gmra.mrb[116].mxu1 %v1705_v8  ;;  %v1638_v24 = vmax.f32 %v1564_v13, 0.0 }
 0x337   : > { %v1570_v22 = vadd.f32 %v1569_v20, %v6103_v55  ;;  %v1639_v27 = vmax.f32 %v1566_v16, 0.0  ;;  %v5541_v16 = vld [vmem:[#allocation2 + $0x444] ss:$8 sps:$4 sm:$0xff]  }
 0x338   : > { %v1640_v26 = vmax.f32 %v1568_v19, 0.0  ;;  %v5544_v19 = vld [vmem:[#allocation2 + $0x454] ss:$8 sps:$4 sm:$0xff]  }
 0x339   : > { %v1641_v29 = vmax.f32 %v1570_v22, 0.0 }
 0x33a   : > { %v1707_v31 = vpack.c.bf16 %v1640_v26, %v1638_v24 }
 0x33b   : > { %v1708_v32 = vpack.c.bf16 %v1641_v29, %v1639_v27  ;;  %v1573_v33 = vpop.f32.mrb[124].mxu0  ;;  %v5542_v29 = vld [vmem:[#allocation2 + $0x450] ss:$8 sps:$4 sm:$0xff]  }
 0x33c   : > { %v1574_v34 = vadd.f32 %v1573_v33, %v6100_v54  ;;  %v1575_v35 = vpop.f32.mrb[125].mxu0  ;;  %v5547_v33 = vld [vmem:[#allocation2 + $0x464] ss:$8 sps:$4 sm:$0xff]  }
 0x33d   : > { %v1576_v37 = vadd.f32 %v1575_v35, %v6103_v55  ;;  %v1577_v40 = vpop.f32.mrb[126].mxu0  ;;  %2056 = vmatprep.mubr.bf16.mxu1 %v1708_v32 }
 0x33e   : > { %v1578_v41 = vadd.f32 %v1577_v40, %v6100_v54  ;;  %v1579_v44 = vpop.f32.mrb[127].mxu0  ;;  %2057 = vmatmul.mubr.bf16.gmra.mrb[120].mxu1 %v1707_v31  ;;  %v1642_v42 = vmax.f32 %v1574_v34, 0.0  ;;  %v4918_v54 = vld [vmem:[%s6754_s3 + $0x3] ss:$8 sm:$0x3] }
 0x33f   : > { %v1580_v46 = vadd.f32 %v1579_v44, %v6103_v55  ;;  %v1643_v47 = vmax.f32 %v1576_v37, 0.0  ;;  %v5533_v55 = vld [vmem:[#allocation2 + $0x420] ss:$8 sps:$4 sm:$0xff]   ;;  %v6173_v60 = vrot.slane %v4918_v54, %v5946_v36  ;;  %v6176_v62 = vrot.slane %v4918_v54, %v5951_v39  ;;  %v5553_v54 = vld [vmem:[#allocation2 + $0x484] ss:$8 sps:$4 sm:$0xff]  }
 0x340   : > { %v1644_v43 = vmax.f32 %v1578_v41, 0.0  ;;  %2868 = vmatpush1.bf16.msra.mxu1 %v5533_v55 }
 0x341   : > { %v1645_v50 = vmax.f32 %v1580_v46, 0.0  ;;  %2869 = vmatprep.subr.bf16.mxu1 %v5538_v4  ;;  %v5545_v46 = vld [vmem:[#allocation2 + $0x460] ss:$8 sps:$4 sm:$0xff]  }
 0x342   : > { %v1709_v51 = vpack.c.bf16 %v1644_v43, %v1642_v42  ;;  %v5550_v43 = vld [vmem:[#allocation2 + $0x474] ss:$8 sps:$4 sm:$0xff]  }
 0x343   : > { %v1710_v48 = vpack.c.bf16 %v1645_v50, %v1643_v47 }
 0x344   : > { %2870 = vmatpush1.bf16.msra.mxu1 %v5536_v2 }
 0x345   : > { %2066 = vmatprep.mubr.bf16.mxu1 %v1710_v48  ;;  %2871 = vmatprep.subr.bf16.mxu1 %v5541_v16 }
 0x346   : > { %2067 = vmatmul.mubr.bf16.gmra.mrb[124].mxu1 %v1709_v51 }
 0x348   : > { %2872 = vmatpush1.bf16.msra.mxu1 %v5539_v14 }
 0x349   : > { %2873 = vmatprep.subr.bf16.mxu1 %v5544_v19  ;;  %v5554_v19 = vld [vmem:[#allocation2 + $0x490] ss:$8 sps:$4 sm:$0xff]  }
 0x34c   : > { %2874 = vmatpush1.bf16.msra.mxu1 %v5542_v29 }
 0x34d   : > { %2875 = vmatprep.subr.bf16.mxu1 %v5547_v33 }
 0x350   : > { %2876 = vmatpush1.bf16.msra.mxu1 %v5545_v46 }
 0x351   : > { %2877 = vmatprep.subr.bf16.mxu1 %v5550_v43  ;;  %v5560_v43 = vld [vmem:[#allocation2 + $0x4b0] ss:$8 sps:$4 sm:$0xff]  }
 0x354   : > { %2878 = vmatpush1.bf16.msra.mxu1 %v5548_v53 }
 0x355   : > { %2879 = vmatprep.subr.bf16.mxu1 %v5553_v54 }
 0x3a1   : > { %v1918_v63 = vpop.f32.mrb[64].mxu1 }
 0x3a2   : > { %v1919_v6 = vadd.f32 %v1918_v63, %v6173_v60  ;;  %v1920_v7 = vpop.f32.mrb[65].mxu1 }
 0x3a3   : > { %v1921_v8 = vadd.f32 %v1920_v7, %v6176_v62  ;;  %v1922_v11 = vpop.f32.mrb[66].mxu1  ;;  %v5551_v7 = vld [vmem:[#allocation2 + $0x480] ss:$8 sps:$4 sm:$0xff]  }
 0x3a4   : > { %v1923_v12 = vadd.f32 %v1922_v11, %v6173_v60  ;;  %v1924_v13 = vpop.f32.mrb[67].mxu1  ;;  %v2077_v20 = vmax.f32 %v1919_v6, 0.0  ;;  %v5556_v11 = vld [vmem:[#allocation2 + $0x494] ss:$8 sps:$4 sm:$0xff]   ;;  %2880 = vmatpush1.bf16.msra.mxu1 %v5551_v7 }
 0x3a5   : > { %v1925_v17 = vadd.f32 %v1924_v13, %v6176_v62  ;;  %v2078_v24 = vmax.f32 %v1921_v8, 0.0  ;;  %2881 = vmatprep.subr.bf16.mxu1 %v5556_v11  ;;  %v5566_v11 = vld [vmem:[#allocation2 + $0x4d0] ss:$8 sps:$4 sm:$0xff]  }
 0x3a6   : > { %v2079_v22 = vmax.f32 %v1923_v12, 0.0 }
 0x3a7   : > { %v2080_v26 = vmax.f32 %v1925_v17, 0.0 }
 0x3a8   : > { %v2174_v27 = vpack.c.bf16 %v2079_v22, %v2077_v20  ;;  %2882 = vmatpush1.bf16.msra.mxu1 %v5554_v19 }
 0x3a9   : > { %v2175_v31 = vpack.c.bf16 %v2080_v26, %v2078_v24  ;;  %v1928_v32 = vpop.f32.mrb[68].mxu1  ;;  %v5559_v24 = vld [vmem:[#allocation2 + $0x4a4] ss:$8 sps:$4 sm:$0xff]  }
 0x3aa   : > { %v1929_v34 = vadd.f32 %v1928_v32, %v6173_v60  ;;  %v1930_v35 = vpop.f32.mrb[69].mxu1  ;;  %2883 = vmatprep.subr.bf16.mxu1 %v5559_v24 }
 0x3ab   : > { %v1931_v37 = vadd.f32 %v1930_v35, %v6176_v62  ;;  %v1932_v40 = vpop.f32.mrb[70].mxu1  ;;  %2411 = vmatprep.mubr.bf16.mxu0 %v2175_v31 }
 0x3ac   : > { %v1933_v41 = vadd.f32 %v1932_v40, %v6173_v60  ;;  %v1934_v44 = vpop.f32.mrb[71].mxu1  ;;  %2412 = vmatmul.mubr.bf16.vlgmr.msra.gmra.mrb[128].mxu0 %v2174_v27  ;;  %v2081_v47 = vmax.f32 %v1929_v34, 0.0  ;;  %v5557_v34 = vld [vmem:[#allocation2 + $0x4a0] ss:$8 sps:$4 sm:$0xff]  }
 0x3ad   : > { %v1935_v42 = vadd.f32 %v1934_v44, %v6176_v62  ;;  %v2082_v51 = vmax.f32 %v1931_v37, 0.0  ;;  %v5562_v37 = vld [vmem:[#allocation2 + $0x4b4] ss:$8 sps:$4 sm:$0xff]   ;;  %2884 = vmatpush1.bf16.msra.mxu1 %v5557_v34 }
 0x3ae   : > { %v2083_v50 = vmax.f32 %v1933_v41, 0.0  ;;  %2885 = vmatprep.subr.bf16.mxu1 %v5562_v37 }
 0x3af   : > { %v2084_v48 = vmax.f32 %v1935_v42, 0.0 }
 0x3b0   : > { %v2176_v49 = vpack.c.bf16 %v2083_v50, %v2081_v47 }
 0x3b1   : > { %v2177_v56 = vpack.c.bf16 %v2084_v48, %v2082_v51  ;;  %v1938_v57 = vpop.f32.mrb[72].mxu1  ;;  %v5565_v51 = vld [vmem:[#allocation2 + $0x4c4] ss:$8 sps:$4 sm:$0xff]   ;;  %2886 = vmatpush1.bf16.msra.mxu1 %v5560_v43 }
 0x3b2   : > { %v1939_v55 = vadd.f32 %v1938_v57, %v6173_v60  ;;  %v1940_v59 = vpop.f32.mrb[73].mxu1  ;;  %2887 = vmatprep.subr.bf16.mxu1 %v5565_v51 }
 0x3b3   : > { %v1941_v63 = vadd.f32 %v1940_v59, %v6176_v62  ;;  %v1942_v2 = vpop.f32.mrb[74].mxu1  ;;  %2421 = vmatprep.mubr.bf16.mxu0 %v2177_v56 }
 0x3b4   : > { %v1943_v4 = vadd.f32 %v1942_v2, %v6173_v60  ;;  %v1944_v6 = vpop.f32.mrb[75].mxu1  ;;  %2422 = vmatmul.mubr.bf16.gmra.mrb[132].mxu0 %v2176_v49  ;;  %v2085_v12 = vmax.f32 %v1939_v55, 0.0  ;;  %v5563_v55 = vld [vmem:[#allocation2 + $0x4c0] ss:$8 sps:$4 sm:$0xff]  }
 0x3b5   : > { %v1945_v8 = vadd.f32 %v1944_v6, %v6176_v62  ;;  %v2086_v14 = vmax.f32 %v1941_v63, 0.0  ;;  %v5568_v63 = vld [vmem:[#allocation2 + $0x4d4] ss:$8 sps:$4 sm:$0xff]   ;;  %2888 = vmatpush1.bf16.msra.mxu1 %v5563_v55 }
 0x3b6   : > { %v2087_v13 = vmax.f32 %v1943_v4, 0.0  ;;  %2889 = vmatprep.subr.bf16.mxu1 %v5568_v63 }
 0x3b7   : > { %v2088_v16 = vmax.f32 %v1945_v8, 0.0 }
 0x3b8   : > { %v2178_v17 = vpack.c.bf16 %v2087_v13, %v2085_v12 }
 0x3b9   : > { %v2179_v20 = vpack.c.bf16 %v2088_v16, %v2086_v14  ;;  %v1948_v22 = vpop.f32.mrb[76].mxu1  ;;  %v5571_v14 = vld [vmem:[#allocation2 + $0x4e4] ss:$8 sps:$4 sm:$0xff]   ;;  %2890 = vmatpush1.bf16.msra.mxu1 %v5566_v11 }
 0x3ba   : > { %v1949_v26 = vadd.f32 %v1948_v22, %v6173_v60  ;;  %v1950_v27 = vpop.f32.mrb[77].mxu1  ;;  %2891 = vmatprep.subr.bf16.mxu1 %v5571_v14 }
 0x3bb   : > { %v1951_v29 = vadd.f32 %v1950_v27, %v6176_v62  ;;  %v1952_v31 = vpop.f32.mrb[78].mxu1  ;;  %2431 = vmatprep.mubr.bf16.mxu0 %v2179_v20 }
 0x3bc   : > { %v1953_v32 = vadd.f32 %v1952_v31, %v6173_v60  ;;  %v1954_v33 = vpop.f32.mrb[79].mxu1  ;;  %2432 = vmatmul.mubr.bf16.gmra.mrb[136].mxu0 %v2178_v17  ;;  %v2089_v40 = vmax.f32 %v1949_v26, 0.0  ;;  %v5569_v26 = vld [vmem:[#allocation2 + $0x4e0] ss:$8 sps:$4 sm:$0xff]  }
 0x3bd   : > { %v1955_v35 = vadd.f32 %v1954_v33, %v6176_v62  ;;  %v2090_v44 = vmax.f32 %v1951_v29, 0.0  ;;  %2892 = vmatpush1.bf16.msra.mxu1 %v5569_v26 }
 0x3be   : > { %v2091_v41 = vmax.f32 %v1953_v32, 0.0 }
 0x3bf   : > { %v2092_v46 = vmax.f32 %v1955_v35, 0.0 }
 0x3c0   : > { %v2180_v42 = vpack.c.bf16 %v2091_v41, %v2089_v40 }
 0x3c1   : > { %v2181_v47 = vpack.c.bf16 %v2092_v46, %v2090_v44  ;;  %v1958_v50 = vpop.f32.mrb[80].mxu1 }
 0x3c2   : > { %v1959_v48 = vadd.f32 %v1958_v50, %v6173_v60  ;;  %v1960_v49 = vpop.f32.mrb[81].mxu1 }
 0x3c3   : > { %v1961_v53 = vadd.f32 %v1960_v49, %v6176_v62  ;;  %v1962_v56 = vpop.f32.mrb[82].mxu1  ;;  %2441 = vmatprep.mubr.bf16.mxu0 %v2181_v47 }
 0x3c4   : > { %v1963_v57 = vadd.f32 %v1962_v56, %v6173_v60  ;;  %v1964_v54 = vpop.f32.mrb[83].mxu1  ;;  %2442 = vmatmul.mubr.bf16.gmra.mrb[140].mxu0 %v2180_v42  ;;  %v2093_v2 = vmax.f32 %v1959_v48, 0.0 }
 0x3c5   : > { %v1965_v59 = vadd.f32 %v1964_v54, %v6176_v62  ;;  %v2094_v6 = vmax.f32 %v1961_v53, 0.0 }
 0x3c6   : > { %v2095_v4 = vmax.f32 %v1963_v57, 0.0 }
 0x3c7   : > { %v2096_v7 = vmax.f32 %v1965_v59, 0.0 }
 0x3c8   : > { %v2182_v8 = vpack.c.bf16 %v2095_v4, %v2093_v2 }
 0x3c9   : > { %v2183_v12 = vpack.c.bf16 %v2096_v7, %v2094_v6  ;;  %v1968_v13 = vpop.f32.mrb[84].mxu1 }
 0x3ca   : > { %v1969_v16 = vadd.f32 %v1968_v13, %v6173_v60  ;;  %v1970_v17 = vpop.f32.mrb[85].mxu1 }
 0x3cb   : > { %v1971_v19 = vadd.f32 %v1970_v17, %v6176_v62  ;;  %v1972_v20 = vpop.f32.mrb[86].mxu1  ;;  %2451 = vmatprep.mubr.bf16.mxu0 %v2183_v12 }
 0x3cc   : > { %v1973_v22 = vadd.f32 %v1972_v20, %v6173_v60  ;;  %v1974_v24 = vpop.f32.mrb[87].mxu1  ;;  %2452 = vmatmul.mubr.bf16.gmra.mrb[144].mxu0 %v2182_v8  ;;  %v2097_v29 = vmax.f32 %v1969_v16, 0.0 }
 0x3cd   : > { %v1975_v27 = vadd.f32 %v1974_v24, %v6176_v62  ;;  %v2098_v32 = vmax.f32 %v1971_v19, 0.0 }
 0x3ce   : > { %v2099_v31 = vmax.f32 %v1973_v22, 0.0 }
 0x3cf   : > { %v2100_v33 = vmax.f32 %v1975_v27, 0.0 }
 0x3d0   : > { %v2184_v34 = vpack.c.bf16 %v2099_v31, %v2097_v29 }
 0x3d1   : > { %v2185_v35 = vpack.c.bf16 %v2100_v33, %v2098_v32  ;;  %v1978_v37 = vpop.f32.mrb[88].mxu1 }
 0x3d2   : > { %v1979_v40 = vadd.f32 %v1978_v37, %v6173_v60  ;;  %v1980_v41 = vpop.f32.mrb[89].mxu1 }
 0x3d3   : > { %v1981_v44 = vadd.f32 %v1980_v41, %v6176_v62  ;;  %v1982_v46 = vpop.f32.mrb[90].mxu1  ;;  %2461 = vmatprep.mubr.bf16.mxu0 %v2185_v35 }
 0x3d4   : > { %v1983_v42 = vadd.f32 %v1982_v46, %v6173_v60  ;;  %v1984_v43 = vpop.f32.mrb[91].mxu1  ;;  %2462 = vmatmul.mubr.bf16.gmra.mrb[148].mxu0 %v2184_v34  ;;  %v2101_v50 = vmax.f32 %v1979_v40, 0.0 }
 0x3d5   : > { %v1985_v47 = vadd.f32 %v1984_v43, %v6176_v62  ;;  %v2102_v48 = vmax.f32 %v1981_v44, 0.0 }
 0x3d6   : > { %v2103_v51 = vmax.f32 %v1983_v42, 0.0 }
 0x3d7   : > { %v2104_v49 = vmax.f32 %v1985_v47, 0.0 }
 0x3d8   : > { %v2186_v53 = vpack.c.bf16 %v2103_v51, %v2101_v50 }
 0x3d9   : > { %v2187_v56 = vpack.c.bf16 %v2104_v49, %v2102_v48  ;;  %v1988_v57 = vpop.f32.mrb[92].mxu1 }
 0x3da   : > { %v1989_v54 = vadd.f32 %v1988_v57, %v6173_v60  ;;  %v1990_v55 = vpop.f32.mrb[93].mxu1 }
 0x3db   : > { %v1991_v59 = vadd.f32 %v1990_v55, %v6176_v62  ;;  %v1992_v63 = vpop.f32.mrb[94].mxu1  ;;  %2471 = vmatprep.mubr.bf16.mxu0 %v2187_v56 }
 0x3dc   : > { %v1993_v2 = vadd.f32 %v1992_v63, %v6173_v60  ;;  %v1994_v4 = vpop.f32.mrb[95].mxu1  ;;  %2472 = vmatmul.mubr.bf16.gmra.mrb[152].mxu0 %v2186_v53  ;;  %v2105_v7 = vmax.f32 %v1989_v54, 0.0 }
 0x3dd   : > { %v1995_v6 = vadd.f32 %v1994_v4, %v6176_v62  ;;  %v2106_v11 = vmax.f32 %v1991_v59, 0.0 }
 0x3de   : > { %v2107_v8 = vmax.f32 %v1993_v2, 0.0 }
 0x3df   : > { %v2108_v12 = vmax.f32 %v1995_v6, 0.0 }
 0x3e0   : > { %v2188_v13 = vpack.c.bf16 %v2107_v8, %v2105_v7 }
 0x3e1   : > { %v2189_v14 = vpack.c.bf16 %v2108_v12, %v2106_v11  ;;  %v1998_v16 = vpop.f32.mrb[96].mxu1 }
 0x3e2   : > { %v1999_v17 = vadd.f32 %v1998_v16, %v6173_v60  ;;  %v2000_v19 = vpop.f32.mrb[97].mxu1 }
 0x3e3   : > { %v2001_v20 = vadd.f32 %v2000_v19, %v6176_v62  ;;  %v2002_v22 = vpop.f32.mrb[98].mxu1  ;;  %2481 = vmatprep.mubr.bf16.mxu0 %v2189_v14 }
 0x3e4   : > { %v2003_v24 = vadd.f32 %v2002_v22, %v6173_v60  ;;  %v2004_v26 = vpop.f32.mrb[99].mxu1  ;;  %2482 = vmatmul.mubr.bf16.gmra.mrb[156].mxu0 %v2188_v13  ;;  %v2109_v29 = vmax.f32 %v1999_v17, 0.0 }
 0x3e5   : > { %v2005_v27 = vadd.f32 %v2004_v26, %v6176_v62  ;;  %v2110_v32 = vmax.f32 %v2001_v20, 0.0 }
 0x3e6   : > { %v2111_v31 = vmax.f32 %v2003_v24, 0.0 }
 0x3e7   : > { %v2112_v33 = vmax.f32 %v2005_v27, 0.0 }
 0x3e8   : > { %v2190_v34 = vpack.c.bf16 %v2111_v31, %v2109_v29 }
 0x3e9   : > { %v2191_v35 = vpack.c.bf16 %v2112_v33, %v2110_v32  ;;  %v2008_v37 = vpop.f32.mrb[100].mxu1 }
 0x3ea   : > { %v2009_v40 = vadd.f32 %v2008_v37, %v6173_v60  ;;  %v2010_v41 = vpop.f32.mrb[101].mxu1 }
 0x3eb   : > { %v2011_v44 = vadd.f32 %v2010_v41, %v6176_v62  ;;  %v2012_v46 = vpop.f32.mrb[102].mxu1  ;;  %2491 = vmatprep.mubr.bf16.mxu0 %v2191_v35 }
 0x3ec   : > { %v2013_v42 = vadd.f32 %v2012_v46, %v6173_v60  ;;  %v2014_v43 = vpop.f32.mrb[103].mxu1  ;;  %2492 = vmatmul.mubr.bf16.gmra.mrb[160].mxu0 %v2190_v34  ;;  %v2113_v50 = vmax.f32 %v2009_v40, 0.0 }
 0x3ed   : > { %v2015_v47 = vadd.f32 %v2014_v43, %v6176_v62  ;;  %v2114_v48 = vmax.f32 %v2011_v44, 0.0 }
 0x3ee   : > { %v2115_v51 = vmax.f32 %v2013_v42, 0.0 }
 0x3ef   : > { %v2116_v49 = vmax.f32 %v2015_v47, 0.0  ;;  %v5574_v47 = vld [vmem:[#allocation2 + $0x4f4] ss:$8 sps:$4 sm:$0xff]  }
 0x3f0   : > { %v2192_v53 = vpack.c.bf16 %v2115_v51, %v2113_v50  ;;  %v5572_v51 = vld [vmem:[#allocation2 + $0x4f0] ss:$8 sps:$4 sm:$0xff]   ;;  %2893 = vmatprep.subr.bf16.mxu1 %v5574_v47 }
 0x3f1   : > { %v2193_v56 = vpack.c.bf16 %v2116_v49, %v2114_v48  ;;  %v2018_v57 = vpop.f32.mrb[104].mxu1  ;;  %2894 = vmatpush1.bf16.msra.mxu1 %v5572_v51 }
 0x3f2   : > { %v2019_v54 = vadd.f32 %v2018_v57, %v6173_v60  ;;  %v2020_v55 = vpop.f32.mrb[105].mxu1 }
 0x3f3   : > { %v2021_v59 = vadd.f32 %v2020_v55, %v6176_v62  ;;  %v2022_v63 = vpop.f32.mrb[106].mxu1  ;;  %2501 = vmatprep.mubr.bf16.mxu0 %v2193_v56 }
 0x3f4   : > { %v2023_v2 = vadd.f32 %v2022_v63, %v6173_v60  ;;  %v2024_v4 = vpop.f32.mrb[107].mxu1  ;;  %2502 = vmatmul.mubr.bf16.gmra.mrb[164].mxu0 %v2192_v53  ;;  %v2117_v7 = vmax.f32 %v2019_v54, 0.0 }
 0x3f5   : > { %v2025_v6 = vadd.f32 %v2024_v4, %v6176_v62  ;;  %v2118_v11 = vmax.f32 %v2021_v59, 0.0 }
 0x3f6   : > { %v2119_v8 = vmax.f32 %v2023_v2, 0.0 }
 0x3f7   : > { %v2120_v12 = vmax.f32 %v2025_v6, 0.0 }
 0x3f8   : > { %v2194_v13 = vpack.c.bf16 %v2119_v8, %v2117_v7 }
 0x3f9   : > { %v2195_v14 = vpack.c.bf16 %v2120_v12, %v2118_v11  ;;  %v2028_v16 = vpop.f32.mrb[108].mxu1 }
 0x3fa   : > { %v2029_v17 = vadd.f32 %v2028_v16, %v6173_v60  ;;  %v2030_v19 = vpop.f32.mrb[109].mxu1 }
 0x3fb   : > { %v2031_v20 = vadd.f32 %v2030_v19, %v6176_v62  ;;  %v2032_v22 = vpop.f32.mrb[110].mxu1  ;;  %2511 = vmatprep.mubr.bf16.mxu0 %v2195_v14 }
 0x3fc   : > { %v2033_v24 = vadd.f32 %v2032_v22, %v6173_v60  ;;  %v2034_v26 = vpop.f32.mrb[111].mxu1  ;;  %2512 = vmatmul.mubr.bf16.gmra.mrb[168].mxu0 %v2194_v13  ;;  %v2121_v29 = vmax.f32 %v2029_v17, 0.0  ;;  %v6237_v13 = vld.sshfl [vmem:[%s6752_s1 + $0x4] sm:$0x33 pattern:$0x76325410] }
 0x3fd   : > { %v2035_v27 = vadd.f32 %v2034_v26, %v6176_v62  ;;  %v2122_v32 = vmax.f32 %v2031_v20, 0.0  ;;  %v3064_v17 = vcombine.high %v6237_v13, %v6237_v13 }
 0x3fe   : > { %v2123_v31 = vmax.f32 %v2033_v24, 0.0 }
 0x3ff   : > { %v2124_v33 = vmax.f32 %v2035_v27, 0.0  ;;  %v3069_v24 = vand.u32 %v3064_v17, %v5820_v3 }
 0x400   : > { %v2196_v34 = vpack.c.bf16 %v2123_v31, %v2121_v29 }
 0x401   : > { %v2197_v35 = vpack.c.bf16 %v2124_v33, %v2122_v32  ;;  %v2038_v37 = vpop.f32.mrb[112].mxu1  ;;  %3071 = vmatprep.subr.bf16.mxu1 %v3069_v24 }
 0x402   : > { %v2039_v40 = vadd.f32 %v2038_v37, %v6173_v60  ;;  %v2040_v41 = vpop.f32.mrb[113].mxu1 }
 0x403   : > { %v2041_v44 = vadd.f32 %v2040_v41, %v6176_v62  ;;  %v2042_v46 = vpop.f32.mrb[114].mxu1  ;;  %2521 = vmatprep.mubr.bf16.mxu0 %v2197_v35 }
 0x404   : > { %v2043_v42 = vadd.f32 %v2042_v46, %v6173_v60  ;;  %v2044_v43 = vpop.f32.mrb[115].mxu1  ;;  %2522 = vmatmul.mubr.bf16.gmra.mrb[172].mxu0 %v2196_v34  ;;  %v2125_v48 = vmax.f32 %v2039_v40, 0.0 }
 0x405   : > { %v2045_v50 = vadd.f32 %v2044_v43, %v6176_v62  ;;  %v2126_v53 = vmax.f32 %v2041_v44, 0.0 }
 0x406   : > { %v2127_v49 = vmax.f32 %v2043_v42, 0.0 }
 0x407   : > { %v2128_v56 = vmax.f32 %v2045_v50, 0.0 }
 0x408   : > { %v2198_v57 = vpack.c.bf16 %v2127_v49, %v2125_v48 }
 0x409   : > { %v2199_v54 = vpack.c.bf16 %v2128_v56, %v2126_v53  ;;  %v2048_v55 = vpop.f32.mrb[116].mxu1 }
 0x40a   : > { %v2049_v59 = vadd.f32 %v2048_v55, %v6173_v60  ;;  %v2050_v63 = vpop.f32.mrb[117].mxu1 }
 0x40b   : > { %v2051_v2 = vadd.f32 %v2050_v63, %v6176_v62  ;;  %v2052_v4 = vpop.f32.mrb[118].mxu1  ;;  %2531 = vmatprep.mubr.bf16.mxu0 %v2199_v54 }
 0x40c   : > { %v2053_v6 = vadd.f32 %v2052_v4, %v6173_v60  ;;  %v2054_v7 = vpop.f32.mrb[119].mxu1  ;;  %2532 = vmatmul.mubr.bf16.gmra.mrb[176].mxu0 %v2198_v57  ;;  %v2129_v11 = vmax.f32 %v2049_v59, 0.0 }
 0x40d   : > { %v2055_v8 = vadd.f32 %v2054_v7, %v6176_v62  ;;  %v2130_v14 = vmax.f32 %v2051_v2, 0.0  ;;  %v4951_v2 = vld [vmem:[%s6754_s3 + $0x4] ss:$8 sm:$0x3] }
 0x40e   : > { %v2131_v12 = vmax.f32 %v2053_v6, 0.0  ;;  %v6254_v4 = vrot.slane %v4951_v2, %v5946_v36 }
 0x40f   : > { %v2132_v16 = vmax.f32 %v2055_v8, 0.0 }
 0x410   : > { %v2200_v19 = vpack.c.bf16 %v2131_v12, %v2129_v11 }
 0x411   : > { %v2201_v20 = vpack.c.bf16 %v2132_v16, %v2130_v14  ;;  %v2058_v22 = vpop.f32.mrb[120].mxu1 }
 0x412   : > { %v2059_v26 = vadd.f32 %v2058_v22, %v6173_v60  ;;  %v2060_v27 = vpop.f32.mrb[121].mxu1 }
 0x413   : > { %v2061_v29 = vadd.f32 %v2060_v27, %v6176_v62  ;;  %v2062_v31 = vpop.f32.mrb[122].mxu1  ;;  %2541 = vmatprep.mubr.bf16.mxu0 %v2201_v20 }
 0x414   : > { %v2063_v32 = vadd.f32 %v2062_v31, %v6173_v60  ;;  %v2064_v33 = vpop.f32.mrb[123].mxu1  ;;  %2542 = vmatmul.mubr.bf16.gmra.mrb[180].mxu0 %v2200_v19  ;;  %v2133_v35 = vmax.f32 %v2059_v26, 0.0 }
 0x415   : > { %v2065_v34 = vadd.f32 %v2064_v33, %v6176_v62  ;;  %v2134_v40 = vmax.f32 %v2061_v29, 0.0  ;;  %v3066_v29 = vand.u32 %v6237_v13, %v5820_v3 }
 0x416   : > { %v2135_v37 = vmax.f32 %v2063_v32, 0.0 }
 0x417   : > { %v2136_v41 = vmax.f32 %v2065_v34, 0.0 }
 0x418   : > { %v2202_v44 = vpack.c.bf16 %v2135_v37, %v2133_v35 }
 0x419   : > { %v2203_v46 = vpack.c.bf16 %v2136_v41, %v2134_v40  ;;  %v2068_v42 = vpop.f32.mrb[124].mxu1 }
 0x41a   : > { %v2069_v43 = vadd.f32 %v2068_v42, %v6173_v60  ;;  %v2070_v47 = vpop.f32.mrb[125].mxu1 }
 0x41b   : > { %v2071_v50 = vadd.f32 %v2070_v47, %v6176_v62  ;;  %v2072_v51 = vpop.f32.mrb[126].mxu1  ;;  %2551 = vmatprep.mubr.bf16.mxu0 %v2203_v46 }
 0x41c   : > { %v2073_v48 = vadd.f32 %v2072_v51, %v6173_v60  ;;  %v2074_v49 = vpop.f32.mrb[127].mxu1  ;;  %2552 = vmatmul.mubr.bf16.gmra.mrb[184].mxu0 %v2202_v44  ;;  %v2137_v56 = vmax.f32 %v2069_v43, 0.0  ;;  %v6257_v60 = vrot.slane %v4951_v2, %v5951_v39 }
 0x41d   : > { %v2075_v53 = vadd.f32 %v2074_v49, %v6176_v62  ;;  %v2138_v54 = vmax.f32 %v2071_v50, 0.0 }
 0x41e   : > { %v2139_v57 = vmax.f32 %v2073_v48, 0.0 }
 0x41f   : > { %v2140_v55 = vmax.f32 %v2075_v53, 0.0 }
 0x420   : > { %v2204_v59 = vpack.c.bf16 %v2139_v57, %v2137_v56 }
 0x421   : > { %v2205_v63 = vpack.c.bf16 %v2140_v55, %v2138_v54 }
 0x423   : > { %2561 = vmatprep.mubr.bf16.mxu0 %v2205_v63 }
 0x424   : > { %2562 = vmatmul.mubr.bf16.gmra.mrb[188].mxu0 %v2204_v59 }
 0x47f   : > { %v2413_v6 = vpop.f32.mrb[128].mxu0 }
 0x480   : > { %v2414_v62 = vadd.f32 %v2413_v6, %v6254_v4  ;;  %v2415_v7 = vpop.f32.mrb[129].mxu0 }
 0x481   : > { %v2416_v8 = vadd.f32 %v2415_v7, %v6257_v60  ;;  %v2417_v11 = vpop.f32.mrb[130].mxu0 }
 0x482   : > { %v2418_v12 = vadd.f32 %v2417_v11, %v6254_v4  ;;  %v2419_v14 = vpop.f32.mrb[131].mxu0  ;;  %v2572_v17 = vmax.f32 %v2414_v62, 0.0 }
 0x483   : > { %v2420_v16 = vadd.f32 %v2419_v14, %v6257_v60  ;;  %v2573_v20 = vmax.f32 %v2416_v8, 0.0 }
 0x484   : > { %v2574_v19 = vmax.f32 %v2418_v12, 0.0 }
 0x485   : > { %v2575_v22 = vmax.f32 %v2420_v16, 0.0 }
 0x486   : > { %v2671_v24 = vpack.c.bf16 %v2574_v19, %v2572_v17 }
 0x487   : > { %v2672_v26 = vpack.c.bf16 %v2575_v22, %v2573_v20  ;;  %v2423_v27 = vpop.f32.mrb[132].mxu0 }
 0x488   : > { %v2424_v31 = vadd.f32 %v2423_v27, %v6254_v4  ;;  %v2425_v32 = vpop.f32.mrb[133].mxu0 }
 0x489   : > { %v2426_v33 = vadd.f32 %v2425_v32, %v6257_v60  ;;  %v2427_v34 = vpop.f32.mrb[134].mxu0  ;;  %2895 = vmatprep.mubr.bf16.mxu1 %v2672_v26 }
 0x48a   : > { %v2428_v35 = vadd.f32 %v2427_v34, %v6254_v4  ;;  %v2429_v37 = vpop.f32.mrb[135].mxu0  ;;  %2896 = vmatmul.mubr.bf16.vlgmr.msra.gmra.mrb[128].mxu1 %v2671_v24  ;;  %v2576_v41 = vmax.f32 %v2424_v31, 0.0 }
 0x48b   : > { %v2430_v40 = vadd.f32 %v2429_v37, %v6257_v60  ;;  %3072 = vmatpush1.bf16.msra.mxu1 %v3066_v29  ;;  %v2577_v46 = vmax.f32 %v2426_v33, 0.0 }
 0x48c   : > { %v2578_v44 = vmax.f32 %v2428_v35, 0.0 }
 0x48d   : > { %v2579_v42 = vmax.f32 %v2430_v40, 0.0 }
 0x48e   : > { %v2673_v43 = vpack.c.bf16 %v2578_v44, %v2576_v41 }
 0x48f   : > { %v2674_v3 = vpack.c.bf16 %v2579_v42, %v2577_v46  ;;  %v2433_v13 = vpop.f32.mrb[136].mxu0 }
 0x490   : > { %v2434_v47 = vadd.f32 %v2433_v13, %v6254_v4  ;;  %v2435_v50 = vpop.f32.mrb[137].mxu0 }
 0x491   : > { %v2436_v51 = vadd.f32 %v2435_v50, %v6257_v60  ;;  %v2437_v48 = vpop.f32.mrb[138].mxu0  ;;  %2905 = vmatprep.mubr.bf16.mxu1 %v2674_v3 }
 0x492   : > { %v2438_v49 = vadd.f32 %v2437_v48, %v6254_v4  ;;  %v2439_v53 = vpop.f32.mrb[139].mxu0  ;;  %2906 = vmatmul.mubr.bf16.gmra.mrb[132].mxu1 %v2673_v43  ;;  %v2580_v57 = vmax.f32 %v2434_v47, 0.0 }
 0x493   : > { %v2440_v56 = vadd.f32 %v2439_v53, %v6257_v60  ;;  %v2581_v55 = vmax.f32 %v2436_v51, 0.0 }
 0x494   : > { %v2582_v54 = vmax.f32 %v2438_v49, 0.0 }
 0x495   : > { %v2583_v59 = vmax.f32 %v2440_v56, 0.0 }
 0x496   : > { %v2675_v63 = vpack.c.bf16 %v2582_v54, %v2580_v57 }
 0x497   : > { %v2676_v2 = vpack.c.bf16 %v2583_v59, %v2581_v55  ;;  %v2443_v6 = vpop.f32.mrb[140].mxu0 }
 0x498   : > { %v2444_v62 = vadd.f32 %v2443_v6, %v6254_v4  ;;  %v2445_v7 = vpop.f32.mrb[141].mxu0 }
 0x499   : > { %v2446_v8 = vadd.f32 %v2445_v7, %v6257_v60  ;;  %v2447_v11 = vpop.f32.mrb[142].mxu0  ;;  %2915 = vmatprep.mubr.bf16.mxu1 %v2676_v2 }
 0x49a   : > { %v2448_v12 = vadd.f32 %v2447_v11, %v6254_v4  ;;  %v2449_v14 = vpop.f32.mrb[143].mxu0  ;;  %2916 = vmatmul.mubr.bf16.gmra.mrb[136].mxu1 %v2675_v63  ;;  %v2584_v17 = vmax.f32 %v2444_v62, 0.0 }
 0x49b   : > { %v2450_v16 = vadd.f32 %v2449_v14, %v6257_v60  ;;  %v2585_v20 = vmax.f32 %v2446_v8, 0.0 }
 0x49c   : > { %v2586_v19 = vmax.f32 %v2448_v12, 0.0 }
 0x49d   : > { %v2587_v22 = vmax.f32 %v2450_v16, 0.0 }
 0x49e   : > { %v2677_v24 = vpack.c.bf16 %v2586_v19, %v2584_v17 }
 0x49f   : > { %v2678_v26 = vpack.c.bf16 %v2587_v22, %v2585_v20  ;;  %v2453_v27 = vpop.f32.mrb[144].mxu0 }
 0x4a0   : > { %v2454_v29 = vadd.f32 %v2453_v27, %v6254_v4  ;;  %v2455_v31 = vpop.f32.mrb[145].mxu0 }
 0x4a1   : > { %v2456_v32 = vadd.f32 %v2455_v31, %v6257_v60  ;;  %v2457_v33 = vpop.f32.mrb[146].mxu0  ;;  %2925 = vmatprep.mubr.bf16.mxu1 %v2678_v26 }
 0x4a2   : > { %v2458_v34 = vadd.f32 %v2457_v33, %v6254_v4  ;;  %v2459_v35 = vpop.f32.mrb[147].mxu0  ;;  %2926 = vmatmul.mubr.bf16.gmra.mrb[140].mxu1 %v2677_v24  ;;  %v2588_v40 = vmax.f32 %v2454_v29, 0.0 }
 0x4a3   : > { %v2460_v37 = vadd.f32 %v2459_v35, %v6257_v60  ;;  %v2589_v44 = vmax.f32 %v2456_v32, 0.0 }
 0x4a4   : > { %v2590_v41 = vmax.f32 %v2458_v34, 0.0 }
 0x4a5   : > { %v2591_v46 = vmax.f32 %v2460_v37, 0.0 }
 0x4a6   : > { %v2679_v42 = vpack.c.bf16 %v2590_v41, %v2588_v40 }
 0x4a7   : > { %v2680_v43 = vpack.c.bf16 %v2591_v46, %v2589_v44  ;;  %v2463_v3 = vpop.f32.mrb[148].mxu0 }
 0x4a8   : > { %v2464_v13 = vadd.f32 %v2463_v3, %v6254_v4  ;;  %v2465_v47 = vpop.f32.mrb[149].mxu0 }
 0x4a9   : > { %v2466_v50 = vadd.f32 %v2465_v47, %v6257_v60  ;;  %v2467_v51 = vpop.f32.mrb[150].mxu0  ;;  %2935 = vmatprep.mubr.bf16.mxu1 %v2680_v43 }
 0x4aa   : > { %v2468_v48 = vadd.f32 %v2467_v51, %v6254_v4  ;;  %v2469_v49 = vpop.f32.mrb[151].mxu0  ;;  %2936 = vmatmul.mubr.bf16.gmra.mrb[144].mxu1 %v2679_v42  ;;  %v2592_v56 = vmax.f32 %v2464_v13, 0.0 }
 0x4ab   : > { %v2470_v53 = vadd.f32 %v2469_v49, %v6257_v60  ;;  %v2593_v54 = vmax.f32 %v2466_v50, 0.0 }
 0x4ac   : > { %v2594_v57 = vmax.f32 %v2468_v48, 0.0 }
 0x4ad   : > { %v2595_v55 = vmax.f32 %v2470_v53, 0.0 }
 0x4ae   : > { %v2681_v59 = vpack.c.bf16 %v2594_v57, %v2592_v56 }
 0x4af   : > { %v2682_v63 = vpack.c.bf16 %v2595_v55, %v2593_v54  ;;  %v2473_v2 = vpop.f32.mrb[152].mxu0 }
 0x4b0   : > { %v2474_v6 = vadd.f32 %v2473_v2, %v6254_v4  ;;  %v2475_v62 = vpop.f32.mrb[153].mxu0 }
 0x4b1   : > { %v2476_v7 = vadd.f32 %v2475_v62, %v6257_v60  ;;  %v2477_v8 = vpop.f32.mrb[154].mxu0  ;;  %2945 = vmatprep.mubr.bf16.mxu1 %v2682_v63 }
 0x4b2   : > { %v2478_v11 = vadd.f32 %v2477_v8, %v6254_v4  ;;  %v2479_v12 = vpop.f32.mrb[155].mxu0  ;;  %2946 = vmatmul.mubr.bf16.gmra.mrb[148].mxu1 %v2681_v59  ;;  %v2596_v16 = vmax.f32 %v2474_v6, 0.0 }
 0x4b3   : > { %v2480_v14 = vadd.f32 %v2479_v12, %v6257_v60  ;;  %v2597_v19 = vmax.f32 %v2476_v7, 0.0 }
 0x4b4   : > { %v2598_v17 = vmax.f32 %v2478_v11, 0.0 }
 0x4b5   : > { %v2599_v20 = vmax.f32 %v2480_v14, 0.0 }
 0x4b6   : > { %v2683_v22 = vpack.c.bf16 %v2598_v17, %v2596_v16 }
 0x4b7   : > { %v2684_v24 = vpack.c.bf16 %v2599_v20, %v2597_v19  ;;  %v2483_v26 = vpop.f32.mrb[156].mxu0 }
 0x4b8   : > { %v2484_v27 = vadd.f32 %v2483_v26, %v6254_v4  ;;  %v2485_v29 = vpop.f32.mrb[157].mxu0 }
 0x4b9   : > { %v2486_v31 = vadd.f32 %v2485_v29, %v6257_v60  ;;  %v2487_v32 = vpop.f32.mrb[158].mxu0  ;;  %2955 = vmatprep.mubr.bf16.mxu1 %v2684_v24 }
 0x4ba   : > { %v2488_v33 = vadd.f32 %v2487_v32, %v6254_v4  ;;  %v2489_v34 = vpop.f32.mrb[159].mxu0  ;;  %2956 = vmatmul.mubr.bf16.gmra.mrb[152].mxu1 %v2683_v22  ;;  %v2600_v37 = vmax.f32 %v2484_v27, 0.0 }
 0x4bb   : > { %v2490_v35 = vadd.f32 %v2489_v34, %v6257_v60  ;;  %v2601_v41 = vmax.f32 %v2486_v31, 0.0 }
 0x4bc   : > { %v2602_v40 = vmax.f32 %v2488_v33, 0.0 }
 0x4bd   : > { %v2603_v44 = vmax.f32 %v2490_v35, 0.0 }
 0x4be   : > { %v2685_v46 = vpack.c.bf16 %v2602_v40, %v2600_v37 }
 0x4bf   : > { %v2686_v42 = vpack.c.bf16 %v2603_v44, %v2601_v41  ;;  %v2493_v43 = vpop.f32.mrb[160].mxu0 }
 0x4c0   : > { %v2494_v3 = vadd.f32 %v2493_v43, %v6254_v4  ;;  %v2495_v13 = vpop.f32.mrb[161].mxu0 }
 0x4c1   : > { %v2496_v47 = vadd.f32 %v2495_v13, %v6257_v60  ;;  %v2497_v50 = vpop.f32.mrb[162].mxu0  ;;  %2965 = vmatprep.mubr.bf16.mxu1 %v2686_v42 }
 0x4c2   : > { %v2498_v51 = vadd.f32 %v2497_v50, %v6254_v4  ;;  %v2499_v48 = vpop.f32.mrb[163].mxu0  ;;  %2966 = vmatmul.mubr.bf16.gmra.mrb[156].mxu1 %v2685_v46  ;;  %v2604_v53 = vmax.f32 %v2494_v3, 0.0 }
 0x4c3   : > { %v2500_v49 = vadd.f32 %v2499_v48, %v6257_v60  ;;  %v2605_v57 = vmax.f32 %v2496_v47, 0.0 }
 0x4c4   : > { %v2606_v56 = vmax.f32 %v2498_v51, 0.0 }
 0x4c5   : > { %v2607_v54 = vmax.f32 %v2500_v49, 0.0 }
 0x4c6   : > { %v2687_v55 = vpack.c.bf16 %v2606_v56, %v2604_v53 }
 0x4c7   : > { %v2688_v59 = vpack.c.bf16 %v2607_v54, %v2605_v57  ;;  %v2503_v63 = vpop.f32.mrb[164].mxu0 }
 0x4c8   : > { %v2504_v2 = vadd.f32 %v2503_v63, %v6254_v4  ;;  %v2505_v6 = vpop.f32.mrb[165].mxu0 }
 0x4c9   : > { %v2506_v62 = vadd.f32 %v2505_v6, %v6257_v60  ;;  %v2507_v7 = vpop.f32.mrb[166].mxu0  ;;  %2975 = vmatprep.mubr.bf16.mxu1 %v2688_v59 }
 0x4ca   : > { %v2508_v8 = vadd.f32 %v2507_v7, %v6254_v4  ;;  %v2509_v11 = vpop.f32.mrb[167].mxu0  ;;  %2976 = vmatmul.mubr.bf16.gmra.mrb[160].mxu1 %v2687_v55  ;;  %v2608_v14 = vmax.f32 %v2504_v2, 0.0 }
 0x4cb   : > { %v2510_v12 = vadd.f32 %v2509_v11, %v6257_v60  ;;  %v2609_v17 = vmax.f32 %v2506_v62, 0.0  ;;  %v5575_v11 = vld [vmem:[#allocation2 + $0x500] ss:$8 sps:$4 sm:$0xff]  }
 0x4cc   : > { %v2610_v16 = vmax.f32 %v2508_v8, 0.0 }
 0x4cd   : > { %v2611_v19 = vmax.f32 %v2510_v12, 0.0  ;;  %v5577_v12 = vld [vmem:[#allocation2 + $0x504] ss:$8 sps:$4 sm:$0xff]  }
 0x4ce   : > { %v2689_v20 = vpack.c.bf16 %v2610_v16, %v2608_v14  ;;  %3643 = vmatprep.subr.bf16.mxu0 %v5577_v12 }
 0x4cf   : > { %v2690_v22 = vpack.c.bf16 %v2611_v19, %v2609_v17  ;;  %v2513_v24 = vpop.f32.mrb[168].mxu0  ;;  %3644 = vmatpush1.bf16.msra.mxu0 %v5575_v11 }
 0x4d0   : > { %v2514_v26 = vadd.f32 %v2513_v24, %v6254_v4  ;;  %v2515_v27 = vpop.f32.mrb[169].mxu0 }
 0x4d1   : > { %v2516_v29 = vadd.f32 %v2515_v27, %v6257_v60  ;;  %v2517_v31 = vpop.f32.mrb[170].mxu0  ;;  %2985 = vmatprep.mubr.bf16.mxu1 %v2690_v22 }
 0x4d2   : > { %v2518_v32 = vadd.f32 %v2517_v31, %v6254_v4  ;;  %v2519_v33 = vpop.f32.mrb[171].mxu0  ;;  %2986 = vmatmul.mubr.bf16.gmra.mrb[164].mxu1 %v2689_v20  ;;  %v2612_v35 = vmax.f32 %v2514_v26, 0.0 }
 0x4d3   : > { %v2520_v34 = vadd.f32 %v2519_v33, %v6257_v60  ;;  %v2613_v40 = vmax.f32 %v2516_v29, 0.0 }
 0x4d4   : > { %v2614_v37 = vmax.f32 %v2518_v32, 0.0 }
 0x4d5   : > { %v2615_v41 = vmax.f32 %v2520_v34, 0.0 }
 0x4d6   : > { %v2691_v44 = vpack.c.bf16 %v2614_v37, %v2612_v35  ;;  %v5578_v35 = vld [vmem:[#allocation2 + $0x510] ss:$8 sps:$4 sm:$0xff]   ;;  %v5580_v37 = vld [vmem:[#allocation2 + $0x514] ss:$8 sps:$4 sm:$0xff]  }
 0x4d7   : > { %v2692_v46 = vpack.c.bf16 %v2615_v41, %v2613_v40  ;;  %v2523_v42 = vpop.f32.mrb[172].mxu0  ;;  %3645 = vmatprep.subr.bf16.mxu0 %v5580_v37  ;;  %v5593_v37 = vld [vmem:[#allocation2 + $0x560] ss:$8 sps:$4 sm:$0xff]  }
 0x4d8   : > { %v2524_v43 = vadd.f32 %v2523_v42, %v6254_v4  ;;  %v2525_v3 = vpop.f32.mrb[173].mxu0  ;;  %3646 = vmatpush1.bf16.msra.mxu0 %v5578_v35  ;;  %v5590_v35 = vld [vmem:[#allocation2 + $0x550] ss:$8 sps:$4 sm:$0xff]  }
 0x4d9   : > { %v2526_v13 = vadd.f32 %v2525_v3, %v6257_v60  ;;  %v2527_v47 = vpop.f32.mrb[174].mxu0  ;;  %2995 = vmatprep.mubr.bf16.mxu1 %v2692_v46 }
 0x4da   : > { %v2528_v50 = vadd.f32 %v2527_v47, %v6254_v4  ;;  %v2529_v51 = vpop.f32.mrb[175].mxu0  ;;  %2996 = vmatmul.mubr.bf16.gmra.mrb[168].mxu1 %v2691_v44  ;;  %v2616_v49 = vmax.f32 %v2524_v43, 0.0 }
 0x4db   : > { %v2530_v48 = vadd.f32 %v2529_v51, %v6257_v60  ;;  %v2617_v56 = vmax.f32 %v2526_v13, 0.0 }
 0x4dc   : > { %v2618_v53 = vmax.f32 %v2528_v50, 0.0 }
 0x4dd   : > { %v2619_v57 = vmax.f32 %v2530_v48, 0.0 }
 0x4de   : > { %v2693_v54 = vpack.c.bf16 %v2618_v53, %v2616_v49 }
 0x4df   : > { %v2694_v55 = vpack.c.bf16 %v2619_v57, %v2617_v56  ;;  %v2533_v59 = vpop.f32.mrb[176].mxu0  ;;  %v5581_v56 = vld [vmem:[#allocation2 + $0x520] ss:$8 sps:$4 sm:$0xff]   ;;  %v5583_v57 = vld [vmem:[#allocation2 + $0x524] ss:$8 sps:$4 sm:$0xff]  }
 0x4e0   : > { %v2534_v63 = vadd.f32 %v2533_v59, %v6254_v4  ;;  %v2535_v2 = vpop.f32.mrb[177].mxu0  ;;  %3647 = vmatprep.subr.bf16.mxu0 %v5583_v57 }
 0x4e1   : > { %v2536_v6 = vadd.f32 %v2535_v2, %v6257_v60  ;;  %v2537_v62 = vpop.f32.mrb[178].mxu0  ;;  %3005 = vmatprep.mubr.bf16.mxu1 %v2694_v55  ;;  %3648 = vmatpush1.bf16.msra.mxu0 %v5581_v56 }
 0x4e2   : > { %v2538_v7 = vadd.f32 %v2537_v62, %v6254_v4  ;;  %v2539_v8 = vpop.f32.mrb[179].mxu0  ;;  %3006 = vmatmul.mubr.bf16.gmra.mrb[172].mxu1 %v2693_v54  ;;  %v2620_v16 = vmax.f32 %v2534_v63, 0.0 }
 0x4e3   : > { %v2540_v14 = vadd.f32 %v2539_v8, %v6257_v60  ;;  %v2621_v19 = vmax.f32 %v2536_v6, 0.0 }
 0x4e4   : > { %v2622_v17 = vmax.f32 %v2538_v7, 0.0 }
 0x4e5   : > { %v2623_v20 = vmax.f32 %v2540_v14, 0.0 }
 0x4e6   : > { %v2695_v22 = vpack.c.bf16 %v2622_v17, %v2620_v16 }
 0x4e7   : > { %v2696_v24 = vpack.c.bf16 %v2623_v20, %v2621_v19  ;;  %v2543_v26 = vpop.f32.mrb[180].mxu0  ;;  %v5584_v19 = vld [vmem:[#allocation2 + $0x530] ss:$8 sps:$4 sm:$0xff]   ;;  %v5586_v20 = vld [vmem:[#allocation2 + $0x534] ss:$8 sps:$4 sm:$0xff]  }
 0x4e8   : > { %v2544_v27 = vadd.f32 %v2543_v26, %v6254_v4  ;;  %v2545_v29 = vpop.f32.mrb[181].mxu0  ;;  %3649 = vmatprep.subr.bf16.mxu0 %v5586_v20 }
 0x4e9   : > { %v2546_v31 = vadd.f32 %v2545_v29, %v6257_v60  ;;  %v2547_v32 = vpop.f32.mrb[182].mxu0  ;;  %3015 = vmatprep.mubr.bf16.mxu1 %v2696_v24  ;;  %3650 = vmatpush1.bf16.msra.mxu0 %v5584_v19 }
 0x4ea   : > { %v2548_v33 = vadd.f32 %v2547_v32, %v6254_v4  ;;  %v2549_v34 = vpop.f32.mrb[183].mxu0  ;;  %3016 = vmatmul.mubr.bf16.gmra.mrb[176].mxu1 %v2695_v22  ;;  %v2624_v41 = vmax.f32 %v2544_v27, 0.0 }
 0x4eb   : > { %v2550_v40 = vadd.f32 %v2549_v34, %v6257_v60  ;;  %v2625_v46 = vmax.f32 %v2546_v31, 0.0  ;;  %v5589_v34 = vld [vmem:[#allocation2 + $0x544] ss:$8 sps:$4 sm:$0xff]  }
 0x4ec   : > { %v2626_v44 = vmax.f32 %v2548_v33, 0.0  ;;  %v5587_v33 = vld [vmem:[#allocation2 + $0x540] ss:$8 sps:$4 sm:$0xff]   ;;  %3651 = vmatprep.subr.bf16.mxu0 %v5589_v34 }
 0x4ed   : > { %v2627_v42 = vmax.f32 %v2550_v40, 0.0  ;;  %3652 = vmatpush1.bf16.msra.mxu0 %v5587_v33  ;;  %v5598_v40 = vld [vmem:[#allocation2 + $0x574] ss:$8 sps:$4 sm:$0xff]  }
 0x4ee   : > { %v2697_v43 = vpack.c.bf16 %v2626_v44, %v2624_v41  ;;  %v5596_v41 = vld [vmem:[#allocation2 + $0x570] ss:$8 sps:$4 sm:$0xff]   ;;  %v5601_v44 = vld [vmem:[#allocation2 + $0x584] ss:$8 sps:$4 sm:$0xff]  }
 0x4ef   : > { %v2698_v3 = vpack.c.bf16 %v2627_v42, %v2625_v46  ;;  %v2553_v13 = vpop.f32.mrb[184].mxu0  ;;  %v5599_v46 = vld [vmem:[#allocation2 + $0x580] ss:$8 sps:$4 sm:$0xff]   ;;  %v5604_v42 = vld [vmem:[#allocation2 + $0x594] ss:$8 sps:$4 sm:$0xff]  }
 0x4f0   : > { %v2554_v47 = vadd.f32 %v2553_v13, %v6254_v4  ;;  %v2555_v50 = vpop.f32.mrb[185].mxu0  ;;  %v5610_v13 = vld [vmem:[#allocation2 + $0x5b4] ss:$8 sps:$4 sm:$0xff]  }
 0x4f1   : > { %v2556_v51 = vadd.f32 %v2555_v50, %v6257_v60  ;;  %v2557_v48 = vpop.f32.mrb[186].mxu0  ;;  %3025 = vmatprep.mubr.bf16.mxu1 %v2698_v3  ;;  %v5605_v3 = vld [vmem:[#allocation2 + $0x5a0] ss:$8 sps:$4 sm:$0xff]  }
 0x4f2   : > { %v2558_v49 = vadd.f32 %v2557_v48, %v6254_v4  ;;  %v2559_v53 = vpop.f32.mrb[187].mxu0  ;;  %3026 = vmatmul.mubr.bf16.gmra.mrb[180].mxu1 %v2697_v43  ;;  %v2628_v55 = vmax.f32 %v2554_v47, 0.0  ;;  %v5602_v43 = vld [vmem:[#allocation2 + $0x590] ss:$8 sps:$4 sm:$0xff]   ;;  %v5611_v50 = vld [vmem:[#allocation2 + $0x5c0] ss:$8 sps:$4 sm:$0xff]  }
 0x4f3   : > { %v2560_v54 = vadd.f32 %v2559_v53, %v6257_v60  ;;  %v2629_v63 = vmax.f32 %v2556_v51, 0.0  ;;  %v5608_v47 = vld [vmem:[#allocation2 + $0x5b0] ss:$8 sps:$4 sm:$0xff]   ;;  %v5616_v51 = vld [vmem:[#allocation2 + $0x5d4] ss:$8 sps:$4 sm:$0xff]  }
 0x4f4   : > { %v2630_v59 = vmax.f32 %v2558_v49, 0.0  ;;  %v5614_v48 = vld [vmem:[#allocation2 + $0x5d0] ss:$8 sps:$4 sm:$0xff]   ;;  %v5617_v49 = vld [vmem:[#allocation2 + $0x5e0] ss:$8 sps:$4 sm:$0xff]  }
 0x4f5   : > { %v2631_v2 = vmax.f32 %v2560_v54, 0.0 }
 0x4f6   : > { %v2699_v6 = vpack.c.bf16 %v2630_v59, %v2628_v55 }
 0x4f7   : > { %v2700_v62 = vpack.c.bf16 %v2631_v2, %v2629_v63  ;;  %v2563_v7 = vpop.f32.mrb[188].mxu0  ;;  %v5623_v2 = vld [vmem:[#allocation2 + $0x600] ss:$8 sps:$4 sm:$0xff]  }
 0x4f8   : > { %v2564_v8 = vadd.f32 %v2563_v7, %v6254_v4  ;;  %v2565_v11 = vpop.f32.mrb[189].mxu0  ;;  %v5628_v7 = vld [vmem:[#allocation2 + $0x614] ss:$8 sps:$4 sm:$0xff]  }
 0x4f9   : > { %v2566_v12 = vadd.f32 %v2565_v11, %v6257_v60  ;;  %v2567_v14 = vpop.f32.mrb[190].mxu0  ;;  %3035 = vmatprep.mubr.bf16.mxu1 %v2700_v62 }
 0x4fa   : > { %v2568_v16 = vadd.f32 %v2567_v14, %v6254_v4  ;;  %v2569_v17 = vpop.f32.mrb[191].mxu0  ;;  %3036 = vmatmul.mubr.bf16.gmra.mrb[184].mxu1 %v2699_v6  ;;  %v2632_v24 = vmax.f32 %v2564_v8, 0.0  ;;  %v5592_v4 = vld [vmem:[#allocation2 + $0x554] ss:$8 sps:$4 sm:$0xff]  }
 0x4fb   : > { %v2570_v22 = vadd.f32 %v2569_v17, %v6257_v60  ;;  %v2633_v27 = vmax.f32 %v2566_v12, 0.0  ;;  %3653 = vmatprep.subr.bf16.mxu0 %v5592_v4  ;;  %v5595_v60 = vld [vmem:[#allocation2 + $0x564] ss:$8 sps:$4 sm:$0xff]   ;;  %v5626_v17 = vld [vmem:[#allocation2 + $0x610] ss:$8 sps:$4 sm:$0xff]  }
 0x4fc   : > { %v2634_v26 = vmax.f32 %v2568_v16, 0.0  ;;  %3654 = vmatpush1.bf16.msra.mxu0 %v5590_v35  ;;  %v5634_v4 = vld [vmem:[#allocation2 + $0x634] ss:$8 sps:$4 sm:$0xff]  }
 0x4fd   : > { %v2635_v29 = vmax.f32 %v2570_v22, 0.0  ;;  %3655 = vmatprep.subr.bf16.mxu0 %v5595_v60  ;;  %v5631_v22 = vld [vmem:[#allocation2 + $0x624] ss:$8 sps:$4 sm:$0xff]  }
 0x4fe   : > { %v2701_v31 = vpack.c.bf16 %v2634_v26, %v2632_v24 }
 0x4ff   : > { %v2702_v32 = vpack.c.bf16 %v2635_v29, %v2633_v27 }
 0x500   : > { %3656 = vmatpush1.bf16.msra.mxu0 %v5593_v37 }
 0x501   : > { %3045 = vmatprep.mubr.bf16.mxu1 %v2702_v32  ;;  %3657 = vmatprep.subr.bf16.mxu0 %v5598_v40  ;;  %v5629_v32 = vld [vmem:[#allocation2 + $0x620] ss:$8 sps:$4 sm:$0xff]  }
 0x502   : > { %3046 = vmatmul.mubr.bf16.gmra.mrb[188].mxu1 %v2701_v31 }
 0x503   : > { %3103 = vmatprep.mubr.bf16.mxu1 %v5730_v0 }
 0x504   : > { %3658 = vmatpush1.bf16.msra.mxu0 %v5596_v41 }
 0x505   : > { %3659 = vmatprep.subr.bf16.mxu0 %v5601_v44  ;;  %v5632_v44 = vld [vmem:[#allocation2 + $0x630] ss:$8 sps:$4 sm:$0xff]  }
 0x508   : > { %3660 = vmatpush1.bf16.msra.mxu0 %v5599_v46 }
 0x509   : > { %3661 = vmatprep.subr.bf16.mxu0 %v5604_v42 }
 0x50a   : > { %5018 = vmatmul.mubr.msk.bf16.vlgmr.msra.gmra.mrb[128].mxu1 %vm341_vm2, %v5837_v10  ;;  %v5607_v10 = vld [vmem:[#allocation2 + $0x5a4] ss:$8 sps:$4 sm:$0xff]  }
 0x50b   : > { %3113 = vmatprep.mubr.bf16.mxu1 %v5730_v0 }
 0x50c   : > { %3662 = vmatpush1.bf16.msra.mxu0 %v5602_v43  ;;  %v5637_v43 = vld [vmem:[#allocation2 + $0x644] ss:$8 sps:$4 sm:$0xff]  }
 0x50d   : > { %3663 = vmatprep.subr.bf16.mxu0 %v5607_v10 }
 0x510   : > { %3664 = vmatpush1.bf16.msra.mxu0 %v5605_v3 }
 0x511   : > { %3665 = vmatprep.subr.bf16.mxu0 %v5610_v13 }
 0x512   : > { %5019 = vmatmul.mubr.msk.bf16.gmra.mrb[132].mxu1 %vm341_vm2, %v5844_v15  ;;  %v5613_v15 = vld [vmem:[#allocation2 + $0x5c4] ss:$8 sps:$4 sm:$0xff]  }
 0x513   : > { %3123 = vmatprep.mubr.bf16.mxu1 %v5730_v0 }
 0x514   : > { %3666 = vmatpush1.bf16.msra.mxu0 %v5608_v47 }
 0x515   : > { %3667 = vmatprep.subr.bf16.mxu0 %v5613_v15 }
 0x518   : > { %3668 = vmatpush1.bf16.msra.mxu0 %v5611_v50  ;;  %v5635_v50 = vld [vmem:[#allocation2 + $0x640] ss:$8 sps:$4 sm:$0xff]  }
 0x519   : > { %3669 = vmatprep.subr.bf16.mxu0 %v5616_v51 }
 0x51a   : > { %5020 = vmatmul.mubr.msk.bf16.gmra.mrb[136].mxu1 %vm341_vm2, %v5851_v23  ;;  %v5619_v23 = vld [vmem:[#allocation2 + $0x5e4] ss:$8 sps:$4 sm:$0xff]  }
 0x51b   : > { %3133 = vmatprep.mubr.bf16.mxu1 %v5730_v0 }
 0x51c   : > { %3670 = vmatpush1.bf16.msra.mxu0 %v5614_v48 }
 0x51d   : > { %3671 = vmatprep.subr.bf16.mxu0 %v5619_v23  ;;  %v5640_v23 = vld [vmem:[#allocation2 + $0x654] ss:$8 sps:$4 sm:$0xff]  }
 0x520   : > { %3672 = vmatpush1.bf16.msra.mxu0 %v5617_v49 }
 0x522   : > { %5021 = vmatmul.mubr.msk.bf16.gmra.mrb[140].mxu1 %vm341_vm2, %v5858_v30  ;;  %v5622_v30 = vld [vmem:[#allocation2 + $0x5f4] ss:$8 sps:$4 sm:$0xff]  }
 0x523   : > { %3143 = vmatprep.mubr.bf16.mxu1 %v5730_v0  ;;  %3673 = vmatprep.subr.bf16.mxu0 %v5622_v30 }
 0x52a   : > { %5022 = vmatmul.mubr.msk.bf16.gmra.mrb[144].mxu1 %vm341_vm2, %v5865_v38  ;;  %v5620_v38 = vld [vmem:[#allocation2 + $0x5f0] ss:$8 sps:$4 sm:$0xff]  }
 0x52b   : > { %3153 = vmatprep.mubr.bf16.mxu1 %v5730_v0  ;;  %3674 = vmatpush1.bf16.msra.mxu0 %v5620_v38 }
 0x532   : > { %5023 = vmatmul.mubr.msk.bf16.gmra.mrb[148].mxu1 %vm341_vm2, %v5872_v45  ;;  %v5625_v45 = vld [vmem:[#allocation2 + $0x604] ss:$8 sps:$4 sm:$0xff]  }
 0x533   : > { %3163 = vmatprep.mubr.bf16.mxu1 %v5730_v0  ;;  %4138 = vmatprep.subr.bf16.mxu0 %v5625_v45 }
 0x53a   : > { %5024 = vmatmul.mubr.msk.bf16.gmra.mrb[152].mxu1 %vm341_vm2, %v5879_v52  ;;  %v5034_v52 = vld [vmem:[%s6754_s3 + $0x5] ss:$8 sm:$0x3] }
 0x53b   : > { %3173 = vmatprep.mubr.bf16.mxu1 %v5730_v0 }
 0x542   : > { %5025 = vmatmul.mubr.msk.bf16.gmra.mrb[156].mxu1 %vm341_vm2, %v5886_v58  ;;  %v6377_v58 = vrot.slane %v5034_v52, %v5946_v36 }
 0x543   : > { %3183 = vmatprep.mubr.bf16.mxu1 %v5730_v0 }
 0x54a   : > { %5026 = vmatmul.mubr.msk.bf16.gmra.mrb[160].mxu1 %vm341_vm2, %v5893_v61  ;;  %v6380_v61 = vrot.slane %v5034_v52, %v5951_v39 }
 0x54b   : > { %3193 = vmatprep.mubr.bf16.mxu1 %v5730_v0 }
 0x552   : > { %5027 = vmatmul.mubr.msk.bf16.gmra.mrb[164].mxu1 %vm341_vm2, %v5900_v1 }
 0x553   : > { %3203 = vmatprep.mubr.bf16.mxu1 %v5730_v0 }
 0x55a   : > { %5028 = vmatmul.mubr.msk.bf16.gmra.mrb[168].mxu1 %vm341_vm2, %v5907_v5 }
 0x55b   : > { %3213 = vmatprep.mubr.bf16.mxu1 %v5730_v0 }
 0x562   : > { %5029 = vmatmul.mubr.msk.bf16.gmra.mrb[172].mxu1 %vm341_vm2, %v5914_v9 }
 0x563   : > { %3223 = vmatprep.mubr.bf16.mxu1 %v5730_v0 }
 0x56a   : > { %5030 = vmatmul.mubr.msk.bf16.gmra.mrb[176].mxu1 %vm341_vm2, %v5921_v18 }
 0x56b   : > { %3233 = vmatprep.mubr.bf16.mxu1 %v5730_v0 }
 0x572   : > { %5031 = vmatmul.mubr.msk.bf16.gmra.mrb[180].mxu1 %vm341_vm2, %v5928_v21 }
 0x573   : > { %3243 = vmatprep.mubr.bf16.mxu1 %v5730_v0 }
 0x57a   : > { %5032 = vmatmul.mubr.msk.bf16.gmra.mrb[184].mxu1 %vm341_vm2, %v5935_v25 }
 0x57b   : > { %3253 = vmatprep.mubr.bf16.mxu1 %v5730_v0 }
 0x582   : > { %5033 = vmatmul.mubr.msk.bf16.gmra.mrb[188].mxu1 %vm341_vm2, %v5942_v28 }
 0x5dd   : > { %v3105_v1 = vpop.f32.mrb[128].mxu1 }
 0x5de   : > { %v3277_v5 = vadd.f32 %v6377_v58, %v3105_v1  ;;  %v3107_v9 = vpop.f32.mrb[129].mxu1  ;;  %v5638_v1 = vld [vmem:[#allocation2 + $0x650] ss:$8 sps:$4 sm:$0xff]  }
 0x5df   : > { %v3278_v0 = vadd.f32 %v6380_v61, %v3107_v9  ;;  %v3109_v18 = vpop.f32.mrb[130].mxu1 }
 0x5e0   : > { %v3279_v21 = vadd.f32 %v6377_v58, %v3109_v18  ;;  %v3111_v25 = vpop.f32.mrb[131].mxu1  ;;  %v3341_v53 = vmax.f32 %v3277_v5, 0.0 }
 0x5e1   : > { %v3280_v28 = vadd.f32 %v6380_v61, %v3111_v25  ;;  %v3342_v57 = vmax.f32 %v3278_v0, 0.0  ;;  %v5643_v0 = vld [vmem:[#allocation2 + $0x664] ss:$8 sps:$4 sm:$0xff]  }
 0x5e2   : > { %v3343_v56 = vmax.f32 %v3279_v21, 0.0 }
 0x5e3   : > { %v3344_v54 = vmax.f32 %v3280_v28, 0.0 }
 0x5e4   : > { %v3438_v55 = vpack.c.bf16 %v3343_v56, %v3341_v53  ;;  %v5641_v56 = vld [vmem:[#allocation2 + $0x660] ss:$8 sps:$4 sm:$0xff]  }
 0x5e5   : > { %v3439_v59 = vpack.c.bf16 %v3344_v54, %v3342_v57  ;;  %v3115_v63 = vpop.f32.mrb[132].mxu1 }
 0x5e6   : > { %v3281_v6 = vadd.f32 %v6377_v58, %v3115_v63  ;;  %v3117_v62 = vpop.f32.mrb[133].mxu1 }
 0x5e7   : > { %v3282_v8 = vadd.f32 %v6380_v61, %v3117_v62  ;;  %v3119_v11 = vpop.f32.mrb[134].mxu1  ;;  %3675 = vmatprep.mubr.bf16.mxu0 %v3439_v59 }
 0x5e8   : > { %v3283_v12 = vadd.f32 %v6377_v58, %v3119_v11  ;;  %v3121_v14 = vpop.f32.mrb[135].mxu1  ;;  %3676 = vmatmul.mubr.bf16.vlgmr.msra.gmra.mrb[192].mxu0 %v3438_v55  ;;  %v3345_v19 = vmax.f32 %v3281_v6, 0.0  ;;  %v5646_v55 = vld [vmem:[#allocation2 + $0x674] ss:$8 sps:$4 sm:$0xff]  }
 0x5e9   : > { %v3284_v16 = vadd.f32 %v6380_v61, %v3121_v14  ;;  %4139 = vmatpush1.bf16.msra.mxu0 %v5623_v2  ;;  %v3346_v24 = vmax.f32 %v3282_v8, 0.0 }
 0x5ea   : > { %v3347_v20 = vmax.f32 %v3283_v12, 0.0  ;;  %4140 = vmatprep.subr.bf16.mxu0 %v5628_v7  ;;  %v5644_v7 = vld [vmem:[#allocation2 + $0x670] ss:$8 sps:$4 sm:$0xff]   ;;  %v5649_v12 = vld [vmem:[#allocation2 + $0x684] ss:$8 sps:$4 sm:$0xff]  }
 0x5eb   : > { %v3348_v26 = vmax.f32 %v3284_v16, 0.0 }
 0x5ec   : > { %v3440_v27 = vpack.c.bf16 %v3347_v20, %v3345_v19 }
 0x5ed   : > { %v3441_v29 = vpack.c.bf16 %v3348_v26, %v3346_v24  ;;  %v3125_v31 = vpop.f32.mrb[136].mxu1  ;;  %4141 = vmatpush1.bf16.msra.mxu0 %v5626_v17 }
 0x5ee   : > { %v3285_v33 = vadd.f32 %v6377_v58, %v3125_v31  ;;  %v3127_v34 = vpop.f32.mrb[137].mxu1  ;;  %4142 = vmatprep.subr.bf16.mxu0 %v5631_v22  ;;  %v5647_v22 = vld [vmem:[#allocation2 + $0x680] ss:$8 sps:$4 sm:$0xff]  }
 0x5ef   : > { %v3286_v35 = vadd.f32 %v6380_v61, %v3127_v34  ;;  %v3129_v60 = vpop.f32.mrb[138].mxu1  ;;  %3685 = vmatprep.mubr.bf16.mxu0 %v3441_v29 }
 0x5f0   : > { %v3287_v37 = vadd.f32 %v6377_v58, %v3129_v60  ;;  %v3131_v40 = vpop.f32.mrb[139].mxu1  ;;  %3686 = vmatmul.mubr.bf16.gmra.mrb[196].mxu0 %v3440_v27  ;;  %v3349_v46 = vmax.f32 %v3285_v33, 0.0  ;;  %v5652_v27 = vld [vmem:[#allocation2 + $0x694] ss:$8 sps:$4 sm:$0xff]  }
 0x5f1   : > { %v3288_v41 = vadd.f32 %v6380_v61, %v3131_v40  ;;  %4143 = vmatpush1.bf16.msra.mxu0 %v5629_v32  ;;  %v3350_v10 = vmax.f32 %v3286_v35, 0.0 }
 0x5f2   : > { %v3351_v42 = vmax.f32 %v3287_v37, 0.0  ;;  %4144 = vmatprep.subr.bf16.mxu0 %v5634_v4  ;;  %v5650_v4 = vld [vmem:[#allocation2 + $0x690] ss:$8 sps:$4 sm:$0xff]   ;;  %v5655_v37 = vld [vmem:[#allocation2 + $0x6a4] ss:$8 sps:$4 sm:$0xff]  }
 0x5f3   : > { %v3352_v3 = vmax.f32 %v3288_v41, 0.0 }
 0x5f4   : > { %v3442_v13 = vpack.c.bf16 %v3351_v42, %v3349_v46 }
 0x5f5   : > { %v3443_v47 = vpack.c.bf16 %v3352_v3, %v3350_v10  ;;  %v3135_v15 = vpop.f32.mrb[140].mxu1  ;;  %4145 = vmatpush1.bf16.msra.mxu0 %v5632_v44 }
 0x5f6   : > { %v3289_v51 = vadd.f32 %v6377_v58, %v3135_v15  ;;  %v3137_v48 = vpop.f32.mrb[141].mxu1  ;;  %4146 = vmatprep.subr.bf16.mxu0 %v5637_v43  ;;  %v5653_v43 = vld [vmem:[#allocation2 + $0x6a0] ss:$8 sps:$4 sm:$0xff]  }
 0x5f7   : > { %v3290_v49 = vadd.f32 %v6380_v61, %v3137_v48  ;;  %v3139_v30 = vpop.f32.mrb[142].mxu1  ;;  %3695 = vmatprep.mubr.bf16.mxu0 %v3443_v47 }
 0x5f8   : > { %v3291_v38 = vadd.f32 %v6377_v58, %v3139_v30  ;;  %v3141_v45 = vpop.f32.mrb[143].mxu1  ;;  %3696 = vmatmul.mubr.bf16.gmra.mrb[200].mxu0 %v3442_v13  ;;  %v3353_v5 = vmax.f32 %v3289_v51, 0.0  ;;  %v5658_v13 = vld [vmem:[#allocation2 + $0x6b4] ss:$8 sps:$4 sm:$0xff]  }
 0x5f9   : > { %v3292_v52 = vadd.f32 %v6380_v61, %v3141_v45  ;;  %4147 = vmatpush1.bf16.msra.mxu0 %v5635_v50  ;;  %v3354_v18 = vmax.f32 %v3290_v49, 0.0 }
 0x5fa   : > { %v3355_v9 = vmax.f32 %v3291_v38, 0.0  ;;  %4148 = vmatprep.subr.bf16.mxu0 %v5640_v23  ;;  %v5656_v23 = vld [vmem:[#allocation2 + $0x6b0] ss:$8 sps:$4 sm:$0xff]   ;;  %v5661_v38 = vld [vmem:[#allocation2 + $0x6c4] ss:$8 sps:$4 sm:$0xff]  }
 0x5fb   : > { %v3356_v21 = vmax.f32 %v3292_v52, 0.0 }
 0x5fc   : > { %v3444_v25 = vpack.c.bf16 %v3355_v9, %v3353_v5 }
 0x5fd   : > { %v3445_v28 = vpack.c.bf16 %v3356_v21, %v3354_v18  ;;  %v3145_v53 = vpop.f32.mrb[144].mxu1  ;;  %4149 = vmatpush1.bf16.msra.mxu0 %v5638_v1 }
 0x5fe   : > { %v3293_v57 = vadd.f32 %v6377_v58, %v3145_v53  ;;  %v3147_v54 = vpop.f32.mrb[145].mxu1  ;;  %4150 = vmatprep.subr.bf16.mxu0 %v5643_v0  ;;  %v5659_v0 = vld [vmem:[#allocation2 + $0x6c0] ss:$8 sps:$4 sm:$0xff]  }
 0x5ff   : > { %v3294_v59 = vadd.f32 %v6380_v61, %v3147_v54  ;;  %v3149_v63 = vpop.f32.mrb[146].mxu1  ;;  %3705 = vmatprep.mubr.bf16.mxu0 %v3445_v28 }
 0x600   : > { %v3295_v2 = vadd.f32 %v6377_v58, %v3149_v63  ;;  %v3151_v6 = vpop.f32.mrb[147].mxu1  ;;  %3706 = vmatmul.mubr.bf16.gmra.mrb[204].mxu0 %v3444_v25  ;;  %v3357_v8 = vmax.f32 %v3293_v57, 0.0  ;;  %v5664_v25 = vld [vmem:[#allocation2 + $0x6d4] ss:$8 sps:$4 sm:$0xff]  }
 0x601   : > { %v3296_v62 = vadd.f32 %v6380_v61, %v3151_v6  ;;  %4151 = vmatpush1.bf16.msra.mxu0 %v5641_v56  ;;  %v3358_v14 = vmax.f32 %v3294_v59, 0.0 }
 0x602   : > { %v3359_v11 = vmax.f32 %v3295_v2, 0.0  ;;  %4152 = vmatprep.subr.bf16.mxu0 %v5646_v55  ;;  %v5662_v55 = vld [vmem:[#allocation2 + $0x6d0] ss:$8 sps:$4 sm:$0xff]   ;;  %v5667_v2 = vld [vmem:[#allocation2 + $0x6e4] ss:$8 sps:$4 sm:$0xff]  }
 0x603   : > { %v3360_v16 = vmax.f32 %v3296_v62, 0.0 }
 0x604   : > { %v3446_v17 = vpack.c.bf16 %v3359_v11, %v3357_v8 }
 0x605   : > { %v3447_v19 = vpack.c.bf16 %v3360_v16, %v3358_v14  ;;  %v3155_v20 = vpop.f32.mrb[148].mxu1  ;;  %4153 = vmatpush1.bf16.msra.mxu0 %v5644_v7 }
 0x606   : > { %v3297_v24 = vadd.f32 %v6377_v58, %v3155_v20  ;;  %v3157_v26 = vpop.f32.mrb[149].mxu1  ;;  %4154 = vmatprep.subr.bf16.mxu0 %v5649_v12  ;;  %v5665_v12 = vld [vmem:[#allocation2 + $0x6e0] ss:$8 sps:$4 sm:$0xff]  }
 0x607   : > { %v3298_v29 = vadd.f32 %v6380_v61, %v3157_v26  ;;  %v3159_v31 = vpop.f32.mrb[150].mxu1  ;;  %3715 = vmatprep.mubr.bf16.mxu0 %v3447_v19 }
 0x608   : > { %v3299_v32 = vadd.f32 %v6377_v58, %v3159_v31  ;;  %v3161_v33 = vpop.f32.mrb[151].mxu1  ;;  %3716 = vmatmul.mubr.bf16.gmra.mrb[208].mxu0 %v3446_v17  ;;  %v3361_v35 = vmax.f32 %v3297_v24, 0.0 }
 0x609   : > { %v3300_v34 = vadd.f32 %v6380_v61, %v3161_v33  ;;  %4155 = vmatpush1.bf16.msra.mxu0 %v5647_v22  ;;  %v3362_v40 = vmax.f32 %v3298_v29, 0.0 }
 0x60a   : > { %v3363_v60 = vmax.f32 %v3299_v32, 0.0  ;;  %4156 = vmatprep.subr.bf16.mxu0 %v5652_v27 }
 0x60b   : > { %v3364_v41 = vmax.f32 %v3300_v34, 0.0 }
 0x60c   : > { %v3448_v44 = vpack.c.bf16 %v3363_v60, %v3361_v35 }
 0x60d   : > { %v3449_v46 = vpack.c.bf16 %v3364_v41, %v3362_v40  ;;  %v3165_v42 = vpop.f32.mrb[152].mxu1  ;;  %4157 = vmatpush1.bf16.msra.mxu0 %v5650_v4 }
 0x60e   : > { %v3301_v10 = vadd.f32 %v6377_v58, %v3165_v42  ;;  %v3167_v3 = vpop.f32.mrb[153].mxu1  ;;  %4158 = vmatprep.subr.bf16.mxu0 %v5655_v37 }
 0x60f   : > { %v3302_v47 = vadd.f32 %v6380_v61, %v3167_v3  ;;  %v3169_v15 = vpop.f32.mrb[154].mxu1  ;;  %3725 = vmatprep.mubr.bf16.mxu0 %v3449_v46 }
 0x610   : > { %v3303_v50 = vadd.f32 %v6377_v58, %v3169_v15  ;;  %v3171_v51 = vpop.f32.mrb[155].mxu1  ;;  %3726 = vmatmul.mubr.bf16.gmra.mrb[212].mxu0 %v3448_v44  ;;  %v3365_v49 = vmax.f32 %v3301_v10, 0.0 }
 0x611   : > { %v3304_v48 = vadd.f32 %v6380_v61, %v3171_v51  ;;  %4159 = vmatpush1.bf16.msra.mxu0 %v5653_v43  ;;  %v3366_v45 = vmax.f32 %v3302_v47, 0.0 }
 0x612   : > { %v3367_v30 = vmax.f32 %v3303_v50, 0.0  ;;  %4160 = vmatprep.subr.bf16.mxu0 %v5658_v13 }
 0x613   : > { %v3368_v52 = vmax.f32 %v3304_v48, 0.0 }
 0x614   : > { %v3450_v1 = vpack.c.bf16 %v3367_v30, %v3365_v49 }
 0x615   : > { %v3451_v5 = vpack.c.bf16 %v3368_v52, %v3366_v45  ;;  %v3175_v9 = vpop.f32.mrb[156].mxu1  ;;  %4161 = vmatpush1.bf16.msra.mxu0 %v5656_v23 }
 0x616   : > { %v3305_v18 = vadd.f32 %v6377_v58, %v3175_v9  ;;  %v3177_v21 = vpop.f32.mrb[157].mxu1  ;;  %4162 = vmatprep.subr.bf16.mxu0 %v5661_v38 }
 0x617   : > { %v3306_v28 = vadd.f32 %v6380_v61, %v3177_v21  ;;  %v3179_v53 = vpop.f32.mrb[158].mxu1  ;;  %3735 = vmatprep.mubr.bf16.mxu0 %v3451_v5 }
 0x618   : > { %v3307_v56 = vadd.f32 %v6377_v58, %v3179_v53  ;;  %v3181_v57 = vpop.f32.mrb[159].mxu1  ;;  %3736 = vmatmul.mubr.bf16.gmra.mrb[216].mxu0 %v3450_v1  ;;  %v3369_v59 = vmax.f32 %v3305_v18, 0.0 }
 0x619   : > { %v3308_v54 = vadd.f32 %v6380_v61, %v3181_v57  ;;  %4163 = vmatpush1.bf16.msra.mxu0 %v5659_v0  ;;  %v3370_v6 = vmax.f32 %v3306_v28, 0.0 }
 0x61a   : > { %v3371_v63 = vmax.f32 %v3307_v56, 0.0  ;;  %4164 = vmatprep.subr.bf16.mxu0 %v5664_v25 }
 0x61b   : > { %v3372_v62 = vmax.f32 %v3308_v54, 0.0 }
 0x61c   : > { %v3452_v7 = vpack.c.bf16 %v3371_v63, %v3369_v59 }
 0x61d   : > { %v3453_v8 = vpack.c.bf16 %v3372_v62, %v3370_v6  ;;  %v3185_v11 = vpop.f32.mrb[160].mxu1  ;;  %4165 = vmatpush1.bf16.msra.mxu0 %v5662_v55 }
 0x61e   : > { %v3309_v14 = vadd.f32 %v6377_v58, %v3185_v11  ;;  %v3187_v16 = vpop.f32.mrb[161].mxu1  ;;  %4166 = vmatprep.subr.bf16.mxu0 %v5667_v2 }
 0x61f   : > { %v3310_v17 = vadd.f32 %v6380_v61, %v3187_v16  ;;  %v3189_v19 = vpop.f32.mrb[162].mxu1  ;;  %3745 = vmatprep.mubr.bf16.mxu0 %v3453_v8 }
 0x620   : > { %v3311_v20 = vadd.f32 %v6377_v58, %v3189_v19  ;;  %v3191_v22 = vpop.f32.mrb[163].mxu1  ;;  %3746 = vmatmul.mubr.bf16.gmra.mrb[220].mxu0 %v3452_v7  ;;  %v3373_v26 = vmax.f32 %v3309_v14, 0.0 }
 0x621   : > { %v3312_v24 = vadd.f32 %v6380_v61, %v3191_v22  ;;  %4167 = vmatpush1.bf16.msra.mxu0 %v5665_v12  ;;  %v3374_v29 = vmax.f32 %v3310_v17, 0.0  ;;  %v5670_v17 = vld [vmem:[#allocation2 + $0x6f4] ss:$8 sps:$4 sm:$0xff]  }
 0x622   : > { %v3375_v27 = vmax.f32 %v3311_v20, 0.0  ;;  %v5668_v20 = vld [vmem:[#allocation2 + $0x6f0] ss:$8 sps:$4 sm:$0xff]   ;;  %4168 = vmatprep.subr.bf16.mxu0 %v5670_v17 }
 0x623   : > { %v3376_v31 = vmax.f32 %v3312_v24, 0.0 }
 0x624   : > { %v3454_v32 = vpack.c.bf16 %v3375_v27, %v3373_v26 }
 0x625   : > { %v3455_v33 = vpack.c.bf16 %v3376_v31, %v3374_v29  ;;  %v3195_v34 = vpop.f32.mrb[164].mxu1  ;;  %4169 = vmatpush1.bf16.msra.mxu0 %v5668_v20 }
 0x626   : > { %v3313_v4 = vadd.f32 %v6377_v58, %v3195_v34  ;;  %v3197_v35 = vpop.f32.mrb[165].mxu1 }
 0x627   : > { %v3314_v60 = vadd.f32 %v6380_v61, %v3197_v35  ;;  %v3199_v37 = vpop.f32.mrb[166].mxu1  ;;  %3755 = vmatprep.mubr.bf16.mxu0 %v3455_v33 }
 0x628   : > { %v3315_v40 = vadd.f32 %v6377_v58, %v3199_v37  ;;  %v3201_v41 = vpop.f32.mrb[167].mxu1  ;;  %3756 = vmatmul.mubr.bf16.gmra.mrb[224].mxu0 %v3454_v32  ;;  %v3377_v46 = vmax.f32 %v3313_v4, 0.0 }
 0x629   : > { %v3316_v44 = vadd.f32 %v6380_v61, %v3201_v41  ;;  %v3378_v43 = vmax.f32 %v3314_v60, 0.0 }
 0x62a   : > { %v3379_v42 = vmax.f32 %v3315_v40, 0.0 }
 0x62b   : > { %v3380_v10 = vmax.f32 %v3316_v44, 0.0 }
 0x62c   : > { %v3456_v3 = vpack.c.bf16 %v3379_v42, %v3377_v46 }
 0x62d   : > { %v3457_v13 = vpack.c.bf16 %v3380_v10, %v3378_v43  ;;  %v3205_v47 = vpop.f32.mrb[168].mxu1 }
 0x62e   : > { %v3317_v15 = vadd.f32 %v6377_v58, %v3205_v47  ;;  %v3207_v50 = vpop.f32.mrb[169].mxu1 }
 0x62f   : > { %v3318_v51 = vadd.f32 %v6380_v61, %v3207_v50  ;;  %v3209_v48 = vpop.f32.mrb[170].mxu1  ;;  %3765 = vmatprep.mubr.bf16.mxu0 %v3457_v13 }
 0x630   : > { %v3319_v23 = vadd.f32 %v6377_v58, %v3209_v48  ;;  %v3211_v49 = vpop.f32.mrb[171].mxu1  ;;  %3766 = vmatmul.mubr.bf16.gmra.mrb[228].mxu0 %v3456_v3  ;;  %v3381_v38 = vmax.f32 %v3317_v15, 0.0 }
 0x631   : > { %v3320_v30 = vadd.f32 %v6380_v61, %v3211_v49  ;;  %v3382_v52 = vmax.f32 %v3318_v51, 0.0 }
 0x632   : > { %v3383_v45 = vmax.f32 %v3319_v23, 0.0 }
 0x633   : > { %v3384_v1 = vmax.f32 %v3320_v30, 0.0 }
 0x634   : > { %v3458_v5 = vpack.c.bf16 %v3383_v45, %v3381_v38 }
 0x635   : > { %v3459_v9 = vpack.c.bf16 %v3384_v1, %v3382_v52  ;;  %v3215_v0 = vpop.f32.mrb[172].mxu1 }
 0x636   : > { %v3321_v18 = vadd.f32 %v6377_v58, %v3215_v0  ;;  %v3217_v21 = vpop.f32.mrb[173].mxu1 }
 0x637   : > { %v3322_v25 = vadd.f32 %v6380_v61, %v3217_v21  ;;  %v3219_v28 = vpop.f32.mrb[174].mxu1  ;;  %3775 = vmatprep.mubr.bf16.mxu0 %v3459_v9 }
 0x638   : > { %v3323_v53 = vadd.f32 %v6377_v58, %v3219_v28  ;;  %v3221_v56 = vpop.f32.mrb[175].mxu1  ;;  %3776 = vmatmul.mubr.bf16.gmra.mrb[232].mxu0 %v3458_v5  ;;  %v3385_v54 = vmax.f32 %v3321_v18, 0.0 }
 0x639   : > { %v3324_v57 = vadd.f32 %v6380_v61, %v3221_v56  ;;  %v3386_v59 = vmax.f32 %v3322_v25, 0.0 }
 0x63a   : > { %v3387_v55 = vmax.f32 %v3323_v53, 0.0 }
 0x63b   : > { %v3388_v63 = vmax.f32 %v3324_v57, 0.0 }
 0x63c   : > { %v3460_v2 = vpack.c.bf16 %v3387_v55, %v3385_v54 }
 0x63d   : > { %v3461_v6 = vpack.c.bf16 %v3388_v63, %v3386_v59  ;;  %v3225_v62 = vpop.f32.mrb[176].mxu1 }
 0x63e   : > { %v3325_v7 = vadd.f32 %v6377_v58, %v3225_v62  ;;  %v3227_v8 = vpop.f32.mrb[177].mxu1 }
 0x63f   : > { %v3326_v11 = vadd.f32 %v6380_v61, %v3227_v8  ;;  %v3229_v12 = vpop.f32.mrb[178].mxu1  ;;  %3785 = vmatprep.mubr.bf16.mxu0 %v3461_v6 }
 0x640   : > { %v3327_v14 = vadd.f32 %v6377_v58, %v3229_v12  ;;  %v3231_v16 = vpop.f32.mrb[179].mxu1  ;;  %3786 = vmatmul.mubr.bf16.gmra.mrb[236].mxu0 %v3460_v2  ;;  %v3389_v22 = vmax.f32 %v3325_v7, 0.0  ;;  %v5035_v2 = vld [vmem:[%s6754_s3 + $0x6] ss:$8 sm:$0x3] }
 0x641   : > { %v3328_v19 = vadd.f32 %v6380_v61, %v3231_v16  ;;  %v3390_v26 = vmax.f32 %v3326_v11, 0.0  ;;  %v6450_v6 = vrot.slane %v5035_v2, %v5946_v36  ;;  %v5672_v11 = vld [vmem:[%s6755_s4] sm:$0xff]  }
 0x642   : > { %v3391_v24 = vmax.f32 %v3327_v14, 0.0 }
 0x643   : > { %v3392_v27 = vmax.f32 %v3328_v19, 0.0  ;;  %v5673_v19 = vld [vmem:[%s6755_s4 + $0x48] sm:$0xff]  }
 0x644   : > { %v3462_v29 = vpack.c.bf16 %v3391_v24, %v3389_v22 }
 0x645   : > { %v3463_v31 = vpack.c.bf16 %v3392_v27, %v3390_v26  ;;  %v3235_v32 = vpop.f32.mrb[180].mxu1  ;;  %v5674_v26 = vld [vmem:[%s6755_s4 + $0x8] sm:$0xff]  }
 0x646   : > { %v3329_v33 = vadd.f32 %v6377_v58, %v3235_v32  ;;  %v3237_v34 = vpop.f32.mrb[181].mxu1 }
 0x647   : > { %v3330_v4 = vadd.f32 %v6380_v61, %v3237_v34  ;;  %v3239_v35 = vpop.f32.mrb[182].mxu1  ;;  %3795 = vmatprep.mubr.bf16.mxu0 %v3463_v31  ;;  %v5675_v31 = vld [vmem:[%s6755_s4 + $0x50] sm:$0xff]  }
 0x648   : > { %v3331_v60 = vadd.f32 %v6377_v58, %v3239_v35  ;;  %v3241_v37 = vpop.f32.mrb[183].mxu1  ;;  %3796 = vmatmul.mubr.bf16.gmra.mrb[240].mxu0 %v3462_v29  ;;  %v3393_v41 = vmax.f32 %v3329_v33, 0.0 }
 0x649   : > { %v3332_v40 = vadd.f32 %v6380_v61, %v3241_v37  ;;  %v3394_v46 = vmax.f32 %v3330_v4, 0.0 }
 0x64a   : > { %v3395_v44 = vmax.f32 %v3331_v60, 0.0  ;;  %v5676_v60 = vld [vmem:[%s6755_s4 + $0x10] sm:$0xff]  }
 0x64b   : > { %v3396_v42 = vmax.f32 %v3332_v40, 0.0 }
 0x64c   : > { %v3464_v43 = vpack.c.bf16 %v3395_v44, %v3393_v41  ;;  %v5677_v41 = vld [vmem:[%s6755_s4 + $0x58] sm:$0xff]  }
 0x64d   : > { %v3465_v10 = vpack.c.bf16 %v3396_v42, %v3394_v46  ;;  %v3245_v3 = vpop.f32.mrb[184].mxu1 }
 0x64e   : > { %v3333_v13 = vadd.f32 %v6377_v58, %v3245_v3  ;;  %v3247_v47 = vpop.f32.mrb[185].mxu1  ;;  %v5678_v3 = vld [vmem:[%s6755_s4 + $0x18] sm:$0xff]  }
 0x64f   : > { %v3334_v15 = vadd.f32 %v6380_v61, %v3247_v47  ;;  %v3249_v50 = vpop.f32.mrb[186].mxu1  ;;  %3805 = vmatprep.mubr.bf16.mxu0 %v3465_v10 }
 0x650   : > { %v3335_v51 = vadd.f32 %v6377_v58, %v3249_v50  ;;  %v3251_v48 = vpop.f32.mrb[187].mxu1  ;;  %3806 = vmatmul.mubr.bf16.gmra.mrb[244].mxu0 %v3464_v43  ;;  %v3397_v49 = vmax.f32 %v3333_v13, 0.0 }
 0x651   : > { %v3336_v23 = vadd.f32 %v6380_v61, %v3251_v48  ;;  %v3398_v38 = vmax.f32 %v3334_v15, 0.0  ;;  %v5679_v15 = vld [vmem:[%s6755_s4 + $0x60] sm:$0xff]  }
 0x652   : > { %v3399_v30 = vmax.f32 %v3335_v51, 0.0 }
 0x653   : > { %v3400_v45 = vmax.f32 %v3336_v23, 0.0 }
 0x654   : > { %v3466_v52 = vpack.c.bf16 %v3399_v30, %v3397_v49  ;;  %v5680_v30 = vld [vmem:[%s6755_s4 + $0x20] sm:$0xff]  }
 0x655   : > { %v3467_v1 = vpack.c.bf16 %v3400_v45, %v3398_v38  ;;  %v3255_v5 = vpop.f32.mrb[188].mxu1 }
 0x656   : > { %v3337_v9 = vadd.f32 %v6377_v58, %v3255_v5  ;;  %v3257_v0 = vpop.f32.mrb[189].mxu1 }
 0x657   : > { %v3338_v18 = vadd.f32 %v6380_v61, %v3257_v0  ;;  %v3259_v21 = vpop.f32.mrb[190].mxu1  ;;  %3815 = vmatprep.mubr.bf16.mxu0 %v3467_v1 }
 0x658   : > { %v3339_v25 = vadd.f32 %v6377_v58, %v3259_v21  ;;  %v3261_v28 = vpop.f32.mrb[191].mxu1  ;;  %3816 = vmatmul.mubr.bf16.gmra.mrb[248].mxu0 %v3466_v52  ;;  %v3401_v56 = vmax.f32 %v3337_v9, 0.0  ;;  %v6453_v58 = vrot.slane %v5035_v2, %v5951_v39  ;;  %v5681_v52 = vld [vmem:[%s6755_s4 + $0x68] sm:$0xff]  }
 0x659   : > { %v3340_v53 = vadd.f32 %v6380_v61, %v3261_v28  ;;  %v3402_v54 = vmax.f32 %v3338_v18, 0.0  ;;  %v5671_v61 = vld [vmem:[%s6755_s4 + $0x40] sm:$0xff]   ;;  %v5682_v21 = vld [vmem:[%s6755_s4 + $0x28] sm:$0xff]  }
 0x65a   : > { %v3403_v57 = vmax.f32 %v3339_v25, 0.0  ;;  %5232 = vmatprep.subr.bf16.mxu1 %v5671_v61  ;;  %5120 = vmatprep.subr.bf16.mxu0 %v5671_v61 }
 0x65b   : > { %v3404_v55 = vmax.f32 %v3340_v53, 0.0  ;;  %5240 = vmatpush3.bf16.msra.mxu1 %v5672_v11 }
 0x65c   : > { %v3468_v59 = vpack.c.bf16 %v3403_v57, %v3401_v56  ;;  %5233 = vmatprep.subr.bf16.mxu1 %v5673_v19 }
 0x65d   : > { %v3469_v63 = vpack.c.bf16 %v3404_v55, %v3402_v54 }
 0x65f   : > { %3825 = vmatprep.mubr.bf16.mxu0 %v3469_v63  ;;  %5241 = vmatpush3.bf16.msra.mxu1 %v5674_v26 }
 0x660   : > { %3826 = vmatmul.mubr.bf16.gmra.mrb[252].mxu0 %v3468_v59  ;;  %5234 = vmatprep.subr.bf16.mxu1 %v5675_v31 }
 0x663   : > { %5242 = vmatpush3.bf16.msra.mxu1 %v5676_v60 }
 0x664   : > { %5235 = vmatprep.subr.bf16.mxu1 %v5677_v41 }
 0x667   : > { %5243 = vmatpush3.bf16.msra.mxu1 %v5678_v3 }
 0x668   : > { %5236 = vmatprep.subr.bf16.mxu1 %v5679_v15 }
 0x66b   : > { %5244 = vmatpush3.bf16.msra.mxu1 %v5680_v30 }
 0x66c   : > { %5237 = vmatprep.subr.bf16.mxu1 %v5681_v52 }
 0x66f   : > { %5245 = vmatpush3.bf16.msra.mxu1 %v5682_v21 }
 0x6bb   : > { %v3677_v62 = vpop.f32.mrb[192].mxu0 }
 0x6bc   : > { %v3678_v7 = vadd.f32 %v3677_v62, %v6450_v6  ;;  %v3679_v8 = vpop.f32.mrb[193].mxu0 }
 0x6bd   : > { %v3680_v12 = vadd.f32 %v3679_v8, %v6453_v58  ;;  %v3681_v14 = vpop.f32.mrb[194].mxu0 }
 0x6be   : > { %v3682_v16 = vadd.f32 %v3681_v14, %v6450_v6  ;;  %v3683_v17 = vpop.f32.mrb[195].mxu0  ;;  %v3836_v22 = vmax.f32 %v3678_v7, 0.0 }
 0x6bf   : > { %v3684_v20 = vadd.f32 %v3683_v17, %v6453_v58  ;;  %v3837_v27 = vmax.f32 %v3680_v12, 0.0 }
 0x6c0   : > { %v3838_v24 = vmax.f32 %v3682_v16, 0.0 }
 0x6c1   : > { %v3839_v29 = vmax.f32 %v3684_v20, 0.0 }
 0x6c2   : > { %v3933_v32 = vpack.c.bf16 %v3838_v24, %v3836_v22 }
 0x6c3   : > { %v3934_v33 = vpack.c.bf16 %v3839_v29, %v3837_v27  ;;  %v3687_v34 = vpop.f32.mrb[196].mxu0 }
 0x6c4   : > { %v3688_v4 = vadd.f32 %v3687_v34, %v6450_v6  ;;  %v3689_v35 = vpop.f32.mrb[197].mxu0 }
 0x6c5   : > { %v3690_v37 = vadd.f32 %v3689_v35, %v6453_v58  ;;  %v3691_v40 = vpop.f32.mrb[198].mxu0  ;;  %4170 = vmatprep.mubr.bf16.mxu0 %v3934_v33 }
 0x6c6   : > { %v3692_v44 = vadd.f32 %v3691_v40, %v6450_v6  ;;  %v3693_v46 = vpop.f32.mrb[199].mxu0  ;;  %4171 = vmatmul.mubr.bf16.vlgmr.msra.gmra.mrb[0].mxu0 %v3933_v32  ;;  %v3840_v43 = vmax.f32 %v3688_v4, 0.0 }
 0x6c7   : > { %v3694_v42 = vadd.f32 %v3693_v46, %v6453_v58  ;;  %5121 = vmatpush3.bf16.msra.mxu0 %v5672_v11  ;;  %v3841_v13 = vmax.f32 %v3690_v37, 0.0 }
 0x6c8   : > { %v3842_v10 = vmax.f32 %v3692_v44, 0.0  ;;  %5122 = vmatprep.subr.bf16.mxu0 %v5673_v19 }
 0x6c9   : > { %v3843_v47 = vmax.f32 %v3694_v42, 0.0 }
 0x6ca   : > { %v3935_v50 = vpack.c.bf16 %v3842_v10, %v3840_v43 }
 0x6cb   : > { %v3936_v51 = vpack.c.bf16 %v3843_v47, %v3841_v13  ;;  %v3697_v48 = vpop.f32.mrb[200].mxu0  ;;  %5123 = vmatpush3.bf16.msra.mxu0 %v5674_v26 }
 0x6cc   : > { %v3698_v23 = vadd.f32 %v3697_v48, %v6450_v6  ;;  %v3699_v49 = vpop.f32.mrb[201].mxu0  ;;  %5124 = vmatprep.subr.bf16.mxu0 %v5675_v31 }
 0x6cd   : > { %v3700_v38 = vadd.f32 %v3699_v49, %v6453_v58  ;;  %v3701_v45 = vpop.f32.mrb[202].mxu0  ;;  %4180 = vmatprep.mubr.bf16.mxu0 %v3936_v51 }
 0x6ce   : > { %v3702_v1 = vadd.f32 %v3701_v45, %v6450_v6  ;;  %v3703_v5 = vpop.f32.mrb[203].mxu0  ;;  %4181 = vmatmul.mubr.bf16.gmra.mrb[4].mxu0 %v3935_v50  ;;  %v3844_v0 = vmax.f32 %v3698_v23, 0.0 }
 0x6cf   : > { %v3704_v9 = vadd.f32 %v3703_v5, %v6453_v58  ;;  %5125 = vmatpush3.bf16.msra.mxu0 %v5676_v60  ;;  %v3845_v25 = vmax.f32 %v3700_v38, 0.0 }
 0x6d0   : > { %v3846_v18 = vmax.f32 %v3702_v1, 0.0  ;;  %5126 = vmatprep.subr.bf16.mxu0 %v5677_v41 }
 0x6d1   : > { %v3847_v28 = vmax.f32 %v3704_v9, 0.0 }
 0x6d2   : > { %v3937_v53 = vpack.c.bf16 %v3846_v18, %v3844_v0 }
 0x6d3   : > { %v3938_v56 = vpack.c.bf16 %v3847_v28, %v3845_v25  ;;  %v3707_v57 = vpop.f32.mrb[204].mxu0  ;;  %5127 = vmatpush3.bf16.msra.mxu0 %v5678_v3 }
 0x6d4   : > { %v3708_v54 = vadd.f32 %v3707_v57, %v6450_v6  ;;  %v3709_v55 = vpop.f32.mrb[205].mxu0  ;;  %5128 = vmatprep.subr.bf16.mxu0 %v5679_v15 }
 0x6d5   : > { %v3710_v59 = vadd.f32 %v3709_v55, %v6453_v58  ;;  %v3711_v63 = vpop.f32.mrb[206].mxu0  ;;  %4190 = vmatprep.mubr.bf16.mxu0 %v3938_v56 }
 0x6d6   : > { %v3712_v2 = vadd.f32 %v3711_v63, %v6450_v6  ;;  %v3713_v62 = vpop.f32.mrb[207].mxu0  ;;  %4191 = vmatmul.mubr.bf16.gmra.mrb[8].mxu0 %v3937_v53  ;;  %v3848_v7 = vmax.f32 %v3708_v54, 0.0 }
 0x6d7   : > { %v3714_v61 = vadd.f32 %v3713_v62, %v6453_v58  ;;  %5129 = vmatpush3.bf16.msra.mxu0 %v5680_v30  ;;  %v3849_v11 = vmax.f32 %v3710_v59, 0.0 }
 0x6d8   : > { %v3850_v8 = vmax.f32 %v3712_v2, 0.0  ;;  %5130 = vmatprep.subr.bf16.mxu0 %v5681_v52 }
 0x6d9   : > { %v3851_v12 = vmax.f32 %v3714_v61, 0.0 }
 0x6da   : > { %v3939_v14 = vpack.c.bf16 %v3850_v8, %v3848_v7 }
 0x6db   : > { %v3940_v16 = vpack.c.bf16 %v3851_v12, %v3849_v11  ;;  %v3717_v17 = vpop.f32.mrb[208].mxu0  ;;  %5131 = vmatpush3.bf16.msra.mxu0 %v5682_v21 }
 0x6dc   : > { %v3718_v19 = vadd.f32 %v3717_v17, %v6450_v6  ;;  %v3719_v20 = vpop.f32.mrb[209].mxu0 }
 0x6dd   : > { %v3720_v22 = vadd.f32 %v3719_v20, %v6453_v58  ;;  %v3721_v24 = vpop.f32.mrb[210].mxu0  ;;  %4200 = vmatprep.mubr.bf16.mxu0 %v3940_v16 }
 0x6de   : > { %v3722_v26 = vadd.f32 %v3721_v24, %v6450_v6  ;;  %v3723_v27 = vpop.f32.mrb[211].mxu0  ;;  %4201 = vmatmul.mubr.bf16.gmra.mrb[12].mxu0 %v3939_v14  ;;  %v3852_v31 = vmax.f32 %v3718_v19, 0.0 }
 0x6df   : > { %v3724_v29 = vadd.f32 %v3723_v27, %v6453_v58  ;;  %v3853_v33 = vmax.f32 %v3720_v22, 0.0 }
 0x6e0   : > { %v3854_v32 = vmax.f32 %v3722_v26, 0.0 }
 0x6e1   : > { %v3855_v34 = vmax.f32 %v3724_v29, 0.0 }
 0x6e2   : > { %v3941_v4 = vpack.c.bf16 %v3854_v32, %v3852_v31 }
 0x6e3   : > { %v3942_v35 = vpack.c.bf16 %v3855_v34, %v3853_v33  ;;  %v3727_v60 = vpop.f32.mrb[212].mxu0 }
 0x6e4   : > { %v3728_v37 = vadd.f32 %v3727_v60, %v6450_v6  ;;  %v3729_v40 = vpop.f32.mrb[213].mxu0 }
 0x6e5   : > { %v3730_v41 = vadd.f32 %v3729_v40, %v6453_v58  ;;  %v3731_v44 = vpop.f32.mrb[214].mxu0  ;;  %4210 = vmatprep.mubr.bf16.mxu0 %v3942_v35 }
 0x6e6   : > { %v3732_v46 = vadd.f32 %v3731_v44, %v6450_v6  ;;  %v3733_v42 = vpop.f32.mrb[215].mxu0  ;;  %4211 = vmatmul.mubr.bf16.gmra.mrb[16].mxu0 %v3941_v4  ;;  %v3856_v10 = vmax.f32 %v3728_v37, 0.0 }
 0x6e7   : > { %v3734_v43 = vadd.f32 %v3733_v42, %v6453_v58  ;;  %v3857_v13 = vmax.f32 %v3730_v41, 0.0 }
 0x6e8   : > { %v3858_v3 = vmax.f32 %v3732_v46, 0.0 }
 0x6e9   : > { %v3859_v47 = vmax.f32 %v3734_v43, 0.0 }
 0x6ea   : > { %v3943_v15 = vpack.c.bf16 %v3858_v3, %v3856_v10 }
 0x6eb   : > { %v3944_v50 = vpack.c.bf16 %v3859_v47, %v3857_v13  ;;  %v3737_v51 = vpop.f32.mrb[216].mxu0 }
 0x6ec   : > { %v3738_v48 = vadd.f32 %v3737_v51, %v6450_v6  ;;  %v3739_v23 = vpop.f32.mrb[217].mxu0 }
 0x6ed   : > { %v3740_v49 = vadd.f32 %v3739_v23, %v6453_v58  ;;  %v3741_v30 = vpop.f32.mrb[218].mxu0  ;;  %4220 = vmatprep.mubr.bf16.mxu0 %v3944_v50 }
 0x6ee   : > { %v3742_v38 = vadd.f32 %v3741_v30, %v6450_v6  ;;  %v3743_v45 = vpop.f32.mrb[219].mxu0  ;;  %4221 = vmatmul.mubr.bf16.gmra.mrb[20].mxu0 %v3943_v15  ;;  %v3860_v1 = vmax.f32 %v3738_v48, 0.0 }
 0x6ef   : > { %v3744_v52 = vadd.f32 %v3743_v45, %v6453_v58  ;;  %v3861_v9 = vmax.f32 %v3740_v49, 0.0 }
 0x6f0   : > { %v3862_v5 = vmax.f32 %v3742_v38, 0.0 }
 0x6f1   : > { %v3863_v0 = vmax.f32 %v3744_v52, 0.0 }
 0x6f2   : > { %v3945_v18 = vpack.c.bf16 %v3862_v5, %v3860_v1 }
 0x6f3   : > { %v3946_v21 = vpack.c.bf16 %v3863_v0, %v3861_v9  ;;  %v3747_v25 = vpop.f32.mrb[220].mxu0 }
 0x6f4   : > { %v3748_v28 = vadd.f32 %v3747_v25, %v6450_v6  ;;  %v3749_v53 = vpop.f32.mrb[221].mxu0 }
 0x6f5   : > { %v3750_v56 = vadd.f32 %v3749_v53, %v6453_v58  ;;  %v3751_v57 = vpop.f32.mrb[222].mxu0  ;;  %4230 = vmatprep.mubr.bf16.mxu0 %v3946_v21 }
 0x6f6   : > { %v3752_v54 = vadd.f32 %v3751_v57, %v6450_v6  ;;  %v3753_v55 = vpop.f32.mrb[223].mxu0  ;;  %4231 = vmatmul.mubr.bf16.gmra.mrb[24].mxu0 %v3945_v18  ;;  %v3864_v63 = vmax.f32 %v3748_v28, 0.0 }
 0x6f7   : > { %v3754_v59 = vadd.f32 %v3753_v55, %v6453_v58  ;;  %v3865_v62 = vmax.f32 %v3750_v56, 0.0 }
 0x6f8   : > { %v3866_v2 = vmax.f32 %v3752_v54, 0.0 }
 0x6f9   : > { %v3867_v61 = vmax.f32 %v3754_v59, 0.0 }
 0x6fa   : > { %v3947_v7 = vpack.c.bf16 %v3866_v2, %v3864_v63  ;;  %v5683_v2 = vld [vmem:[%s6755_s4 + $0x70] sm:$0xff]  }
 0x6fb   : > { %v3948_v8 = vpack.c.bf16 %v3867_v61, %v3865_v62  ;;  %v3757_v11 = vpop.f32.mrb[224].mxu0  ;;  %5238 = vmatprep.subr.bf16.mxu1 %v5683_v2  ;;  %5132 = vmatprep.subr.bf16.mxu0 %v5683_v2 }
 0x6fc   : > { %v3758_v12 = vadd.f32 %v3757_v11, %v6450_v6  ;;  %v3759_v14 = vpop.f32.mrb[225].mxu0 }
 0x6fd   : > { %v3760_v16 = vadd.f32 %v3759_v14, %v6453_v58  ;;  %v3761_v17 = vpop.f32.mrb[226].mxu0  ;;  %4240 = vmatprep.mubr.bf16.mxu0 %v3948_v8 }
 0x6fe   : > { %v3762_v19 = vadd.f32 %v3761_v17, %v6450_v6  ;;  %v3763_v20 = vpop.f32.mrb[227].mxu0  ;;  %4241 = vmatmul.mubr.bf16.gmra.mrb[28].mxu0 %v3947_v7  ;;  %v3868_v24 = vmax.f32 %v3758_v12, 0.0  ;;  %v5684_v7 = vld [vmem:[%s6755_s4 + $0x30] sm:$0xff]  }
 0x6ff   : > { %v3764_v22 = vadd.f32 %v3763_v20, %v6453_v58  ;;  %v3869_v27 = vmax.f32 %v3760_v16, 0.0  ;;  %5246 = vmatpush3.bf16.msra.mxu1 %v5684_v7  ;;  %5133 = vmatpush3.bf16.msra.mxu0 %v5684_v7 }
 0x700   : > { %v3870_v26 = vmax.f32 %v3762_v19, 0.0  ;;  %v5685_v19 = vld [vmem:[%s6755_s4 + $0x78] sm:$0xff]  }
 0x701   : > { %v3871_v29 = vmax.f32 %v3764_v22, 0.0  ;;  %v5686_v22 = vld [vmem:[%s6755_s4 + $0x38] sm:$0xff]   ;;  %5134 = vmatprep.subr.bf16.mxu0 %v5685_v19  ;;  %5239 = vmatprep.subr.bf16.mxu1 %v5685_v19 }
 0x702   : > { %v3949_v31 = vpack.c.bf16 %v3870_v26, %v3868_v24 }
 0x703   : > { %v3950_v32 = vpack.c.bf16 %v3871_v29, %v3869_v27  ;;  %v3767_v33 = vpop.f32.mrb[228].mxu0  ;;  %5247 = vmatpush3.bf16.msra.mxu1 %v5686_v22  ;;  %5135 = vmatpush3.bf16.msra.mxu0 %v5686_v22 }
 0x704   : > { %v3768_v34 = vadd.f32 %v3767_v33, %v6450_v6  ;;  %v3769_v4 = vpop.f32.mrb[229].mxu0 }
 0x705   : > { %v3770_v35 = vadd.f32 %v3769_v4, %v6453_v58  ;;  %v3771_v60 = vpop.f32.mrb[230].mxu0  ;;  %4250 = vmatprep.mubr.bf16.mxu0 %v3950_v32 }
 0x706   : > { %v3772_v37 = vadd.f32 %v3771_v60, %v6450_v6  ;;  %v3773_v40 = vpop.f32.mrb[231].mxu0  ;;  %4251 = vmatmul.mubr.bf16.gmra.mrb[32].mxu0 %v3949_v31  ;;  %v3872_v44 = vmax.f32 %v3768_v34, 0.0 }
 0x707   : > { %v3774_v41 = vadd.f32 %v3773_v40, %v6453_v58  ;;  %v3873_v42 = vmax.f32 %v3770_v35, 0.0 }
 0x708   : > { %v3874_v46 = vmax.f32 %v3772_v37, 0.0 }
 0x709   : > { %v3875_v43 = vmax.f32 %v3774_v41, 0.0 }
 0x70a   : > { %v3951_v10 = vpack.c.bf16 %v3874_v46, %v3872_v44 }
 0x70b   : > { %v3952_v3 = vpack.c.bf16 %v3875_v43, %v3873_v42  ;;  %v3777_v13 = vpop.f32.mrb[232].mxu0 }
 0x70c   : > { %v3778_v47 = vadd.f32 %v3777_v13, %v6450_v6  ;;  %v3779_v15 = vpop.f32.mrb[233].mxu0 }
 0x70d   : > { %v3780_v50 = vadd.f32 %v3779_v15, %v6453_v58  ;;  %v3781_v51 = vpop.f32.mrb[234].mxu0  ;;  %4260 = vmatprep.mubr.bf16.mxu0 %v3952_v3 }
 0x70e   : > { %v3782_v48 = vadd.f32 %v3781_v51, %v6450_v6  ;;  %v3783_v23 = vpop.f32.mrb[235].mxu0  ;;  %4261 = vmatmul.mubr.bf16.gmra.mrb[36].mxu0 %v3951_v10  ;;  %v3876_v30 = vmax.f32 %v3778_v47, 0.0 }
 0x70f   : > { %v3784_v49 = vadd.f32 %v3783_v23, %v6453_v58  ;;  %v3877_v45 = vmax.f32 %v3780_v50, 0.0 }
 0x710   : > { %v3878_v38 = vmax.f32 %v3782_v48, 0.0 }
 0x711   : > { %v3879_v52 = vmax.f32 %v3784_v49, 0.0 }
 0x712   : > { %v3953_v1 = vpack.c.bf16 %v3878_v38, %v3876_v30 }
 0x713   : > { %v3954_v5 = vpack.c.bf16 %v3879_v52, %v3877_v45  ;;  %v3787_v9 = vpop.f32.mrb[236].mxu0 }
 0x714   : > { %v3788_v0 = vadd.f32 %v3787_v9, %v6450_v6  ;;  %v3789_v18 = vpop.f32.mrb[237].mxu0 }
 0x715   : > { %v3790_v21 = vadd.f32 %v3789_v18, %v6453_v58  ;;  %v3791_v25 = vpop.f32.mrb[238].mxu0  ;;  %4270 = vmatprep.mubr.bf16.mxu0 %v3954_v5 }
 0x716   : > { %v3792_v28 = vadd.f32 %v3791_v25, %v6450_v6  ;;  %v3793_v53 = vpop.f32.mrb[239].mxu0  ;;  %4271 = vmatmul.mubr.bf16.gmra.mrb[40].mxu0 %v3953_v1  ;;  %v3880_v57 = vmax.f32 %v3788_v0, 0.0 }
 0x717   : > { %v3794_v56 = vadd.f32 %v3793_v53, %v6453_v58  ;;  %v3881_v55 = vmax.f32 %v3790_v21, 0.0 }
 0x718   : > { %v3882_v54 = vmax.f32 %v3792_v28, 0.0 }
 0x719   : > { %v3883_v59 = vmax.f32 %v3794_v56, 0.0 }
 0x71a   : > { %v3955_v63 = vpack.c.bf16 %v3882_v54, %v3880_v57 }
 0x71b   : > { %v3956_v62 = vpack.c.bf16 %v3883_v59, %v3881_v55  ;;  %v3797_v61 = vpop.f32.mrb[240].mxu0 }
 0x71c   : > { %v3798_v8 = vadd.f32 %v3797_v61, %v6450_v6  ;;  %v3799_v11 = vpop.f32.mrb[241].mxu0 }
 0x71d   : > { %v3800_v12 = vadd.f32 %v3799_v11, %v6453_v58  ;;  %v3801_v14 = vpop.f32.mrb[242].mxu0  ;;  %4280 = vmatprep.mubr.bf16.mxu0 %v3956_v62  ;;  %v5068_v62 = vld [vmem:[%s6754_s3 + $0x7] ss:$8 sm:$0x3] }
 0x71e   : > { %v3802_v16 = vadd.f32 %v3801_v14, %v6450_v6  ;;  %v3803_v17 = vpop.f32.mrb[243].mxu0  ;;  %4281 = vmatmul.mubr.bf16.gmra.mrb[44].mxu0 %v3955_v63  ;;  %v3884_v24 = vmax.f32 %v3798_v8, 0.0  ;;  %v6571_v61 = vrot.slane %v5068_v62, %v5946_v36 }
 0x71f   : > { %v3804_v20 = vadd.f32 %v3803_v17, %v6453_v58  ;;  %v3885_v27 = vmax.f32 %v3800_v12, 0.0 }
 0x720   : > { %v3886_v26 = vmax.f32 %v3802_v16, 0.0 }
 0x721   : > { %v3887_v29 = vmax.f32 %v3804_v20, 0.0 }
 0x722   : > { %v3957_v31 = vpack.c.bf16 %v3886_v26, %v3884_v24 }
 0x723   : > { %v3958_v32 = vpack.c.bf16 %v3887_v29, %v3885_v27  ;;  %v3807_v33 = vpop.f32.mrb[244].mxu0 }
 0x724   : > { %v3808_v34 = vadd.f32 %v3807_v33, %v6450_v6  ;;  %v3809_v4 = vpop.f32.mrb[245].mxu0 }
 0x725   : > { %v3810_v35 = vadd.f32 %v3809_v4, %v6453_v58  ;;  %v3811_v60 = vpop.f32.mrb[246].mxu0  ;;  %4290 = vmatprep.mubr.bf16.mxu0 %v3958_v32 }
 0x726   : > { %v3812_v37 = vadd.f32 %v3811_v60, %v6450_v6  ;;  %v3813_v40 = vpop.f32.mrb[247].mxu0  ;;  %4291 = vmatmul.mubr.bf16.gmra.mrb[48].mxu0 %v3957_v31  ;;  %v3888_v44 = vmax.f32 %v3808_v34, 0.0 }
 0x727   : > { %v3814_v41 = vadd.f32 %v3813_v40, %v6453_v58  ;;  %v3889_v42 = vmax.f32 %v3810_v35, 0.0 }
 0x728   : > { %v3890_v46 = vmax.f32 %v3812_v37, 0.0 }
 0x729   : > { %v3891_v43 = vmax.f32 %v3814_v41, 0.0 }
 0x72a   : > { %v3959_v10 = vpack.c.bf16 %v3890_v46, %v3888_v44 }
 0x72b   : > { %v3960_v3 = vpack.c.bf16 %v3891_v43, %v3889_v42  ;;  %v3817_v13 = vpop.f32.mrb[248].mxu0 }
 0x72c   : > { %v3818_v47 = vadd.f32 %v3817_v13, %v6450_v6  ;;  %v3819_v15 = vpop.f32.mrb[249].mxu0 }
 0x72d   : > { %v3820_v50 = vadd.f32 %v3819_v15, %v6453_v58  ;;  %v3821_v51 = vpop.f32.mrb[250].mxu0  ;;  %4300 = vmatprep.mubr.bf16.mxu0 %v3960_v3 }
 0x72e   : > { %v3822_v48 = vadd.f32 %v3821_v51, %v6450_v6  ;;  %v3823_v23 = vpop.f32.mrb[251].mxu0  ;;  %4301 = vmatmul.mubr.bf16.gmra.mrb[52].mxu0 %v3959_v10  ;;  %v3892_v30 = vmax.f32 %v3818_v47, 0.0 }
 0x72f   : > { %v3824_v49 = vadd.f32 %v3823_v23, %v6453_v58  ;;  %v3893_v45 = vmax.f32 %v3820_v50, 0.0 }
 0x730   : > { %v3894_v38 = vmax.f32 %v3822_v48, 0.0 }
 0x731   : > { %v3895_v52 = vmax.f32 %v3824_v49, 0.0 }
 0x732   : > { %v3961_v1 = vpack.c.bf16 %v3894_v38, %v3892_v30 }
 0x733   : > { %v3962_v5 = vpack.c.bf16 %v3895_v52, %v3893_v45  ;;  %v3827_v9 = vpop.f32.mrb[252].mxu0 }
 0x734   : > { %v3828_v0 = vadd.f32 %v3827_v9, %v6450_v6  ;;  %v3829_v18 = vpop.f32.mrb[253].mxu0 }
 0x735   : > { %v3830_v21 = vadd.f32 %v3829_v18, %v6453_v58  ;;  %v3831_v25 = vpop.f32.mrb[254].mxu0  ;;  %4310 = vmatprep.mubr.bf16.mxu0 %v3962_v5 }
 0x736   : > { %v3832_v28 = vadd.f32 %v3831_v25, %v6450_v6  ;;  %v3833_v53 = vpop.f32.mrb[255].mxu0  ;;  %4311 = vmatmul.mubr.bf16.gmra.mrb[56].mxu0 %v3961_v1  ;;  %v3896_v57 = vmax.f32 %v3828_v0, 0.0  ;;  %v6574_v6 = vrot.slane %v5068_v62, %v5951_v39 }
 0x737   : > { %v3834_v56 = vadd.f32 %v3833_v53, %v6453_v58  ;;  %v3897_v55 = vmax.f32 %v3830_v21, 0.0 }
 0x738   : > { %v3898_v54 = vmax.f32 %v3832_v28, 0.0 }
 0x739   : > { %v3899_v59 = vmax.f32 %v3834_v56, 0.0 }
 0x73a   : > { %v3963_v63 = vpack.c.bf16 %v3898_v54, %v3896_v57 }
 0x73b   : > { %v3964_v2 = vpack.c.bf16 %v3899_v59, %v3897_v55 }
 0x73d   : > { %4320 = vmatprep.mubr.bf16.mxu0 %v3964_v2 }
 0x73e   : > { %4321 = vmatmul.mubr.bf16.gmra.mrb[60].mxu0 %v3963_v63 }
 0x799   : > { %v4172_v7 = vpop.f32.mrb[0].mxu0 }
 0x79a   : > { %v4173_v58 = vadd.f32 %v4172_v7, %v6571_v61  ;;  %v4174_v8 = vpop.f32.mrb[1].mxu0 }
 0x79b   : > { %v4175_v11 = vadd.f32 %v4174_v8, %v6574_v6  ;;  %v4176_v12 = vpop.f32.mrb[2].mxu0 }
 0x79c   : > { %v4177_v14 = vadd.f32 %v4176_v12, %v6571_v61  ;;  %v4178_v16 = vpop.f32.mrb[3].mxu0  ;;  %v4331_v19 = vmax.f32 %v4173_v58, 0.0 }
 0x79d   : > { %v4179_v17 = vadd.f32 %v4178_v16, %v6574_v6  ;;  %v4332_v22 = vmax.f32 %v4175_v11, 0.0 }
 0x79e   : > { %v4333_v20 = vmax.f32 %v4177_v14, 0.0 }
 0x79f   : > { %v4334_v36 = vmax.f32 %v4179_v17, 0.0 }
 0x7a0   : > { %v4427_v24 = vpack.c.bf16 %v4333_v20, %v4331_v19 }
 0x7a1   : > { %v4428_v26 = vpack.c.bf16 %v4334_v36, %v4332_v22  ;;  %v4182_v39 = vpop.f32.mrb[4].mxu0 }
 0x7a2   : > { %v4183_v27 = vadd.f32 %v4182_v39, %v6571_v61  ;;  %v4184_v29 = vpop.f32.mrb[5].mxu0 }
 0x7a3   : > { %v4185_v31 = vadd.f32 %v4184_v29, %v6574_v6  ;;  %v4186_v32 = vpop.f32.mrb[6].mxu0  ;;  %4594 = vmatprep.mubr.bf16.mxu0 %v4428_v26 }
 0x7a4   : > { %v4187_v33 = vadd.f32 %v4186_v32, %v6571_v61  ;;  %v4188_v34 = vpop.f32.mrb[7].mxu0  ;;  %4595 = vmatmul.mubr.bf16.vlgmr.msra.gmra.mrb[64].mxu0 %v4427_v24  ;;  %v4335_v35 = vmax.f32 %v4183_v27, 0.0 }
 0x7a5   : > { %v4189_v4 = vadd.f32 %v4188_v34, %v6574_v6  ;;  %v4336_v37 = vmax.f32 %v4185_v31, 0.0 }
 0x7a6   : > { %v4337_v60 = vmax.f32 %v4187_v33, 0.0 }
 0x7a7   : > { %v4338_v40 = vmax.f32 %v4189_v4, 0.0 }
 0x7a8   : > { %v4429_v41 = vpack.c.bf16 %v4337_v60, %v4335_v35 }
 0x7a9   : > { %v4430_v44 = vpack.c.bf16 %v4338_v40, %v4336_v37  ;;  %v4192_v46 = vpop.f32.mrb[8].mxu0 }
 0x7aa   : > { %v4193_v42 = vadd.f32 %v4192_v46, %v6571_v61  ;;  %v4194_v43 = vpop.f32.mrb[9].mxu0 }
 0x7ab   : > { %v4195_v10 = vadd.f32 %v4194_v43, %v6574_v6  ;;  %v4196_v3 = vpop.f32.mrb[10].mxu0  ;;  %4602 = vmatprep.mubr.bf16.mxu0 %v4430_v44 }
 0x7ac   : > { %v4197_v13 = vadd.f32 %v4196_v3, %v6571_v61  ;;  %v4198_v47 = vpop.f32.mrb[11].mxu0  ;;  %4603 = vmatmul.mubr.bf16.gmra.mrb[68].mxu0 %v4429_v41  ;;  %v4339_v50 = vmax.f32 %v4193_v42, 0.0 }
 0x7ad   : > { %v4199_v15 = vadd.f32 %v4198_v47, %v6574_v6  ;;  %v4340_v48 = vmax.f32 %v4195_v10, 0.0 }
 0x7ae   : > { %v4341_v51 = vmax.f32 %v4197_v13, 0.0 }
 0x7af   : > { %v4342_v23 = vmax.f32 %v4199_v15, 0.0 }
 0x7b0   : > { %v4431_v49 = vpack.c.bf16 %v4341_v51, %v4339_v50 }
 0x7b1   : > { %v4432_v30 = vpack.c.bf16 %v4342_v23, %v4340_v48  ;;  %v4202_v38 = vpop.f32.mrb[12].mxu0 }
 0x7b2   : > { %v4203_v45 = vadd.f32 %v4202_v38, %v6571_v61  ;;  %v4204_v52 = vpop.f32.mrb[13].mxu0 }
 0x7b3   : > { %v4205_v1 = vadd.f32 %v4204_v52, %v6574_v6  ;;  %v4206_v5 = vpop.f32.mrb[14].mxu0  ;;  %4610 = vmatprep.mubr.bf16.mxu0 %v4432_v30 }
 0x7b4   : > { %v4207_v9 = vadd.f32 %v4206_v5, %v6571_v61  ;;  %v4208_v0 = vpop.f32.mrb[15].mxu0  ;;  %4611 = vmatmul.mubr.bf16.gmra.mrb[72].mxu0 %v4431_v49  ;;  %v4343_v21 = vmax.f32 %v4203_v45, 0.0 }
 0x7b5   : > { %v4209_v18 = vadd.f32 %v4208_v0, %v6574_v6  ;;  %v4344_v28 = vmax.f32 %v4205_v1, 0.0 }
 0x7b6   : > { %v4345_v25 = vmax.f32 %v4207_v9, 0.0 }
 0x7b7   : > { %v4346_v53 = vmax.f32 %v4209_v18, 0.0 }
 0x7b8   : > { %v4433_v56 = vpack.c.bf16 %v4345_v25, %v4343_v21 }
 0x7b9   : > { %v4434_v57 = vpack.c.bf16 %v4346_v53, %v4344_v28  ;;  %v4212_v54 = vpop.f32.mrb[16].mxu0 }
 0x7ba   : > { %v4213_v55 = vadd.f32 %v4212_v54, %v6571_v61  ;;  %v4214_v59 = vpop.f32.mrb[17].mxu0 }
 0x7bb   : > { %v4215_v63 = vadd.f32 %v4214_v59, %v6574_v6  ;;  %v4216_v2 = vpop.f32.mrb[18].mxu0  ;;  %4618 = vmatprep.mubr.bf16.mxu1 %v4434_v57 }
 0x7bc   : > { %v4217_v62 = vadd.f32 %v4216_v2, %v6571_v61  ;;  %v4218_v7 = vpop.f32.mrb[19].mxu0  ;;  %4619 = vmatmul.mubr.bf16.vlgmr.msra.gmra.mrb[192].mxu1 %v4433_v56  ;;  %v4347_v8 = vmax.f32 %v4213_v55, 0.0 }
 0x7bd   : > { %v4219_v58 = vadd.f32 %v4218_v7, %v6574_v6  ;;  %v4348_v12 = vmax.f32 %v4215_v63, 0.0 }
 0x7be   : > { %v4349_v11 = vmax.f32 %v4217_v62, 0.0 }
 0x7bf   : > { %v4350_v14 = vmax.f32 %v4219_v58, 0.0 }
 0x7c0   : > { %v4435_v16 = vpack.c.bf16 %v4349_v11, %v4347_v8 }
 0x7c1   : > { %v4436_v17 = vpack.c.bf16 %v4350_v14, %v4348_v12  ;;  %v4222_v19 = vpop.f32.mrb[20].mxu0 }
 0x7c2   : > { %v4223_v20 = vadd.f32 %v4222_v19, %v6571_v61  ;;  %v4224_v22 = vpop.f32.mrb[21].mxu0 }
 0x7c3   : > { %v4225_v36 = vadd.f32 %v4224_v22, %v6574_v6  ;;  %v4226_v24 = vpop.f32.mrb[22].mxu0  ;;  %4626 = vmatprep.mubr.bf16.mxu1 %v4436_v17 }
 0x7c4   : > { %v4227_v26 = vadd.f32 %v4226_v24, %v6571_v61  ;;  %v4228_v39 = vpop.f32.mrb[23].mxu0  ;;  %4627 = vmatmul.mubr.bf16.gmra.mrb[196].mxu1 %v4435_v16  ;;  %v4351_v29 = vmax.f32 %v4223_v20, 0.0 }
 0x7c5   : > { %v4229_v27 = vadd.f32 %v4228_v39, %v6574_v6  ;;  %v4352_v32 = vmax.f32 %v4225_v36, 0.0 }
 0x7c6   : > { %v4353_v31 = vmax.f32 %v4227_v26, 0.0 }
 0x7c7   : > { %v4354_v33 = vmax.f32 %v4229_v27, 0.0 }
 0x7c8   : > { %v4437_v34 = vpack.c.bf16 %v4353_v31, %v4351_v29 }
 0x7c9   : > { %v4438_v4 = vpack.c.bf16 %v4354_v33, %v4352_v32  ;;  %v4232_v35 = vpop.f32.mrb[24].mxu0 }
 0x7ca   : > { %v4233_v60 = vadd.f32 %v4232_v35, %v6571_v61  ;;  %v4234_v37 = vpop.f32.mrb[25].mxu0 }
 0x7cb   : > { %v4235_v40 = vadd.f32 %v4234_v37, %v6574_v6  ;;  %v4236_v41 = vpop.f32.mrb[26].mxu0  ;;  %4634 = vmatprep.mubr.bf16.mxu1 %v4438_v4 }
 0x7cc   : > { %v4237_v44 = vadd.f32 %v4236_v41, %v6571_v61  ;;  %v4238_v46 = vpop.f32.mrb[27].mxu0  ;;  %4635 = vmatmul.mubr.bf16.gmra.mrb[200].mxu1 %v4437_v34  ;;  %v4355_v43 = vmax.f32 %v4233_v60, 0.0 }
 0x7cd   : > { %v4239_v42 = vadd.f32 %v4238_v46, %v6574_v6  ;;  %v4356_v3 = vmax.f32 %v4235_v40, 0.0 }
 0x7ce   : > { %v4357_v10 = vmax.f32 %v4237_v44, 0.0 }
 0x7cf   : > { %v4358_v13 = vmax.f32 %v4239_v42, 0.0 }
 0x7d0   : > { %v4439_v47 = vpack.c.bf16 %v4357_v10, %v4355_v43 }
 0x7d1   : > { %v4440_v15 = vpack.c.bf16 %v4358_v13, %v4356_v3  ;;  %v4242_v50 = vpop.f32.mrb[28].mxu0 }
 0x7d2   : > { %v4243_v51 = vadd.f32 %v4242_v50, %v6571_v61  ;;  %v4244_v48 = vpop.f32.mrb[29].mxu0 }
 0x7d3   : > { %v4245_v23 = vadd.f32 %v4244_v48, %v6574_v6  ;;  %v4246_v49 = vpop.f32.mrb[30].mxu0  ;;  %4642 = vmatprep.mubr.bf16.mxu1 %v4440_v15 }
 0x7d4   : > { %v4247_v30 = vadd.f32 %v4246_v49, %v6571_v61  ;;  %v4248_v38 = vpop.f32.mrb[31].mxu0  ;;  %4643 = vmatmul.mubr.bf16.gmra.mrb[204].mxu1 %v4439_v47  ;;  %v4359_v52 = vmax.f32 %v4243_v51, 0.0 }
 0x7d5   : > { %v4249_v45 = vadd.f32 %v4248_v38, %v6574_v6  ;;  %v4360_v5 = vmax.f32 %v4245_v23, 0.0 }
 0x7d6   : > { %v4361_v1 = vmax.f32 %v4247_v30, 0.0 }
 0x7d7   : > { %v4362_v9 = vmax.f32 %v4249_v45, 0.0 }
 0x7d8   : > { %v4441_v0 = vpack.c.bf16 %v4361_v1, %v4359_v52 }
 0x7d9   : > { %v4442_v18 = vpack.c.bf16 %v4362_v9, %v4360_v5  ;;  %v4252_v21 = vpop.f32.mrb[32].mxu0 }
 0x7da   : > { %v4253_v25 = vadd.f32 %v4252_v21, %v6571_v61  ;;  %v4254_v28 = vpop.f32.mrb[33].mxu0 }
 0x7db   : > { %v4255_v53 = vadd.f32 %v4254_v28, %v6574_v6  ;;  %v4256_v56 = vpop.f32.mrb[34].mxu0  ;;  %4650 = vmatprep.mubr.bf16.mxu1 %v4442_v18 }
 0x7dc   : > { %v4257_v57 = vadd.f32 %v4256_v56, %v6571_v61  ;;  %v4258_v54 = vpop.f32.mrb[35].mxu0  ;;  %4651 = vmatmul.mubr.bf16.gmra.mrb[208].mxu1 %v4441_v0  ;;  %v4363_v59 = vmax.f32 %v4253_v25, 0.0 }
 0x7dd   : > { %v4259_v55 = vadd.f32 %v4258_v54, %v6574_v6  ;;  %v4364_v2 = vmax.f32 %v4255_v53, 0.0 }
 0x7de   : > { %v4365_v63 = vmax.f32 %v4257_v57, 0.0 }
 0x7df   : > { %v4366_v62 = vmax.f32 %v4259_v55, 0.0 }
 0x7e0   : > { %v4443_v7 = vpack.c.bf16 %v4365_v63, %v4363_v59 }
 0x7e1   : > { %v4444_v58 = vpack.c.bf16 %v4366_v62, %v4364_v2  ;;  %v4262_v8 = vpop.f32.mrb[36].mxu0 }
 0x7e2   : > { %v4263_v11 = vadd.f32 %v4262_v8, %v6571_v61  ;;  %v4264_v12 = vpop.f32.mrb[37].mxu0 }
 0x7e3   : > { %v4265_v14 = vadd.f32 %v4264_v12, %v6574_v6  ;;  %v4266_v16 = vpop.f32.mrb[38].mxu0  ;;  %4658 = vmatprep.mubr.bf16.mxu1 %v4444_v58 }
 0x7e4   : > { %v4267_v17 = vadd.f32 %v4266_v16, %v6571_v61  ;;  %v4268_v19 = vpop.f32.mrb[39].mxu0  ;;  %4659 = vmatmul.mubr.bf16.gmra.mrb[212].mxu1 %v4443_v7  ;;  %v4367_v22 = vmax.f32 %v4263_v11, 0.0 }
 0x7e5   : > { %v4269_v20 = vadd.f32 %v4268_v19, %v6574_v6  ;;  %v4368_v24 = vmax.f32 %v4265_v14, 0.0 }
 0x7e6   : > { %v4369_v36 = vmax.f32 %v4267_v17, 0.0 }
 0x7e7   : > { %v4370_v26 = vmax.f32 %v4269_v20, 0.0 }
 0x7e8   : > { %v4445_v39 = vpack.c.bf16 %v4369_v36, %v4367_v22 }
 0x7e9   : > { %v4446_v27 = vpack.c.bf16 %v4370_v26, %v4368_v24  ;;  %v4272_v29 = vpop.f32.mrb[40].mxu0 }
 0x7ea   : > { %v4273_v31 = vadd.f32 %v4272_v29, %v6571_v61  ;;  %v4274_v32 = vpop.f32.mrb[41].mxu0 }
 0x7eb   : > { %v4275_v33 = vadd.f32 %v4274_v32, %v6574_v6  ;;  %v4276_v34 = vpop.f32.mrb[42].mxu0  ;;  %4666 = vmatprep.mubr.bf16.mxu1 %v4446_v27 }
 0x7ec   : > { %v4277_v4 = vadd.f32 %v4276_v34, %v6571_v61  ;;  %v4278_v35 = vpop.f32.mrb[43].mxu0  ;;  %4667 = vmatmul.mubr.bf16.gmra.mrb[216].mxu1 %v4445_v39  ;;  %v4371_v37 = vmax.f32 %v4273_v31, 0.0 }
 0x7ed   : > { %v4279_v60 = vadd.f32 %v4278_v35, %v6574_v6  ;;  %v4372_v41 = vmax.f32 %v4275_v33, 0.0 }
 0x7ee   : > { %v4373_v40 = vmax.f32 %v4277_v4, 0.0 }
 0x7ef   : > { %v4374_v44 = vmax.f32 %v4279_v60, 0.0 }
 0x7f0   : > { %v4447_v46 = vpack.c.bf16 %v4373_v40, %v4371_v37 }
 0x7f1   : > { %v4448_v42 = vpack.c.bf16 %v4374_v44, %v4372_v41  ;;  %v4282_v43 = vpop.f32.mrb[44].mxu0 }
 0x7f2   : > { %v4283_v10 = vadd.f32 %v4282_v43, %v6571_v61  ;;  %v4284_v3 = vpop.f32.mrb[45].mxu0 }
 0x7f3   : > { %v4285_v13 = vadd.f32 %v4284_v3, %v6574_v6  ;;  %v4286_v47 = vpop.f32.mrb[46].mxu0  ;;  %4674 = vmatprep.mubr.bf16.mxu1 %v4448_v42 }
 0x7f4   : > { %v4287_v15 = vadd.f32 %v4286_v47, %v6571_v61  ;;  %v4288_v50 = vpop.f32.mrb[47].mxu0  ;;  %4675 = vmatmul.mubr.bf16.gmra.mrb[220].mxu1 %v4447_v46  ;;  %v4375_v48 = vmax.f32 %v4283_v10, 0.0 }
 0x7f5   : > { %v4289_v51 = vadd.f32 %v4288_v50, %v6574_v6  ;;  %v4376_v49 = vmax.f32 %v4285_v13, 0.0 }
 0x7f6   : > { %v4377_v23 = vmax.f32 %v4287_v15, 0.0 }
 0x7f7   : > { %v4378_v30 = vmax.f32 %v4289_v51, 0.0 }
 0x7f8   : > { %v4449_v38 = vpack.c.bf16 %v4377_v23, %v4375_v48  ;;  %v6643_v23 = vld [vmem:[%s6756_s5] ss:$0 sm:$0xff] }
 0x7f9   : > { %v4450_v45 = vpack.c.bf16 %v4378_v30, %v4376_v49  ;;  %v4292_v52 = vpop.f32.mrb[48].mxu0 }
 0x7fa   : > { %v4293_v1 = vadd.f32 %v4292_v52, %v6571_v61  ;;  %v4294_v5 = vpop.f32.mrb[49].mxu0 }
 0x7fb   : > { %v4295_v9 = vadd.f32 %v4294_v5, %v6574_v6  ;;  %v4296_v0 = vpop.f32.mrb[50].mxu0  ;;  %4682 = vmatprep.mubr.bf16.mxu1 %v4450_v45 }
 0x7fc   : > { %v4297_v18 = vadd.f32 %v4296_v0, %v6571_v61  ;;  %v4298_v21 = vpop.f32.mrb[51].mxu0  ;;  %4683 = vmatmul.mubr.bf16.gmra.mrb[224].mxu1 %v4449_v38  ;;  %v4379_v28 = vmax.f32 %v4293_v1, 0.0 }
 0x7fd   : > { %v4299_v25 = vadd.f32 %v4298_v21, %v6574_v6  ;;  %v4380_v56 = vmax.f32 %v4295_v9, 0.0 }
 0x7fe   : > { %v4381_v53 = vmax.f32 %v4297_v18, 0.0 }
 0x7ff   : > { %v4382_v57 = vmax.f32 %v4299_v25, 0.0 }
 0x800   : > { %v4451_v54 = vpack.c.bf16 %v4381_v53, %v4379_v28 }
 0x801   : > { %v4452_v55 = vpack.c.bf16 %v4382_v57, %v4380_v56  ;;  %v4302_v59 = vpop.f32.mrb[52].mxu0 }
 0x802   : > { %v4303_v63 = vadd.f32 %v4302_v59, %v6571_v61  ;;  %v4304_v2 = vpop.f32.mrb[53].mxu0 }
 0x803   : > { %v4305_v62 = vadd.f32 %v4304_v2, %v6574_v6  ;;  %v4306_v7 = vpop.f32.mrb[54].mxu0  ;;  %4690 = vmatprep.mubr.bf16.mxu1 %v4452_v55 }
 0x804   : > { %v4307_v58 = vadd.f32 %v4306_v7, %v6571_v61  ;;  %v4308_v8 = vpop.f32.mrb[55].mxu0  ;;  %4691 = vmatmul.mubr.bf16.gmra.mrb[228].mxu1 %v4451_v54  ;;  %v4383_v12 = vmax.f32 %v4303_v63, 0.0 }
 0x805   : > { %v4309_v11 = vadd.f32 %v4308_v8, %v6574_v6  ;;  %v4384_v16 = vmax.f32 %v4305_v62, 0.0 }
 0x806   : > { %v4385_v14 = vmax.f32 %v4307_v58, 0.0 }
 0x807   : > { %v4386_v17 = vmax.f32 %v4309_v11, 0.0 }
 0x808   : > { %v4453_v19 = vpack.c.bf16 %v4385_v14, %v4383_v12 }
 0x809   : > { %v4454_v20 = vpack.c.bf16 %v4386_v17, %v4384_v16  ;;  %v4312_v22 = vpop.f32.mrb[56].mxu0 }
 0x80a   : > { %v4313_v36 = vadd.f32 %v4312_v22, %v6571_v61  ;;  %v4314_v24 = vpop.f32.mrb[57].mxu0 }
 0x80b   : > { %v4315_v26 = vadd.f32 %v4314_v24, %v6574_v6  ;;  %v4316_v39 = vpop.f32.mrb[58].mxu0  ;;  %4698 = vmatprep.mubr.bf16.mxu1 %v4454_v20 }
 0x80c   : > { %v4317_v27 = vadd.f32 %v4316_v39, %v6571_v61  ;;  %v4318_v29 = vpop.f32.mrb[59].mxu0  ;;  %4699 = vmatmul.mubr.bf16.gmra.mrb[232].mxu1 %v4453_v19  ;;  %v4387_v32 = vmax.f32 %v4313_v36, 0.0 }
 0x80d   : > { %v4319_v31 = vadd.f32 %v4318_v29, %v6574_v6  ;;  %v4388_v34 = vmax.f32 %v4315_v26, 0.0 }
 0x80e   : > { %v4389_v33 = vmax.f32 %v4317_v27, 0.0 }
 0x80f   : > { %v4390_v4 = vmax.f32 %v4319_v31, 0.0 }
 0x810   : > { %v4455_v35 = vpack.c.bf16 %v4389_v33, %v4387_v32 }
 0x811   : > { %v4456_v60 = vpack.c.bf16 %v4390_v4, %v4388_v34  ;;  %v4322_v37 = vpop.f32.mrb[60].mxu0 }
 0x812   : > { %v4323_v40 = vadd.f32 %v4322_v37, %v6571_v61  ;;  %v4324_v41 = vpop.f32.mrb[61].mxu0 }
 0x813   : > { %v4325_v44 = vadd.f32 %v4324_v41, %v6574_v6  ;;  %v4326_v46 = vpop.f32.mrb[62].mxu0  ;;  %4706 = vmatprep.mubr.bf16.mxu1 %v4456_v60 }
 0x814   : > { %v4327_v42 = vadd.f32 %v4326_v46, %v6571_v61  ;;  %v4328_v43 = vpop.f32.mrb[63].mxu0  ;;  %4707 = vmatmul.mubr.bf16.gmra.mrb[236].mxu1 %v4455_v35  ;;  %v4391_v3 = vmax.f32 %v4323_v40, 0.0 }
 0x815   : > { %v4329_v10 = vadd.f32 %v4328_v43, %v6574_v6  ;;  %v4392_v47 = vmax.f32 %v4325_v44, 0.0 }
 0x816   : > { %v4393_v13 = vmax.f32 %v4327_v42, 0.0 }
 0x817   : > { %v4394_v15 = vmax.f32 %v4329_v10, 0.0 }
 0x818   : > { %v4457_v50 = vpack.c.bf16 %v4393_v13, %v4391_v3 }
 0x819   : > { %v4458_v51 = vpack.c.bf16 %v4394_v15, %v4392_v47 }
 0x81b   : > { %4714 = vmatprep.mubr.bf16.mxu1 %v4458_v51 }
 0x81c   : > { %4715 = vmatmul.mubr.bf16.gmra.mrb[240].mxu1 %v4457_v50 }
 0x877   : > { %v5136_v48 = vpop.f32.mrb[64].mxu0 }
 0x878   : > { %v5137_v61 = vpop.f32.mrb[65].mxu0 }
 0x879   : > { %v5138_v49 = vadd.f32 %v5137_v61, %v5136_v48  ;;  %v5139_v30 = vpop.f32.mrb[66].mxu0 }
 0x87a   : > { %v5140_v6 = vpop.f32.mrb[67].mxu0 }
 0x87b   : > { %v4597_v38 = vadd.f32 %v5138_v49, %v6643_v23  ;;  %v5141_v45 = vadd.f32 %v5140_v6, %v5139_v30 }
 0x87d   : > { %4724 = vst.msk [vmem:[%s6650_s12] sm:$0xff] %vm4723_vm3, %v4597_v38  ;;  %v4600_v52 = vadd.f32 %v5141_v45, %v6643_v23 }
 0x87f   : > { %4725 = vst.msk [vmem:[%s6650_s12 + $0x8] sm:$0xff] %vm4723_vm3, %v4600_v52  ;;  %v5142_v1 = vpop.f32.mrb[68].mxu0 }
 0x880   : > { %v5143_v5 = vpop.f32.mrb[69].mxu0 }
 0x881   : > { %v5144_v9 = vadd.f32 %v5143_v5, %v5142_v1  ;;  %v5145_v0 = vpop.f32.mrb[70].mxu0 }
 0x882   : > { %v5146_v18 = vpop.f32.mrb[71].mxu0 }
 0x883   : > { %v4605_v21 = vadd.f32 %v5144_v9, %v6643_v23  ;;  %v5147_v25 = vadd.f32 %v5146_v18, %v5145_v0 }
 0x885   : > { %4726 = vst.msk [vmem:[%s6650_s12 + $0x10] sm:$0xff] %vm4723_vm3, %v4605_v21  ;;  %v4608_v28 = vadd.f32 %v5147_v25, %v6643_v23 }
 0x887   : > { %4727 = vst.msk [vmem:[%s6650_s12 + $0x18] sm:$0xff] %vm4723_vm3, %v4608_v28  ;;  %v5148_v53 = vpop.f32.mrb[72].mxu0 }
 0x888   : > { %v5149_v56 = vpop.f32.mrb[73].mxu0 }
 0x889   : > { %v5150_v57 = vadd.f32 %v5149_v56, %v5148_v53  ;;  %v5151_v54 = vpop.f32.mrb[74].mxu0 }
 0x88a   : > { %v5152_v55 = vpop.f32.mrb[75].mxu0 }
 0x88b   : > { %v4613_v59 = vadd.f32 %v5150_v57, %v6643_v23  ;;  %v5153_v63 = vadd.f32 %v5152_v55, %v5151_v54 }
 0x88d   : > { %4728 = vst.msk [vmem:[%s6650_s12 + $0x20] sm:$0xff] %vm4723_vm3, %v4613_v59  ;;  %v4616_v2 = vadd.f32 %v5153_v63, %v6643_v23 }
 0x88f   : > { %4729 = vst.msk [vmem:[%s6650_s12 + $0x28] sm:$0xff] %vm4723_vm3, %v4616_v2  ;;  %v5154_v62 = vpop.f32.mrb[192].mxu1 }
 0x890   : > { %v5155_v7 = vpop.f32.mrb[193].mxu1 }
 0x891   : > { %v5156_v58 = vadd.f32 %v5155_v7, %v5154_v62  ;;  %v5157_v8 = vpop.f32.mrb[194].mxu1 }
 0x892   : > { %v5158_v11 = vpop.f32.mrb[195].mxu1 }
 0x893   : > { %v4621_v12 = vadd.f32 %v5156_v58, %v6643_v23  ;;  %v5159_v14 = vadd.f32 %v5158_v11, %v5157_v8 }
 0x895   : > { %4730 = vst.msk [vmem:[%s6650_s12 + $0x30] sm:$0xff] %vm4723_vm3, %v4621_v12  ;;  %v4624_v16 = vadd.f32 %v5159_v14, %v6643_v23 }
 0x897   : > { %4731 = vst.msk [vmem:[%s6650_s12 + $0x38] sm:$0xff] %vm4723_vm3, %v4624_v16  ;;  %v5160_v17 = vpop.f32.mrb[196].mxu1 }
 0x898   : > { %v5161_v19 = vpop.f32.mrb[197].mxu1 }
 0x899   : > { %v5162_v20 = vadd.f32 %v5161_v19, %v5160_v17  ;;  %v5163_v22 = vpop.f32.mrb[198].mxu1 }
 0x89a   : > { %v5164_v36 = vpop.f32.mrb[199].mxu1 }
 0x89b   : > { %v4629_v24 = vadd.f32 %v5162_v20, %v6643_v23  ;;  %v5165_v26 = vadd.f32 %v5164_v36, %v5163_v22 }
 0x89d   : > { %4732 = vst.msk [vmem:[%s6650_s12 + $0x40] sm:$0xff] %vm4723_vm3, %v4629_v24  ;;  %v4632_v39 = vadd.f32 %v5165_v26, %v6643_v23 }
 0x89f   : > { %4733 = vst.msk [vmem:[%s6650_s12 + $0x48] sm:$0xff] %vm4723_vm3, %v4632_v39  ;;  %v5166_v27 = vpop.f32.mrb[200].mxu1 }
 0x8a0   : > { %v5167_v29 = vpop.f32.mrb[201].mxu1 }
 0x8a1   : > { %v5168_v31 = vadd.f32 %v5167_v29, %v5166_v27  ;;  %v5169_v32 = vpop.f32.mrb[202].mxu1 }
 0x8a2   : > { %v5170_v33 = vpop.f32.mrb[203].mxu1 }
 0x8a3   : > { %v4637_v34 = vadd.f32 %v5168_v31, %v6643_v23  ;;  %v5171_v4 = vadd.f32 %v5170_v33, %v5169_v32 }
 0x8a5   : > { %4734 = vst.msk [vmem:[%s6650_s12 + $0x50] sm:$0xff] %vm4723_vm3, %v4637_v34  ;;  %v4640_v35 = vadd.f32 %v5171_v4, %v6643_v23 }
 0x8a7   : > { %4735 = vst.msk [vmem:[%s6650_s12 + $0x58] sm:$0xff] %vm4723_vm3, %v4640_v35  ;;  %v5172_v60 = vpop.f32.mrb[204].mxu1 }
 0x8a8   : > { %v5173_v37 = vpop.f32.mrb[205].mxu1 }
 0x8a9   : > { %v5174_v40 = vadd.f32 %v5173_v37, %v5172_v60  ;;  %v5175_v41 = vpop.f32.mrb[206].mxu1 }
 0x8aa   : > { %v5176_v44 = vpop.f32.mrb[207].mxu1 }
 0x8ab   : > { %v4645_v46 = vadd.f32 %v5174_v40, %v6643_v23  ;;  %v5177_v42 = vadd.f32 %v5176_v44, %v5175_v41 }
 0x8ad   : > { %4736 = vst.msk [vmem:[%s6650_s12 + $0x60] sm:$0xff] %vm4723_vm3, %v4645_v46  ;;  %v4648_v43 = vadd.f32 %v5177_v42, %v6643_v23 }
 0x8af   : > { %4737 = vst.msk [vmem:[%s6650_s12 + $0x68] sm:$0xff] %vm4723_vm3, %v4648_v43  ;;  %v5178_v10 = vpop.f32.mrb[208].mxu1 }
 0x8b0   : > { %v5179_v3 = vpop.f32.mrb[209].mxu1 }
 0x8b1   : > { %v5180_v13 = vadd.f32 %v5179_v3, %v5178_v10  ;;  %v5181_v47 = vpop.f32.mrb[210].mxu1 }
 0x8b2   : > { %v5182_v15 = vpop.f32.mrb[211].mxu1 }
 0x8b3   : > { %v4653_v50 = vadd.f32 %v5180_v13, %v6643_v23  ;;  %v5183_v51 = vadd.f32 %v5182_v15, %v5181_v47 }
 0x8b5   : > { %4738 = vst.msk [vmem:[%s6650_s12 + $0x70] sm:$0xff] %vm4723_vm3, %v4653_v50  ;;  %v4656_v48 = vadd.f32 %v5183_v51, %v6643_v23 }
 0x8b7   : > { %4739 = vst.msk [vmem:[%s6650_s12 + $0x78] sm:$0xff] %vm4723_vm3, %v4656_v48  ;;  %v5184_v61 = vpop.f32.mrb[212].mxu1 }
 0x8b8   : > { %v5185_v49 = vpop.f32.mrb[213].mxu1 }
 0x8b9   : > { %v5186_v30 = vadd.f32 %v5185_v49, %v5184_v61  ;;  %v5187_v6 = vpop.f32.mrb[214].mxu1 }
 0x8ba   : > { %v5188_v38 = vpop.f32.mrb[215].mxu1 }
 0x8bb   : > { %v4661_v45 = vadd.f32 %v5186_v30, %v6643_v23  ;;  %v5189_v52 = vadd.f32 %v5188_v38, %v5187_v6 }
 0x8bd   : > { %4740 = vst.msk [vmem:[%s6650_s12 + $0x80] sm:$0xff] %vm4723_vm3, %v4661_v45  ;;  %v4664_v1 = vadd.f32 %v5189_v52, %v6643_v23 }
 0x8bf   : > { %4741 = vst.msk [vmem:[%s6650_s12 + $0x88] sm:$0xff] %vm4723_vm3, %v4664_v1  ;;  %v5190_v5 = vpop.f32.mrb[216].mxu1 }
 0x8c0   : > { %v5191_v9 = vpop.f32.mrb[217].mxu1 }
 0x8c1   : > { %v5192_v0 = vadd.f32 %v5191_v9, %v5190_v5  ;;  %v5193_v18 = vpop.f32.mrb[218].mxu1 }
 0x8c2   : > { %v5194_v21 = vpop.f32.mrb[219].mxu1 }
 0x8c3   : > { %v4669_v25 = vadd.f32 %v5192_v0, %v6643_v23  ;;  %v5195_v28 = vadd.f32 %v5194_v21, %v5193_v18 }
 0x8c5   : > { %4742 = vst.msk [vmem:[%s6650_s12 + $0x90] sm:$0xff] %vm4723_vm3, %v4669_v25  ;;  %v4672_v53 = vadd.f32 %v5195_v28, %v6643_v23 }
 0x8c7   : > { %4743 = vst.msk [vmem:[%s6650_s12 + $0x98] sm:$0xff] %vm4723_vm3, %v4672_v53  ;;  %v5196_v56 = vpop.f32.mrb[220].mxu1 }
 0x8c8   : > { %v5197_v57 = vpop.f32.mrb[221].mxu1 }
 0x8c9   : > { %v5198_v54 = vadd.f32 %v5197_v57, %v5196_v56  ;;  %v5199_v55 = vpop.f32.mrb[222].mxu1 }
 0x8ca   : > { %v5200_v59 = vpop.f32.mrb[223].mxu1 }
 0x8cb   : > { %v4677_v63 = vadd.f32 %v5198_v54, %v6643_v23  ;;  %v5201_v2 = vadd.f32 %v5200_v59, %v5199_v55 }
 0x8cd   : > { %4744 = vst.msk [vmem:[%s6650_s12 + $0xa0] sm:$0xff] %vm4723_vm3, %v4677_v63  ;;  %v4680_v62 = vadd.f32 %v5201_v2, %v6643_v23 }
 0x8cf   : > { %4745 = vst.msk [vmem:[%s6650_s12 + $0xa8] sm:$0xff] %vm4723_vm3, %v4680_v62  ;;  %v5202_v7 = vpop.f32.mrb[224].mxu1 }
 0x8d0   : > { %v5203_v58 = vpop.f32.mrb[225].mxu1 }
 0x8d1   : > { %v5204_v8 = vadd.f32 %v5203_v58, %v5202_v7  ;;  %v5205_v11 = vpop.f32.mrb[226].mxu1 }
 0x8d2   : > { %v5206_v12 = vpop.f32.mrb[227].mxu1 }
 0x8d3   : > { %v4685_v14 = vadd.f32 %v5204_v8, %v6643_v23  ;;  %v5207_v16 = vadd.f32 %v5206_v12, %v5205_v11 }
 0x8d5   : > { %4746 = vst.msk [vmem:[%s6650_s12 + $0xb0] sm:$0xff] %vm4723_vm3, %v4685_v14  ;;  %v4688_v17 = vadd.f32 %v5207_v16, %v6643_v23 }
 0x8d7   : > { %4747 = vst.msk [vmem:[%s6650_s12 + $0xb8] sm:$0xff] %vm4723_vm3, %v4688_v17  ;;  %v5208_v19 = vpop.f32.mrb[228].mxu1 }
 0x8d8   : > { %v5209_v20 = vpop.f32.mrb[229].mxu1 }
 0x8d9   : > { %v5210_v22 = vadd.f32 %v5209_v20, %v5208_v19  ;;  %v5211_v36 = vpop.f32.mrb[230].mxu1 }
 0x8da   : > { %v5212_v24 = vpop.f32.mrb[231].mxu1 }
 0x8db   : > { %v4693_v26 = vadd.f32 %v5210_v22, %v6643_v23  ;;  %v5213_v39 = vadd.f32 %v5212_v24, %v5211_v36 }
 0x8dd   : > { %4748 = vst.msk [vmem:[%s6650_s12 + $0xc0] sm:$0xff] %vm4723_vm3, %v4693_v26  ;;  %v4696_v27 = vadd.f32 %v5213_v39, %v6643_v23 }
 0x8df   : > { %4749 = vst.msk [vmem:[%s6650_s12 + $0xc8] sm:$0xff] %vm4723_vm3, %v4696_v27  ;;  %v5214_v29 = vpop.f32.mrb[232].mxu1 }
 0x8e0   : > { %v5215_v31 = vpop.f32.mrb[233].mxu1 }
 0x8e1   : > { %v5216_v32 = vadd.f32 %v5215_v31, %v5214_v29  ;;  %v5217_v33 = vpop.f32.mrb[234].mxu1 }
 0x8e2   : > { %v5218_v34 = vpop.f32.mrb[235].mxu1 }
 0x8e3   : > { %v4701_v4 = vadd.f32 %v5216_v32, %v6643_v23  ;;  %v5219_v35 = vadd.f32 %v5218_v34, %v5217_v33 }
 0x8e5   : > { %4750 = vst.msk [vmem:[%s6650_s12 + $0xd0] sm:$0xff] %vm4723_vm3, %v4701_v4  ;;  %v4704_v60 = vadd.f32 %v5219_v35, %v6643_v23 }
 0x8e7   : > { %4751 = vst.msk [vmem:[%s6650_s12 + $0xd8] sm:$0xff] %vm4723_vm3, %v4704_v60  ;;  %v5220_v37 = vpop.f32.mrb[236].mxu1 }
 0x8e8   : > { %v5221_v40 = vpop.f32.mrb[237].mxu1 }
 0x8e9   : > { %v5222_v41 = vadd.f32 %v5221_v40, %v5220_v37  ;;  %v5223_v44 = vpop.f32.mrb[238].mxu1 }
 0x8ea   : > { %v5224_v46 = vpop.f32.mrb[239].mxu1 }
 0x8eb   : > { %v4709_v42 = vadd.f32 %v5222_v41, %v6643_v23  ;;  %v5225_v43 = vadd.f32 %v5224_v46, %v5223_v44 }
 0x8ed   : > { %4752 = vst.msk [vmem:[%s6650_s12 + $0xe0] sm:$0xff] %vm4723_vm3, %v4709_v42  ;;  %v4712_v10 = vadd.f32 %v5225_v43, %v6643_v23 }
 0x8ef   : > { %4753 = vst.msk [vmem:[%s6650_s12 + $0xe8] sm:$0xff] %vm4723_vm3, %v4712_v10  ;;  %v5226_v3 = vpop.f32.mrb[240].mxu1 }
 0x8f0   : > { %v5227_v13 = vpop.f32.mrb[241].mxu1 }
 0x8f1   : > { %v5228_v47 = vadd.f32 %v5227_v13, %v5226_v3  ;;  %v5229_v15 = vpop.f32.mrb[242].mxu1 }
 0x8f2   : > { %v5230_v50 = vpop.f32.mrb[243].mxu1 }
 0x8f3   : > { %v4717_v51 = vadd.f32 %v5228_v47, %v6643_v23  ;;  %v5231_v48 = vadd.f32 %v5230_v50, %v5229_v15 }
 0x8f5   : > { %4754 = vst.msk [vmem:[%s6650_s12 + $0xf0] sm:$0xff] %vm4723_vm3, %v4717_v51  ;;  %v4720_v61 = vadd.f32 %v5231_v48, %v6643_v23 }
 0x8f7   : > { %4755 = vst.msk [vmem:[%s6650_s12 + $0xf8] sm:$0xff] %vm4723_vm3, %v4720_v61 }
 0x8f8 PF: > { %s17_s21 = sadd.s32 1, %s5725_s21  }
 0x8f9   : > { %p14_p3 = scmp.ge.s32.totalorder %s17_s21, 4  }
 0x8fb   :  { %16 = sbr.rel (!%p14_p3) target bundleno = 1 (0x1), region = 93 }
 0x902   :  { %4778 = vsyncpa [#allocation3], 1 }
 0x903   :  { %4780 = vsyncpa [#allocation3 + $0x1], 1 }

</bundles_post_ra>
